<compile_context>
chip_gen: v7x
topology: tpu7x:2x2x1
jax: 0.10.0
libtpu: 0.0.40
codegen_flags: <defaults>
</compile_context>

<pallas_src>
import functools

import numpy as np
import jax
import jax.numpy as jnp
from jax.experimental import pallas as pl
from jax.experimental.pallas import tpu as pltpu

LANE = 128


def _round_up(x, m):
    return ((x + m - 1) // m) * m


def _feature_extractor_kernel(num_classes, W, Wp, p_out, chunk, n_chunks, inv_hw,
                              # scalar prefetch (SMEM)
                              labels_ref,
                              # inputs
                              x_ref, wconv_ref, bconv_ref, wclsT_ref, bclsT_ref,
                              # outputs
                              logitsT_ref, loss_ref):
    n = pl.program_id(0)
    f_pad = bconv_ref.shape[0]

    # ---- conv3x3 + bias + ReLU + masked global-average-pool over the image ----
    pooled = jnp.zeros((f_pad, 1), jnp.float32)            # column vector (F_pad, 1)
    for ci in range(n_chunks):                             # unrolled; static offsets
        off = ci * chunk
        acc = jnp.zeros((f_pad, chunk), jnp.float32)
        for si in range(9):                                # 9 shifted MXU matmuls
            dy, dx = si // 3, si % 3
            s = dy * Wp + dx                               # flat-index shift of tap
            xs = x_ref[0, :, off + s: off + s + chunk].astype(jnp.float32)  # (C, chunk)
            acc = acc + jnp.dot(wconv_ref[si], xs,
                                preferred_element_type=jnp.float32)
        h = jnp.maximum(acc + bconv_ref[...], 0.0)          # (F_pad, chunk)

        # pooling weights: 1/(H*W) on real image columns, 0 on padded-width /
        # tail positions; the pool itself is an MXU matvec (no XLU lane reduce).
        p = off + jax.lax.broadcasted_iota(jnp.int32, (chunk, 1), 0)
        valid = jnp.logical_and(p % Wp < W, p < p_out)
        mvec = jnp.where(valid, inv_hw, 0.0).astype(jnp.float32)
        pooled = pooled + jnp.dot(h, mvec, preferred_element_type=jnp.float32)

    # ---- classifier head (kept in transposed/column orientation, no transposes) ----
    logitsT = jnp.dot(wclsT_ref[...], pooled,
                      preferred_element_type=jnp.float32) + bclsT_ref[...]  # (NC_pad, 1)
    logitsT_ref[0] = logitsT

    # ---- per-image CrossEntropy (pad classes masked out of the LSE) ----
    row = jax.lax.broadcasted_iota(jnp.int32, logitsT.shape, 0)
    cls_valid = row < num_classes
    lm = jnp.where(cls_valid, logitsT, -1e30)
    m = jnp.max(lm, axis=0, keepdims=True)                  # (1, 1)
    lse = m + jnp.log(jnp.sum(jnp.where(cls_valid, jnp.exp(lm - m), 0.0),
                              axis=0, keepdims=True))
    picked = jnp.sum(jnp.where(row == labels_ref[n], logitsT, 0.0),
                     axis=0, keepdims=True)
    loss_ref[0] = lse - picked                              # per-image CE, (1, 1)


def feature_extractor_forward(x_nchw, labels, pixel_mean, pixel_std,
                              wconv, bconv, wcls, bcls, *, max_chunk=2048):
    """Training-mode forward: returns {'loss_cls': scalar, 'logits': (N, NC)}."""
    N, C, H, W = x_nchw.shape
    F = wconv.shape[-1]
    NC = wcls.shape[-1]
    F_pad = _round_up(F, LANE)
    NC_pad = _round_up(NC, LANE)

    Hp, Wp = H + 2, W + 2
    p_out = H * Wp                                 # conv evaluated on padded-width grid
    chunk = min(_round_up(p_out, LANE), _round_up(max_chunk, LANE))
    n_chunks = -(-p_out // chunk)
    # flat spatial length: enough for the last chunk + the largest tap shift.
    L = _round_up(n_chunks * chunk + 2 * Wp + 2, LANE)

    # ---- image stream: pad spatially with pixel_mean (-> contributes 0 after the
    # fold, matching zero-pad-after-normalize), flatten spatial, stream as bf16
    # with channels on sublanes and flattened spatial on lanes (lane-dense DMA).
    mean_f32 = pixel_mean.astype(jnp.float32)
    std_f32 = pixel_std.astype(jnp.float32)
    xp = jnp.broadcast_to(mean_f32[None, :, None, None], (N, C, Hp, Wp))
    xp = xp.at[:, :, 1:H + 1, 1:W + 1].set(x_nchw.astype(jnp.float32))
    xf = xp.reshape(N, C, Hp * Wp)
    xf = jnp.pad(xf, ((0, 0), (0, 0), (0, L - Hp * Wp)))    # tail is masked in-kernel
    x_bf16 = xf.astype(jnp.bfloat16)

    # ---- fold (x - mean)/std into the conv weights/bias (all in f32) ----
    w_f32 = wconv.astype(jnp.float32)                       # (3, 3, C, F) HWIO
    w_fold = w_f32 / std_f32[None, None, :, None]
    b_fold = bconv.astype(jnp.float32) - jnp.einsum('yxcf,c->f', w_f32,
                                                    mean_f32 / std_f32)
    wT = jnp.transpose(w_fold.reshape(9, C, F), (0, 2, 1))  # (9, F, C), tap-major
    wT_p = jnp.zeros((9, F_pad, C), jnp.float32).at[:, :F, :].set(wT)
    bconv_p = jnp.zeros((F_pad, 1), jnp.float32).at[:F, 0].set(b_fold)
    wclsT_p = jnp.zeros((NC_pad, F_pad), jnp.float32).at[:NC, :F].set(
        wcls.astype(jnp.float32).T)
    bclsT_p = jnp.zeros((NC_pad, 1), jnp.float32).at[:NC, 0].set(
        bcls.astype(jnp.float32))

    kernel = functools.partial(_feature_extractor_kernel, NC, W, Wp, p_out,
                               chunk, n_chunks, float(1.0 / (H * W)))

    grid_spec = pltpu.PrefetchScalarGridSpec(
        num_scalar_prefetch=1,                               # labels -> SMEM
        grid=(N,),
        in_specs=[
            # one whole (padded, flattened) image per grid step
            pl.BlockSpec((1, C, L), lambda n, lbl: (n, 0, 0)),
            # weights stay VMEM-resident across the whole grid (constant maps)
            pl.BlockSpec((9, F_pad, C), lambda n, lbl: (0, 0, 0)),
            pl.BlockSpec((F_pad, 1), lambda n, lbl: (0, 0)),
            pl.BlockSpec((NC_pad, F_pad), lambda n, lbl: (0, 0)),
            pl.BlockSpec((NC_pad, 1), lambda n, lbl: (0, 0)),
        ],
        out_specs=(
            pl.BlockSpec((1, NC_pad, 1), lambda n, lbl: (n, 0, 0)),  # logits^T per image
            pl.BlockSpec((1, 1, 1), lambda n, lbl: (n, 0, 0)),       # per-image CE loss
        ),
    )

    logitsT, loss_n = pl.pallas_call(
        kernel,
        out_shape=(jax.ShapeDtypeStruct((N, NC_pad, 1), jnp.float32),
                   jax.ShapeDtypeStruct((N, 1, 1), jnp.float32)),
        grid_spec=grid_spec,
        compiler_params=pltpu.CompilerParams(
            # per-image work is fully independent -> v7x megacore can shard batch
            dimension_semantics=("parallel",),
            vmem_limit_bytes=32 * 1024 * 1024,
        ),
    )(labels.astype(jnp.int32), x_bf16, wT_p, bconv_p, wclsT_p, bclsT_p)

    return {"loss_cls": jnp.mean(loss_n[:, 0, 0]),
            "logits": logitsT[:, :NC, 0]}


def _ref_forward(x_nchw, labels, pixel_mean, pixel_std, wconv, bconv, wcls, bcls):
    """Pure-JAX f32 reference mirroring the PyTorch semantics."""
    xn = (x_nchw - pixel_mean[None, :, None, None]) / pixel_std[None, :, None, None]
    h = jax.lax.conv_general_dilated(
        xn, wconv, window_strides=(1, 1), padding="SAME",
        dimension_numbers=("NCHW", "HWIO", "NCHW"))
    h = jax.nn.relu(h + bconv[None, :, None, None])
    pooled = jnp.mean(h, axis=(2, 3))
    logits = pooled @ wcls + bcls
    logp = jax.nn.log_softmax(logits, axis=-1)
    loss = -jnp.mean(logp[jnp.arange(labels.shape[0]), labels])
    return logits, loss


if __name__ == "__main__":
    N, C, H, W = 2, 3, 16, 16      # batch, channels (len(PIXEL_MEAN)), spatial
    F, NC = 32, 8                  # backbone feature width, NUM_CLASSES

    key = jax.random.PRNGKey(0)
    k = jax.random.split(key, 6)
    # integer-valued pixels (like real uint8 images) -> exact in the bf16 stream
    x = jax.random.randint(k[0], (N, C, H, W), 0, 256).astype(jnp.float32)
    labels = jax.random.randint(k[1], (N,), 0, NC)

    # cfg.MODEL.PIXEL_MEAN / PIXEL_STD (detectron2 BGR defaults)
    pixel_mean = jnp.array([103.53, 116.28, 123.675], jnp.float32)
    pixel_std = jnp.array([57.375, 57.12, 58.395], jnp.float32)

    # deterministic synthetic backbone parameters
    wconv = jax.random.normal(k[2], (3, 3, C, F), jnp.float32) * 0.1   # HWIO
    bconv = jax.random.normal(k[3], (F,), jnp.float32) * 0.01
    wcls = jax.random.normal(k[4], (F, NC), jnp.float32) * 0.1
    bcls = jax.random.normal(k[5], (NC,), jnp.float32) * 0.01

    # default: single spatial chunk per image
    out = jax.jit(feature_extractor_forward)(
        x, labels, pixel_mean, pixel_std, wconv, bconv, wcls, bcls)
    jax.block_until_ready(out)

    # small chunks to exercise the multi-chunk masked accumulation path
    out_mc = jax.jit(functools.partial(feature_extractor_forward, max_chunk=128))(
        x, labels, pixel_mean, pixel_std, wconv, bconv, wcls, bcls)
    jax.block_until_ready(out_mc)

    ref_logits, ref_loss = _ref_forward(
        x, labels, pixel_mean, pixel_std, wconv, bconv, wcls, bcls)
    # tolerance accounts for the bf16 pixel stream (pixels exact; only the bf16
    # rounding of the pixel_mean border fill introduces ~1e-4-level differences).
    for o in (out, out_mc):
        np.testing.assert_allclose(np.asarray(o["logits"]), np.asarray(ref_logits),
                                   rtol=2e-3, atol=2e-3)
        np.testing.assert_allclose(float(o["loss_cls"]), float(ref_loss),
                                   rtol=2e-3, atol=2e-3)

    print("KERNEL_OK")
</pallas_src>

<mosaic_0001>
module attributes {stable_mosaic.version = 11 : i64} {
  func.func @_feature_extractor_kernel(%arg0: i32, %arg1: memref<2xi32, #tpu.memory_space<smem>>, %arg2: memref<1x3x512xbf16, #tpu.memory_space<vmem>>, %arg3: memref<9x128x3xf32, #tpu.memory_space<vmem>>, %arg4: memref<128x1xf32, #tpu.memory_space<vmem>>, %arg5: memref<128x128xf32, #tpu.memory_space<vmem>>, %arg6: memref<128x1xf32, #tpu.memory_space<vmem>>, %arg7: memref<1x128x1xf32, #tpu.memory_space<vmem>>, %arg8: memref<1x1x1xf32, #tpu.memory_space<vmem>>) attributes {dimension_semantics = [#tpu.dimension_semantics<parallel>], iteration_bounds = array<i64: 2>, scalar_prefetch = 1 : i64, scratch_operands = 0 : i64, tpu.core_type = #tpu.core_type<tc>, window_params = [{transform_indices = @transform_0, window_bounds = array<i64: 1, 3, 512>}, {pipeline_mode = #tpu.pipeline_mode<synchronous>, transform_indices = @transform_1, window_bounds = array<i64: 9, 128, 3>}, {pipeline_mode = #tpu.pipeline_mode<synchronous>, transform_indices = @transform_2, window_bounds = array<i64: 128, 1>}, {pipeline_mode = #tpu.pipeline_mode<synchronous>, transform_indices = @transform_3, window_bounds = array<i64: 128, 128>}, {pipeline_mode = #tpu.pipeline_mode<synchronous>, transform_indices = @transform_4, window_bounds = array<i64: 128, 1>}, {transform_indices = @transform_5, window_bounds = array<i64: 1, 128, 1>}, {transform_indices = @transform_6, window_bounds = array<i64: 1, 1, 1>}]} {
    %cst = arith.constant 0.000000e+00 : f32
    %0 = vector.broadcast %cst : f32 to vector<128x1xf32>
    %cst_0 = arith.constant 0.000000e+00 : f32
    %1 = vector.broadcast %cst_0 : f32 to vector<128x384xf32>
    %c0 = arith.constant 0 : index
    %c0_1 = arith.constant 0 : index
    %c0_2 = arith.constant 0 : index
    %2 = vector.load %arg2[%c0, %c0_1, %c0_2] : memref<1x3x512xbf16, #tpu.memory_space<vmem>>, vector<1x3x384xbf16>
    %3 = vector.shape_cast %2 : vector<1x3x384xbf16> to vector<3x384xbf16>
    %4 = arith.extf %3 : vector<3x384xbf16> to vector<3x384xf32>
    %c0_3 = arith.constant 0 : index
    %c0_4 = arith.constant 0 : index
    %c0_5 = arith.constant 0 : index
    %5 = vector.load %arg3[%c0_3, %c0_4, %c0_5] : memref<9x128x3xf32, #tpu.memory_space<vmem>>, vector<1x128x3xf32>
    %6 = vector.shape_cast %5 : vector<1x128x3xf32> to vector<128x3xf32>
    %cst_6 = arith.constant dense<0.000000e+00> : vector<128x384xf32>
    %7 = tpu.matmul %6, %4, %cst_6 {dimension_numbers = #tpu.dot_dimension_numbers<[1], [0], [0], [1], [0, 0, 1, 1], [], []>} : vector<128x3xf32>, vector<3x384xf32>, vector<128x384xf32> -> vector<128x384xf32>
    %8 = arith.addf %1, %7 : vector<128x384xf32>
    %c0_7 = arith.constant 0 : index
    %c0_8 = arith.constant 0 : index
    %c1 = arith.constant 1 : index
    %9 = vector.load %arg2[%c0_7, %c0_8, %c1] : memref<1x3x512xbf16, #tpu.memory_space<vmem>>, vector<1x3x384xbf16>
    %10 = vector.shape_cast %9 : vector<1x3x384xbf16> to vector<3x384xbf16>
    %11 = arith.extf %10 : vector<3x384xbf16> to vector<3x384xf32>
    %c1_9 = arith.constant 1 : index
    %c0_10 = arith.constant 0 : index
    %c0_11 = arith.constant 0 : index
    %12 = vector.load %arg3[%c1_9, %c0_10, %c0_11] : memref<9x128x3xf32, #tpu.memory_space<vmem>>, vector<1x128x3xf32>
    %13 = vector.shape_cast %12 : vector<1x128x3xf32> to vector<128x3xf32>
    %cst_12 = arith.constant dense<0.000000e+00> : vector<128x384xf32>
    %14 = tpu.matmul %13, %11, %cst_12 {dimension_numbers = #tpu.dot_dimension_numbers<[1], [0], [0], [1], [0, 0, 1, 1], [], []>} : vector<128x3xf32>, vector<3x384xf32>, vector<128x384xf32> -> vector<128x384xf32>
    %15 = arith.addf %8, %14 : vector<128x384xf32>
    %c0_13 = arith.constant 0 : index
    %c0_14 = arith.constant 0 : index
    %c2 = arith.constant 2 : index
    %16 = vector.load %arg2[%c0_13, %c0_14, %c2] : memref<1x3x512xbf16, #tpu.memory_space<vmem>>, vector<1x3x384xbf16>
    %17 = vector.shape_cast %16 : vector<1x3x384xbf16> to vector<3x384xbf16>
    %18 = arith.extf %17 : vector<3x384xbf16> to vector<3x384xf32>
    %c2_15 = arith.constant 2 : index
    %c0_16 = arith.constant 0 : index
    %c0_17 = arith.constant 0 : index
    %19 = vector.load %arg3[%c2_15, %c0_16, %c0_17] : memref<9x128x3xf32, #tpu.memory_space<vmem>>, vector<1x128x3xf32>
    %20 = vector.shape_cast %19 : vector<1x128x3xf32> to vector<128x3xf32>
    %cst_18 = arith.constant dense<0.000000e+00> : vector<128x384xf32>
    %21 = tpu.matmul %20, %18, %cst_18 {dimension_numbers = #tpu.dot_dimension_numbers<[1], [0], [0], [1], [0, 0, 1, 1], [], []>} : vector<128x3xf32>, vector<3x384xf32>, vector<128x384xf32> -> vector<128x384xf32>
    %22 = arith.addf %15, %21 : vector<128x384xf32>
    %c0_19 = arith.constant 0 : index
    %c0_20 = arith.constant 0 : index
    %c18 = arith.constant 18 : index
    %23 = vector.load %arg2[%c0_19, %c0_20, %c18] : memref<1x3x512xbf16, #tpu.memory_space<vmem>>, vector<1x3x384xbf16>
    %24 = vector.shape_cast %23 : vector<1x3x384xbf16> to vector<3x384xbf16>
    %25 = arith.extf %24 : vector<3x384xbf16> to vector<3x384xf32>
    %c3 = arith.constant 3 : index
    %c0_21 = arith.constant 0 : index
    %c0_22 = arith.constant 0 : index
    %26 = vector.load %arg3[%c3, %c0_21, %c0_22] : memref<9x128x3xf32, #tpu.memory_space<vmem>>, vector<1x128x3xf32>
    %27 = vector.shape_cast %26 : vector<1x128x3xf32> to vector<128x3xf32>
    %cst_23 = arith.constant dense<0.000000e+00> : vector<128x384xf32>
    %28 = tpu.matmul %27, %25, %cst_23 {dimension_numbers = #tpu.dot_dimension_numbers<[1], [0], [0], [1], [0, 0, 1, 1], [], []>} : vector<128x3xf32>, vector<3x384xf32>, vector<128x384xf32> -> vector<128x384xf32>
    %29 = arith.addf %22, %28 : vector<128x384xf32>
    %c0_24 = arith.constant 0 : index
    %c0_25 = arith.constant 0 : index
    %c19 = arith.constant 19 : index
    %30 = vector.load %arg2[%c0_24, %c0_25, %c19] : memref<1x3x512xbf16, #tpu.memory_space<vmem>>, vector<1x3x384xbf16>
    %31 = vector.shape_cast %30 : vector<1x3x384xbf16> to vector<3x384xbf16>
    %32 = arith.extf %31 : vector<3x384xbf16> to vector<3x384xf32>
    %c4 = arith.constant 4 : index
    %c0_26 = arith.constant 0 : index
    %c0_27 = arith.constant 0 : index
    %33 = vector.load %arg3[%c4, %c0_26, %c0_27] : memref<9x128x3xf32, #tpu.memory_space<vmem>>, vector<1x128x3xf32>
    %34 = vector.shape_cast %33 : vector<1x128x3xf32> to vector<128x3xf32>
    %cst_28 = arith.constant dense<0.000000e+00> : vector<128x384xf32>
    %35 = tpu.matmul %34, %32, %cst_28 {dimension_numbers = #tpu.dot_dimension_numbers<[1], [0], [0], [1], [0, 0, 1, 1], [], []>} : vector<128x3xf32>, vector<3x384xf32>, vector<128x384xf32> -> vector<128x384xf32>
    %36 = arith.addf %29, %35 : vector<128x384xf32>
    %c0_29 = arith.constant 0 : index
    %c0_30 = arith.constant 0 : index
    %c20 = arith.constant 20 : index
    %37 = vector.load %arg2[%c0_29, %c0_30, %c20] : memref<1x3x512xbf16, #tpu.memory_space<vmem>>, vector<1x3x384xbf16>
    %38 = vector.shape_cast %37 : vector<1x3x384xbf16> to vector<3x384xbf16>
    %39 = arith.extf %38 : vector<3x384xbf16> to vector<3x384xf32>
    %c5 = arith.constant 5 : index
    %c0_31 = arith.constant 0 : index
    %c0_32 = arith.constant 0 : index
    %40 = vector.load %arg3[%c5, %c0_31, %c0_32] : memref<9x128x3xf32, #tpu.memory_space<vmem>>, vector<1x128x3xf32>
    %41 = vector.shape_cast %40 : vector<1x128x3xf32> to vector<128x3xf32>
    %cst_33 = arith.constant dense<0.000000e+00> : vector<128x384xf32>
    %42 = tpu.matmul %41, %39, %cst_33 {dimension_numbers = #tpu.dot_dimension_numbers<[1], [0], [0], [1], [0, 0, 1, 1], [], []>} : vector<128x3xf32>, vector<3x384xf32>, vector<128x384xf32> -> vector<128x384xf32>
    %43 = arith.addf %36, %42 : vector<128x384xf32>
    %c0_34 = arith.constant 0 : index
    %c0_35 = arith.constant 0 : index
    %c36 = arith.constant 36 : index
    %44 = vector.load %arg2[%c0_34, %c0_35, %c36] : memref<1x3x512xbf16, #tpu.memory_space<vmem>>, vector<1x3x384xbf16>
    %45 = vector.shape_cast %44 : vector<1x3x384xbf16> to vector<3x384xbf16>
    %46 = arith.extf %45 : vector<3x384xbf16> to vector<3x384xf32>
    %c6 = arith.constant 6 : index
    %c0_36 = arith.constant 0 : index
    %c0_37 = arith.constant 0 : index
    %47 = vector.load %arg3[%c6, %c0_36, %c0_37] : memref<9x128x3xf32, #tpu.memory_space<vmem>>, vector<1x128x3xf32>
    %48 = vector.shape_cast %47 : vector<1x128x3xf32> to vector<128x3xf32>
    %cst_38 = arith.constant dense<0.000000e+00> : vector<128x384xf32>
    %49 = tpu.matmul %48, %46, %cst_38 {dimension_numbers = #tpu.dot_dimension_numbers<[1], [0], [0], [1], [0, 0, 1, 1], [], []>} : vector<128x3xf32>, vector<3x384xf32>, vector<128x384xf32> -> vector<128x384xf32>
    %50 = arith.addf %43, %49 : vector<128x384xf32>
    %c0_39 = arith.constant 0 : index
    %c0_40 = arith.constant 0 : index
    %c37 = arith.constant 37 : index
    %51 = vector.load %arg2[%c0_39, %c0_40, %c37] : memref<1x3x512xbf16, #tpu.memory_space<vmem>>, vector<1x3x384xbf16>
    %52 = vector.shape_cast %51 : vector<1x3x384xbf16> to vector<3x384xbf16>
    %53 = arith.extf %52 : vector<3x384xbf16> to vector<3x384xf32>
    %c7 = arith.constant 7 : index
    %c0_41 = arith.constant 0 : index
    %c0_42 = arith.constant 0 : index
    %54 = vector.load %arg3[%c7, %c0_41, %c0_42] : memref<9x128x3xf32, #tpu.memory_space<vmem>>, vector<1x128x3xf32>
    %55 = vector.shape_cast %54 : vector<1x128x3xf32> to vector<128x3xf32>
    %cst_43 = arith.constant dense<0.000000e+00> : vector<128x384xf32>
    %56 = tpu.matmul %55, %53, %cst_43 {dimension_numbers = #tpu.dot_dimension_numbers<[1], [0], [0], [1], [0, 0, 1, 1], [], []>} : vector<128x3xf32>, vector<3x384xf32>, vector<128x384xf32> -> vector<128x384xf32>
    %57 = arith.addf %50, %56 : vector<128x384xf32>
    %c0_44 = arith.constant 0 : index
    %c0_45 = arith.constant 0 : index
    %c38 = arith.constant 38 : index
    %58 = vector.load %arg2[%c0_44, %c0_45, %c38] : memref<1x3x512xbf16, #tpu.memory_space<vmem>>, vector<1x3x384xbf16>
    %59 = vector.shape_cast %58 : vector<1x3x384xbf16> to vector<3x384xbf16>
    %60 = arith.extf %59 : vector<3x384xbf16> to vector<3x384xf32>
    %c8 = arith.constant 8 : index
    %c0_46 = arith.constant 0 : index
    %c0_47 = arith.constant 0 : index
    %61 = vector.load %arg3[%c8, %c0_46, %c0_47] : memref<9x128x3xf32, #tpu.memory_space<vmem>>, vector<1x128x3xf32>
    %62 = vector.shape_cast %61 : vector<1x128x3xf32> to vector<128x3xf32>
    %cst_48 = arith.constant dense<0.000000e+00> : vector<128x384xf32>
    %63 = tpu.matmul %62, %60, %cst_48 {dimension_numbers = #tpu.dot_dimension_numbers<[1], [0], [0], [1], [0, 0, 1, 1], [], []>} : vector<128x3xf32>, vector<3x384xf32>, vector<128x384xf32> -> vector<128x384xf32>
    %64 = arith.addf %57, %63 : vector<128x384xf32>
    %c0_49 = arith.constant 0 : index
    %c0_50 = arith.constant 0 : index
    %65 = vector.load %arg4[%c0_49, %c0_50] : memref<128x1xf32, #tpu.memory_space<vmem>>, vector<128x1xf32>
    %66 = vector.broadcast %65 : vector<128x1xf32> to vector<128x384xf32>
    %67 = arith.addf %64, %66 : vector<128x384xf32>
    %cst_51 = arith.constant 0.000000e+00 : f32
    %68 = vector.broadcast %cst_51 : f32 to vector<128x384xf32>
    %69 = arith.maximumf %67, %68 : vector<128x384xf32>
    %70 = tpu.iota {dimensions = array<i32: 0>} : vector<384x1xi32>
    %c0_i32 = arith.constant 0 : i32
    %71 = vector.broadcast %c0_i32 : i32 to vector<384x1xi32>
    %72 = arith.addi %71, %70 : vector<384x1xi32>
    %c18_i32 = arith.constant 18 : i32
    %c0_i32_52 = arith.constant 0 : i32
    %73 = arith.cmpi eq, %c18_i32, %c0_i32_52 : i32
    %c1_i32 = arith.constant 1 : i32
    %74 = arith.select %73, %c1_i32, %c18_i32 : i32
    %75 = vector.broadcast %74 : i32 to vector<384x1xi32>
    %76 = arith.remsi %72, %75 : vector<384x1xi32>
    %c0_i32_53 = arith.constant 0 : i32
    %77 = vector.broadcast %c0_i32_53 : i32 to vector<384x1xi32>
    %78 = arith.cmpi ne, %76, %77 : vector<384x1xi32>
    %c0_i32_54 = arith.constant 0 : i32
    %79 = vector.broadcast %c0_i32_54 : i32 to vector<384x1xi32>
    %80 = arith.cmpi slt, %76, %79 : vector<384x1xi32>
    %c0_i32_55 = arith.constant 0 : i32
    %81 = arith.cmpi slt, %74, %c0_i32_55 : i32
    %82 = vector.broadcast %81 : i1 to vector<384x1xi1>
    %83 = vector.broadcast %82 : vector<384x1xi1> to vector<384x1xi1>
    %84 = arith.xori %80, %83 : vector<384x1xi1>
    %85 = arith.andi %84, %78 : vector<384x1xi1>
    %86 = vector.broadcast %74 : i32 to vector<384x1xi32>
    %87 = arith.addi %76, %86 : vector<384x1xi32>
    %88 = arith.select %85, %87, %76 : vector<384x1xi1>, vector<384x1xi32>
    %c16_i32 = arith.constant 16 : i32
    %89 = vector.broadcast %c16_i32 : i32 to vector<384x1xi32>
    %90 = arith.cmpi slt, %88, %89 : vector<384x1xi32>
    %c288_i32 = arith.constant 288 : i32
    %91 = vector.broadcast %c288_i32 : i32 to vector<384x1xi32>
    %92 = arith.cmpi slt, %72, %91 : vector<384x1xi32>
    %93 = arith.andi %90, %92 : vector<384x1xi1>
    %cst_56 = arith.constant 3.906250e-03 : f32
    %cst_57 = arith.constant 0.000000e+00 : f32
    %94 = vector.broadcast %cst_56 : f32 to vector<384x1xf32>
    %95 = vector.broadcast %cst_57 : f32 to vector<384x1xf32>
    %96 = arith.select %93, %94, %95 : vector<384x1xi1>, vector<384x1xf32>
    %cst_58 = arith.constant dense<0.000000e+00> : vector<128x1xf32>
    %97 = tpu.matmul %69, %96, %cst_58 {dimension_numbers = #tpu.dot_dimension_numbers<[1], [0], [0], [1], [0, 0, 1, 1], [], []>} : vector<128x384xf32>, vector<384x1xf32>, vector<128x1xf32> -> vector<128x1xf32>
    %98 = arith.addf %0, %97 : vector<128x1xf32>
    %c0_59 = arith.constant 0 : index
    %c0_60 = arith.constant 0 : index
    %99 = vector.load %arg5[%c0_59, %c0_60] : memref<128x128xf32, #tpu.memory_space<vmem>>, vector<128x128xf32>
    %cst_61 = arith.constant dense<0.000000e+00> : vector<128x1xf32>
    %100 = tpu.matmul %99, %98, %cst_61 {dimension_numbers = #tpu.dot_dimension_numbers<[1], [0], [0], [1], [0, 0, 1, 1], [], []>} : vector<128x128xf32>, vector<128x1xf32>, vector<128x1xf32> -> vector<128x1xf32>
    %c0_62 = arith.constant 0 : index
    %c0_63 = arith.constant 0 : index
    %101 = vector.load %arg6[%c0_62, %c0_63] : memref<128x1xf32, #tpu.memory_space<vmem>>, vector<128x1xf32>
    %102 = arith.addf %100, %101 : vector<128x1xf32>
    %c0_64 = arith.constant 0 : index
    %c0_65 = arith.constant 0 : index
    %c0_66 = arith.constant 0 : index
    %103 = vector.load %arg7[%c0_64, %c0_65, %c0_66] : memref<1x128x1xf32, #tpu.memory_space<vmem>>, vector<1x128x1xf32>
    %104 = vector.shape_cast %103 : vector<1x128x1xf32> to vector<128x1xf32>
    %105 = vector.shape_cast %102 : vector<128x1xf32> to vector<1x128x1xf32>
    tpu.vector_store %arg7[%c0_64, %c0_65, %c0_66], %105 {strides = array<i32>} : memref<1x128x1xf32, #tpu.memory_space<vmem>>, vector<1x128x1xf32>,
    %106 = tpu.iota {dimensions = array<i32: 0>} : vector<128x1xi32>
    %c8_i32 = arith.constant 8 : i32
    %107 = vector.broadcast %c8_i32 : i32 to vector<128x1xi32>
    %108 = arith.cmpi slt, %106, %107 : vector<128x1xi32>
    %cst_67 = arith.constant -1.000000e+30 : f32
    %109 = vector.broadcast %cst_67 : f32 to vector<128x1xf32>
    %110 = arith.select %108, %102, %109 : vector<128x1xi1>, vector<128x1xf32>
    %cst_68 = arith.constant dense<0xFF800000> : vector<1xf32>
    %111 = vector.multi_reduction <maximumf>, %110, %cst_68 [0] : vector<128x1xf32> to vector<1xf32>
    %112 = vector.shape_cast %111 : vector<1xf32> to vector<1x1xf32>
    %113 = vector.broadcast %112 : vector<1x1xf32> to vector<128x1xf32>
    %114 = arith.subf %110, %113 : vector<128x1xf32>
    %115 = math.exp %114 : vector<128x1xf32>
    %cst_69 = arith.constant 0.000000e+00 : f32
    %116 = vector.broadcast %cst_69 : f32 to vector<128x1xf32>
    %117 = arith.select %108, %115, %116 : vector<128x1xi1>, vector<128x1xf32>
    %cst_70 = arith.constant dense<0.000000e+00> : vector<1xf32>
    %118 = vector.multi_reduction <add>, %117, %cst_70 [0] : vector<128x1xf32> to vector<1xf32>
    %119 = vector.shape_cast %118 : vector<1xf32> to vector<1x1xf32>
    %120 = math.log %119 : vector<1x1xf32>
    %121 = arith.addf %112, %120 : vector<1x1xf32>
    %122 = arith.index_cast %arg0 : i32 to index
    %123 = memref.load %arg1[%122] : memref<2xi32, #tpu.memory_space<smem>>
    %124 = vector.broadcast %123 : i32 to vector<128x1xi32>
    %125 = arith.cmpi eq, %106, %124 : vector<128x1xi32>
    %cst_71 = arith.constant 0.000000e+00 : f32
    %126 = vector.broadcast %cst_71 : f32 to vector<128x1xf32>
    %127 = arith.select %125, %102, %126 : vector<128x1xi1>, vector<128x1xf32>
    %cst_72 = arith.constant dense<0.000000e+00> : vector<1xf32>
    %128 = vector.multi_reduction <add>, %127, %cst_72 [0] : vector<128x1xf32> to vector<1xf32>
    %129 = vector.shape_cast %128 : vector<1xf32> to vector<1x1xf32>
    %130 = arith.subf %121, %129 : vector<1x1xf32>
    %c0_73 = arith.constant 0 : index
    %c0_74 = arith.constant 0 : index
    %c0_75 = arith.constant 0 : index
    %131 = vector.load %arg8[%c0_73, %c0_74, %c0_75] : memref<1x1x1xf32, #tpu.memory_space<vmem>>, vector<1x1x1xf32>
    %132 = vector.shape_cast %131 : vector<1x1x1xf32> to vector<1x1xf32>
    %133 = vector.shape_cast %130 : vector<1x1xf32> to vector<1x1x1xf32>
    tpu.vector_store %arg8[%c0_73, %c0_74, %c0_75], %133 {strides = array<i32>} : memref<1x1x1xf32, #tpu.memory_space<vmem>>, vector<1x1x1xf32>,
    return
  }
  func.func @transform_0(%arg0: i32, %arg1: memref<2xi32, #tpu.memory_space<smem>>) -> (i32, i32, i32) {
    %c0_i32 = arith.constant 0 : i32
    %c0_i32_0 = arith.constant 0 : i32
    %c0_i32_1 = arith.constant 0 : i32
    return %arg0, %c0_i32, %c0_i32_0 : i32, i32, i32
  }
  func.func @transform_1(%arg0: i32, %arg1: memref<2xi32, #tpu.memory_space<smem>>) -> (i32, i32, i32) {
    %c0_i32 = arith.constant 0 : i32
    %c0_i32_0 = arith.constant 0 : i32
    %c0_i32_1 = arith.constant 0 : i32
    %c0_i32_2 = arith.constant 0 : i32
    return %c0_i32, %c0_i32_0, %c0_i32_1 : i32, i32, i32
  }
  func.func @transform_2(%arg0: i32, %arg1: memref<2xi32, #tpu.memory_space<smem>>) -> (i32, i32) {
    %c0_i32 = arith.constant 0 : i32
    %c0_i32_0 = arith.constant 0 : i32
    %c0_i32_1 = arith.constant 0 : i32
    return %c0_i32, %c0_i32_0 : i32, i32
  }
  func.func @transform_3(%arg0: i32, %arg1: memref<2xi32, #tpu.memory_space<smem>>) -> (i32, i32) {
    %c0_i32 = arith.constant 0 : i32
    %c0_i32_0 = arith.constant 0 : i32
    %c0_i32_1 = arith.constant 0 : i32
    return %c0_i32, %c0_i32_0 : i32, i32
  }
  func.func @transform_4(%arg0: i32, %arg1: memref<2xi32, #tpu.memory_space<smem>>) -> (i32, i32) {
    %c0_i32 = arith.constant 0 : i32
    %c0_i32_0 = arith.constant 0 : i32
    %c0_i32_1 = arith.constant 0 : i32
    return %c0_i32, %c0_i32_0 : i32, i32
  }
  func.func @transform_5(%arg0: i32, %arg1: memref<2xi32, #tpu.memory_space<smem>>) -> (i32, i32, i32) {
    %c0_i32 = arith.constant 0 : i32
    %c0_i32_0 = arith.constant 0 : i32
    %c0_i32_1 = arith.constant 0 : i32
    return %arg0, %c0_i32, %c0_i32_0 : i32, i32, i32
  }
  func.func @transform_6(%arg0: i32, %arg1: memref<2xi32, #tpu.memory_space<smem>>) -> (i32, i32, i32) {
    %c0_i32 = arith.constant 0 : i32
    %c0_i32_0 = arith.constant 0 : i32
    %c0_i32_1 = arith.constant 0 : i32
    return %arg0, %c0_i32, %c0_i32_0 : i32, i32, i32
  }
}

</mosaic_0001>

<bundles_post_ra>
// kernel: div.10
= control target key start
LH: loop header
LB: loop body
LE: loop exit
PB: predicated region body
PF: predicated region fallthrough
CT: control target
= control target key end

     0   :  { %s37_s0 = inlined_call_operand.vmem [shape: f32[3], index: 0, kind: input, shape index: {}]   ;;  %s38_s1 = inlined_call_operand.vmem [shape: f32[3], index: 1, kind: input, shape index: {}]   ;;  %s39_s2 = inlined_call_operand.vmem [shape: f32[3], index: 2, kind: output, shape index: {}]  }
   0x1   :  { %v4_v0 = vld [vmem:[%s38_s1] sm:$0x1] }
   0x2   :  { %11 = vrcp.f32 %v4_v0  ;;  %v3_v1 = vld [vmem:[%s37_s0] sm:$0x1] }
   0xc   :  { %v12_v2 = vpop.eup %11 }
   0xd   :  { %v8_v3 = vmul.f32 %v12_v2, %v3_v1 }
   0xf   :  { %10 = vst [vmem:[%s39_s2] sm:$0x1] %v8_v3 }

// kernel: feature_extractor_forward.1
= control target key start
LH: loop header
LB: loop body
LE: loop exit
PB: predicated region body
PF: predicated region fallthrough
CT: control target
= control target key end

     0   :  { %s10229_s0 = inlined_call_operand.vmem [shape: s32[2], index: 0, kind: input, shape index: {}]   ;;  %s10230_s1 = inlined_call_operand.vmem [shape: bf16[2,3,512], index: 1, kind: input, shape index: {}]   ;;  %s10231_s2 = inlined_call_operand.vmem [shape: f32[9,128,3], index: 2, kind: input, shape index: {}]   ;;  %s10232_s3 = inlined_call_operand.vmem [shape: f32[128,1], index: 3, kind: input, shape index: {}]   ;;  %s10233_s4 = inlined_call_operand.vmem [shape: f32[128,128], index: 4, kind: input, shape index: {}]   ;;  %s10234_s5 = inlined_call_operand.vmem [shape: f32[128,1], index: 5, kind: input, shape index: {}]   ;;  %s10235_s6 = inlined_call_operand.vmem [shape: f32[2,128,1], index: 6, kind: output, shape index: {0}]   ;;  %s10236_s7 = inlined_call_operand.vmem [shape: f32[2,1,1], index: 7, kind: output, shape index: {1}]  }
   0x1   :  { %s13_s26 = sshll.u32 %s10229_s0, 4  ;;  %s14_s26 = int_to_ptr.vmem [resolvable:$true] %s13_s26 }
   0x2   :  { %s7864_s27 = scalar_lea.vmem %s14_s26, 16  ;;  %p7869_p1 = scmp.lt.s32.totalorder %s14_s26, %s14_s26 }
   0x3   :  { %p7865_p0 = scmp.ne.s32.totalorder %s14_s26, %s7864_s27  ;;  %p7870_p2 = scmp.lt.s32.totalorder %s7864_s27, %s7864_s27 }
   0x5   :  { %p7871_p3 = por %p7870_p2, %p7869_p1 }
   0x7   :  { %p7872_p4 = pnand %p7871_p3, %p7865_p0 }
   0x9   :  { %7875 = shalt.err (!%p7872_p4)  }
   0xa   :  { %s7886_s28 = smov [#allocation3]  }
   0xb   :  { %16 = dma.vmem_to_smem %s14_s26, 16, %s7886_s28, [#allocation2] }
   0xc   :  { %7880 = dma.done.wait [#allocation2], 16 }
   0xd   :  { %7881 = vsyncadd [#allocation2], 4294967280 }
   0xe   :  { %18 = sfence }
   0xf   :  { %s7942_s29 = smov 0  }
  0x10 LB: > { %s7948_s0 = sadd.s32 4294967295, %s7884_s29   ;;  %p6172_p5 = scmp.ge.s32.totalorder %s7884_s29, 1  ;;  %s7884_s29 = sphi %s7942_s29, %s24_s29  }
  0x11   : > { %p222_p6 = scmp.lt.s32.totalorder %s7884_s29, 3 }
  0x13   : > { %p223_p7 = pnand %p6172_p5, %p222_p6 }
  0x15   : > { %226 = sbr.rel (%p223_p7) target bundleno = 1363 (0x553), region = 40 }
  0x1c   : > { %p255_p8 = scmp.lt.s32.totalorder %s7948_s0, 1  ;;  %v7887_v0 = vmov 0.0   ;;  %vm372_vm0 = vcmask 1042432   ;;  %v7982_v9 = vld [vmem:[%s10231_s2] sm:$0xff]  ;;  %vm323_vm1 = vcmask 23552   ;;  %s7888_s14 = smov 110  }
  0x1d   : > { %806 = vmatprep.mubr.f32.mxu0 %v7887_v0  ;;  %443 = vmatprep.mubr.f32.mxu1 %v7887_v0  ;;  %s7889_s15 = smov 126   ;;  %v7996_v10 = vld [vmem:[%s10231_s2 + $0x8] sm:$0xff]  ;;  %v8008_v11 = vld [vmem:[%s10231_s2 + $0x10] sm:$0xff]  ;;  %s7890_s20 = smov 127   ;;  %v8018_v12 = vld [vmem:[%s10231_s2 + $0x18] sm:$0xff]  ;;  %vm1524_vm2 = vcmask 900096  }
  0x1e   : > { %s7956_s30 = scalar_select %p255_p8, %s7948_s0, 1  ;;  %v8030_v14 = vld [vmem:[%s10231_s2 + $0x20] sm:$0xff]  ;;  %v8039_v15 = vld [vmem:[%s10231_s2 + $0x28] sm:$0xff]  ;;  %v8050_v16 = vld [vmem:[%s10231_s2 + $0x30] sm:$0xff]  ;;  %vm1080_vm3 = vcmask 1031168   ;;  %vm319_vm4 = vcmask 1039360  }
  0x1f   : > { %s7891_s23 = smov 109   ;;  %s7892_s26 = smov 108   ;;  %v8061_v17 = vld [vmem:[%s10231_s2 + $0x38] sm:$0xff]  ;;  %v8071_v18 = vld [vmem:[%s10231_s2 + $0x40] sm:$0xff]  ;;  %v8081_v19 = vld [vmem:[%s10231_s2 + $0x48] sm:$0xff]  ;;  %vm1968_vm5 = vcmask 891904  }
  0x20   : > { %s6658_s8 = sshll.u32 %s7956_s30, 3  ;;  %s7894_s13 = smov 91   ;;  %v8089_v20 = vld [vmem:[%s10231_s2 + $0x50] sm:$0xff]  ;;  %v8097_v21 = vld [vmem:[%s10231_s2 + $0x58] sm:$0xff]  ;;  %v8120_v31 = vld [vmem:[%s10231_s2 + $0x100] sm:$0xff]  ;;  %vm2856_vm6 = vcmask 752640  }
  0x21   : > { %s259_s11 = scalar_lea.vmem %s10230_s1, %s6658_s8  ;;  %s7893_s8 = smov 92   ;;  %v8135_v37 = vld [vmem:[%s10231_s2 + $0x108] sm:$0xff]  ;;  %v8145_v42 = vld [vmem:[%s10231_s2 + $0x80] sm:$0xff]  ;;  %v8154_v44 = vld [vmem:[%s10231_s2 + $0x110] sm:$0xff]  ;;  %vm3300_vm7 = vcmask 744448   ;;  %vm2412_vm8 = vcmask 883712  }
  0x22   : > { %v1492_v1 = vld [vmem:[%s259_s11] sm:$0xff]  ;;  %s7895_s22 = smov 90   ;;  %v8169_v48 = vld [vmem:[%s10231_s2 + $0x88] sm:$0xff]  ;;  %v8180_v51 = vld [vmem:[%s10231_s2 + $0x118] sm:$0xff]  ;;  %vm3744_vm9 = vcmask 736256   ;;  %s6014_s16 = sld [smem:[#allocation3 + %s7948_s0]] }
  0x23   : > { %v7962_v2 = vld [vmem:[%s259_s11] sm:$0x3f]  ;;  %v7964_v3 = vunpack.c.l.bf16 %v1492_v1  ;;  %v1494_v4 = vunpack.c.h.bf16 %v1492_v1  ;;  %v8193_v54 = vld [vmem:[%s10231_s2 + $0x90] sm:$0xff]  ;;  %v8217_v59 = vld [vmem:[%s10231_s2 + $0x98] sm:$0xff]  ;;  %s267_s10 = scalar_lea.vmem %s10236_s7, %s7956_s30 }
  0x24   : > { %v7967_v5 = vunpack.c.l.bf16 %v7962_v2  ;;  %v8201_v56 = vld [vmem:[%s10231_s2 + $0x120] sm:$0xff]  ;;  %v8223_v61 = vld [vmem:[%s10231_s2 + $0x128] sm:$0xff] }
  0x25   : > { %v1514_v6 = vcombine.high %v7964_v3, %v7964_v3  ;;  %v310_v13 = vcombine.high %v1494_v4, %v1494_v4 }
  0x26   : > { %v7973_v7 = vcombine.high %v7967_v5, %v7967_v5 }
  0x27   : > { %v7975_v8 = vpack.i.bf16 %v1494_v4, %v1514_v6  ;;  %v8249_v4 = vld [vmem:[%s10231_s2 + $0x130] sm:$0xff] }
  0x28   : > { %6228 = vmatprep.subr.msk.mxu0 %vm372_vm0, %v7973_v7 }
  0x29   : > { %7824 = vrot.lane.b32.xlu1 %v7975_v8, %s7888_s14  ;;  %7819 = vrot.lane.b32.xlu0 %v7975_v8, %s7889_s15 }
  0x2a   : > { %6229 = vmatpush1.msk.msra.mxu0 %vm372_vm0, %v7967_v5 }
  0x2b   : > { %6230 = vmatmul.mubr.msk.f32.vlgmr.msra.gmra.mrb[0].mxu0 %vm323_vm1, %v7982_v9 }
  0x2c   : > { %812 = vmatprep.mubr.f32.mxu0 %v7887_v0 }
  0x2d   : > { %1516 = vrot.lane.b32.xlu1 %v7964_v3, %s7888_s14  ;;  %1072 = vrot.lane.b32.xlu0 %v7964_v3, %s7889_s15 }
  0x2f   : > { %6231 = vmatmul.mubr.msk.f32.gmra.mrb[2].mxu0 %vm323_vm1, %v7996_v10 }
  0x30   : > { %818 = vmatprep.mubr.f32.mxu0 %v7887_v0 }
  0x31   : > { %311 = vrot.lane.b32.xlu1 %v7964_v3, %s7890_s20  ;;  %7829 = vrot.lane.b32.xlu0 %v7975_v8, %s7890_s20 }
  0x33   : > { %6232 = vmatmul.mubr.msk.f32.gmra.mrb[4].mxu0 %vm323_vm1, %v8008_v11 }
  0x34   : > { %824 = vmatprep.mubr.f32.mxu0 %v7887_v0 }
  0x35   : > { %1960 = vrot.lane.b32.xlu1 %v7964_v3, %s7891_s23  ;;  %7834 = vrot.lane.b32.xlu0 %v7975_v8, %s7891_s23 }
  0x37   : > { %6233 = vmatmul.mubr.msk.f32.gmra.mrb[6].mxu0 %vm323_vm1, %v8018_v12 }
  0x38   : > { %830 = vmatprep.mubr.f32.mxu0 %v7887_v0 }
  0x39   : > { %7839 = vrot.lane.b32.xlu1 %v7975_v8, %s7892_s26  ;;  %317 = vrot.lane.b32.xlu0 %v310_v13, %s7890_s20 }
  0x3b   : > { %6234 = vmatmul.mubr.msk.f32.gmra.mrb[8].mxu0 %vm323_vm1, %v8030_v14 }
  0x3c   : > { %836 = vmatprep.mubr.f32.mxu0 %v7887_v0 }
  0x3d   : > { %7844 = vrot.lane.b32.xlu1 %v7975_v8, %s7893_s8  ;;  %2404 = vrot.lane.b32.xlu0 %v7964_v3, %s7892_s26 }
  0x3f   : > { %6235 = vmatmul.mubr.msk.f32.gmra.mrb[10].mxu0 %vm323_vm1, %v8039_v15 }
  0x40   : > { %842 = vmatprep.mubr.f32.mxu0 %v7887_v0 }
  0x41   : > { %1078 = vrot.lane.b32.xlu1 %v310_v13, %s7889_s15  ;;  %2848 = vrot.lane.b32.xlu0 %v7964_v3, %s7893_s8 }
  0x43   : > { %6236 = vmatmul.mubr.msk.f32.gmra.mrb[12].mxu0 %vm323_vm1, %v8050_v16 }
  0x44   : > { %848 = vmatprep.mubr.f32.mxu0 %v7887_v0 }
  0x45   : > { %1522 = vrot.lane.b32.xlu0 %v310_v13, %s7888_s14  ;;  %7849 = vrot.lane.b32.xlu1 %v7975_v8, %s7894_s13  ;;  %s6659_s14 = sshll.u32 %s7956_s30, 7 }
  0x47   : > { %6237 = vmatmul.mubr.msk.f32.gmra.mrb[14].mxu0 %vm323_vm1, %v8061_v17 }
  0x48   : > { %854 = vmatprep.mubr.f32.mxu0 %v7887_v0 }
  0x49   : > { %1966 = vrot.lane.b32.xlu1 %v310_v13, %s7891_s23  ;;  %3292 = vrot.lane.b32.xlu0 %v7964_v3, %s7894_s13  ;;  %s10089_s23 = scalar_lea.vmem %s10235_s6, %s6659_s14 }
  0x4b   : > { %6238 = vmatmul.mubr.msk.f32.gmra.mrb[16].mxu0 %vm323_vm1, %v8071_v18 }
  0x4c   : > { %860 = vmatprep.mubr.f32.mxu0 %v7887_v0 }
  0x4d   : > { %2410 = vrot.lane.b32.xlu0 %v310_v13, %s7892_s26  ;;  %7854 = vrot.lane.b32.xlu1 %v7975_v8, %s7895_s22 }
  0x4f   : > { %6239 = vmatmul.mubr.msk.f32.gmra.mrb[18].mxu0 %vm323_vm1, %v8081_v19 }
  0x50   : > { %866 = vmatprep.mubr.f32.mxu0 %v7887_v0 }
  0x51   : > { %3736 = vrot.lane.b32.xlu0 %v7964_v3, %s7895_s22  ;;  %2854 = vrot.lane.b32.xlu1 %v310_v13, %s7893_s8  ;;  %v8243_v3 = vld [vmem:[%s10231_s2 + $0xa0] sm:$0xff] }
  0x53   : > { %6240 = vmatmul.mubr.msk.f32.gmra.mrb[20].mxu0 %vm323_vm1, %v8089_v20 }
  0x54   : > { %872 = vmatprep.mubr.f32.mxu0 %v7887_v0 }
  0x55   : > { %3298 = vrot.lane.b32.xlu0 %v310_v13, %s7894_s13  ;;  %3742 = vrot.lane.b32.xlu1 %v310_v13, %s7895_s22  ;;  %v8266_v13 = vld [vmem:[%s10231_s2 + $0xa8] sm:$0xff] }
  0x57   : > { %6241 = vmatmul.mubr.msk.f32.gmra.mrb[22].mxu0 %vm323_vm1, %v8097_v21 }
  0x58   : > { %1202 = vmatprep.mubr.f32.mxu0 %v7887_v0 }
  0x9b   : > { %v8104_v22 = vpop.permute.xlu1 %7824  ;;  %v8106_v23 = vpop.permute.xlu0 %7819 }
  0x9c   : > { %v7827_v24 = vunpack.i.h.bf16 %v8104_v22  ;;  %v7826_v25 = vunpack.i.l.bf16 %v8104_v22  ;;  %v7822_v26 = vunpack.i.h.bf16 %v8106_v23  ;;  %v7821_v27 = vunpack.i.l.bf16 %v8106_v23  ;;  %v8272_v22 = vld [vmem:[%s10231_s2 + $0x138] sm:$0xff] }
  0x9e   : > { %v1082_v28 = vsel %vm1080_vm3, %v7821_v27, %v7822_v26  ;;  %v1526_v32 = vsel %vm1524_vm2, %v7826_v25, %v7827_v24 }
  0x9f   : > { %v1517_v29 = vpop.permute.xlu1 %1516  ;;  %v1073_v30 = vpop.permute.xlu0 %1072  ;;  %6279 = vmatprep.subr.msk.mxu0 %vm372_vm0, %v1082_v28  ;;  %v8307_v28 = vld [vmem:[%s10231_s2 + $0x148] sm:$0xff] }
  0xa0   : > { %v1525_v33 = vsel %vm1524_vm2, %v1517_v29, %v7826_v25  ;;  %v1081_v34 = vsel %vm1080_vm3, %v1073_v30, %v7821_v27  ;;  %v8285_v25 = vld [vmem:[%s10231_s2 + $0xb0] sm:$0xff]  ;;  %v8301_v27 = vld [vmem:[%s10231_s2 + $0xb8] sm:$0xff]  ;;  %v8317_v29 = vld [vmem:[%s10231_s2 + $0xc0] sm:$0xff] }
  0xa1   : > { %6280 = vmatpush1.msk.msra.mxu0 %vm372_vm0, %v1081_v34 }
  0xa2   : > { %6281 = vmatmul.mubr.msk.f32.vlgmr.msra.gmra.mrb[0].mxu0 %vm323_vm1, %v8120_v31  ;;  %6330 = vmatprep.subr.msk.mxu0 %vm372_vm0, %v1526_v32  ;;  %v8324_v32 = vld [vmem:[%s10231_s2 + $0x150] sm:$0xff] }
  0xa3   : > { %v312_v35 = vpop.permute.xlu1 %311  ;;  %v7830_v36 = vpop.permute.xlu0 %7829  ;;  %1208 = vmatprep.mubr.f32.mxu0 %v7887_v0  ;;  %6331 = vmatpush1.msk.msra.mxu0 %vm372_vm0, %v1525_v33 }
  0xa4   : > { %v7832_v38 = vunpack.i.h.bf16 %v7830_v36  ;;  %v7831_v39 = vunpack.i.l.bf16 %v7830_v36 }
  0xa6   : > { %6282 = vmatmul.mubr.msk.f32.gmra.mrb[2].mxu0 %vm323_vm1, %v8135_v37  ;;  %v321_v40 = vsel %vm319_vm4, %v7831_v39, %v7832_v38  ;;  %v320_v41 = vsel %vm319_vm4, %v312_v35, %v7831_v39  ;;  %v8335_v35 = vld [vmem:[%s10231_s2 + $0xc8] sm:$0xff] }
  0xa7   : > { %v8147_v43 = vpop.permute.xlu1 %1960  ;;  %6193 = vmatprep.subr.msk.mxu1 %vm372_vm0, %v321_v40  ;;  %1214 = vmatprep.mubr.f32.mxu0 %v7887_v0  ;;  %v8156_v45 = vpop.permute.xlu0 %7834  ;;  %v8356_v40 = vld [vmem:[%s10231_s2 + $0xd0] sm:$0xff] }
  0xa8   : > { %6194 = vmatpush1.msk.msra.mxu1 %vm372_vm0, %v320_v41  ;;  %v7837_v46 = vunpack.i.h.bf16 %v8156_v45  ;;  %v7836_v47 = vunpack.i.l.bf16 %v8156_v45  ;;  %v8455_v45 = vld [vmem:[%s10231_s2 + $0x190] sm:$0xff] }
  0xa9   : > { %6195 = vmatmul.mubr.msk.f32.vlgmr.msra.gmra.mrb[0].mxu1 %vm323_vm1, %v8145_v42 }
  0xaa   : > { %6283 = vmatmul.mubr.msk.f32.gmra.mrb[4].mxu0 %vm323_vm1, %v8154_v44  ;;  %449 = vmatprep.mubr.f32.mxu1 %v7887_v0  ;;  %v1970_v49 = vsel %vm1968_vm5, %v7836_v47, %v7837_v46 }
  0xab   : > { %v8174_v50 = vpop.permute.xlu1 %7839  ;;  %1220 = vmatprep.mubr.f32.mxu0 %v7887_v0  ;;  %v318_v52 = vpop.permute.xlu0 %317  ;;  %6381 = vmatprep.subr.msk.mxu0 %vm372_vm0, %v1970_v49  ;;  %v8375_v49 = vld [vmem:[%s10231_s2 + $0xd8] sm:$0xff] }
  0xac   : > { %v322_v53 = vsel %vm319_vm4, %v7832_v38, %v318_v52  ;;  %v7842_v34 = vunpack.i.h.bf16 %v8174_v50  ;;  %v8346_v38 = vld [vmem:[%s10231_s2 + $0x158] sm:$0xff]  ;;  %v8381_v52 = vld [vmem:[%s10231_s2 + $0x168] sm:$0xff] }
  0xad   : > { %6196 = vmatmul.mubr.msk.f32.gmra.mrb[2].mxu1 %vm323_vm1, %v8169_v48  ;;  %6945 = vmatprep.subr.msk.mxu1 %vm372_vm0, %v322_v53 }
  0xae   : > { %6284 = vmatmul.mubr.msk.f32.gmra.mrb[6].mxu0 %vm323_vm1, %v8180_v51  ;;  %455 = vmatprep.mubr.f32.mxu1 %v7887_v0 }
  0xaf   : > { %v8195_v55 = vpop.permute.xlu1 %7844  ;;  %1226 = vmatprep.mubr.f32.mxu0 %v7887_v0  ;;  %v8203_v57 = vpop.permute.xlu0 %2404  ;;  %6946 = vmatpush3.msk.msra.mxu1 %vm372_vm0, %v322_v53  ;;  %v6189_v53 = vld [vmem:[%s10231_s2 + $0xe0] sm:$0xff] }
  0xb0   : > { %v10238_v58 = vunpack.i.l.bf16 %v8195_v55  ;;  %7339 = vmatprep.subr.msk.mxu1 %vm372_vm0, %v7973_v7 }
  0xb1   : > { %6197 = vmatmul.mubr.msk.f32.gmra.mrb[4].mxu1 %vm323_vm1, %v8193_v54 }
  0xb2   : > { %6285 = vmatmul.mubr.msk.f32.gmra.mrb[8].mxu0 %vm323_vm1, %v8201_v56  ;;  %461 = vmatprep.mubr.f32.mxu1 %v7887_v0 }
  0xb3   : > { %v1079_v60 = vpop.permute.xlu1 %1078  ;;  %1232 = vmatprep.mubr.f32.mxu0 %v7887_v0  ;;  %v2849_v62 = vpop.permute.xlu0 %2848 }
  0xb4   : > { %v8228_v63 = vsel %vm1080_vm3, %v7822_v26, %v1079_v60  ;;  %v8233_v1 = vsel %vm2856_vm6, %v2849_v62, %v10238_v58  ;;  %v8291_v26 = vld [vmem:[%s10231_s2 + $0x140] sm:$0xff]  ;;  %v8395_v60 = vld [vmem:[%s10231_s2 + $0x170] sm:$0xff]  ;;  %v6190_v62 = vld [vmem:[%s10231_s2 + $0xe8] sm:$0xff] }
  0xb5   : > { %6198 = vmatmul.mubr.msk.f32.gmra.mrb[6].mxu1 %vm323_vm1, %v8217_v59 }
  0xb6   : > { %6286 = vmatmul.mubr.msk.f32.gmra.mrb[10].mxu0 %vm323_vm1, %v8223_v61  ;;  %467 = vmatprep.mubr.f32.mxu1 %v7887_v0 }
  0xb7   : > { %1238 = vmatprep.mubr.f32.mxu0 %v7887_v0  ;;  %v1523_v6 = vpop.permute.xlu0 %1522  ;;  %v8251_v7 = vpop.permute.xlu1 %7849 }
  0xb8   : > { %v8256_v8 = vsel %vm1524_vm2, %v7827_v24, %v1523_v6  ;;  %v10237_v30 = vunpack.i.l.bf16 %v8251_v7  ;;  %v8408_v6 = vld [vmem:[%s10231_s2 + $0x178] sm:$0xff] }
  0xb9   : > { %6199 = vmatmul.mubr.msk.f32.gmra.mrb[8].mxu1 %vm323_vm1, %v8243_v3 }
  0xba   : > { %6287 = vmatmul.mubr.msk.f32.gmra.mrb[12].mxu0 %vm323_vm1, %v8249_v4  ;;  %473 = vmatprep.mubr.f32.mxu1 %v7887_v0 }
  0xbb   : > { %1244 = vmatprep.mubr.f32.mxu0 %v7887_v0  ;;  %v1967_v23 = vpop.permute.xlu1 %1966  ;;  %v3293_v33 = vpop.permute.xlu0 %3292 }
  0xbc   : > { %v8275_v24 = vsel %vm1968_vm5, %v7837_v46, %v1967_v23  ;;  %v8340_v36 = vsel %vm3300_vm7, %v3293_v33, %v10237_v30  ;;  %v8365_v46 = vld [vmem:[%s10231_s2 + $0x160] sm:$0xff]  ;;  %v7841_v23 = vunpack.i.l.bf16 %v8174_v50  ;;  %v6191_v33 = vld [vmem:[%s10231_s2 + $0xf0] sm:$0xff]  ;;  %v1969_v30 = vsel %vm1968_vm5, %v8147_v43, %v7836_v47  ;;  %v8442_v43 = vld [vmem:[%s10231_s2 + $0x188] sm:$0xff] }
  0xbd   : > { %6200 = vmatmul.mubr.msk.f32.gmra.mrb[10].mxu1 %vm323_vm1, %v8266_v13  ;;  %10257 = vst [vmem:[#allocation5_spill] sm:$0xff] %v8340_v36  ;;  %v6192_v36 = vld [vmem:[%s10231_s2 + $0xf8] sm:$0xff]  ;;  %v270_v47 = vunpack.c.h.bf16 %v7962_v2  ;;  %v8483_v2 = vld [vmem:[%s10231_s2 + $0x1a0] sm:$0xff]  ;;  %v8656_v50 = vld [vmem:[%s10231_s2 + $0x208] sm:$0xff] }
  0xbe   : > { %6288 = vmatmul.mubr.msk.f32.gmra.mrb[14].mxu0 %vm323_vm1, %v8272_v22  ;;  %479 = vmatprep.mubr.f32.mxu1 %v7887_v0  ;;  %v2414_v58 = vsel %vm2412_vm8, %v7841_v23, %v7842_v34 }
  0xbf   : > { %1250 = vmatprep.mubr.f32.mxu0 %v7887_v0  ;;  %v2411_v39 = vpop.permute.xlu0 %2410 }
  0xc0   : > { %v8359_v41 = vsel %vm2412_vm8, %v7842_v34, %v2411_v39  ;;  %v8422_v39 = vld [vmem:[%s10231_s2 + $0x180] sm:$0xff]  ;;  %v286_v34 = vld [vmem:[%s10231_s2 + $0x78] sm:$0xff] }
  0xc1   : > { %6201 = vmatmul.mubr.msk.f32.gmra.mrb[12].mxu1 %vm323_vm1, %v8285_v25 }
  0xc2   : > { %6289 = vmatmul.mubr.msk.f32.gmra.mrb[16].mxu0 %vm323_vm1, %v8291_v26  ;;  %485 = vmatprep.mubr.f32.mxu1 %v7887_v0 }
  0xc3   : > { %1256 = vmatprep.mubr.f32.mxu0 %v7887_v0 }
  0xc5   : > { %6202 = vmatmul.mubr.msk.f32.gmra.mrb[14].mxu1 %vm323_vm1, %v8301_v27 }
  0xc6   : > { %6290 = vmatmul.mubr.msk.f32.gmra.mrb[18].mxu0 %vm323_vm1, %v8307_v28  ;;  %491 = vmatprep.mubr.f32.mxu1 %v7887_v0 }
  0xc7   : > { %1262 = vmatprep.mubr.f32.mxu0 %v7887_v0 }
  0xc9   : > { %6203 = vmatmul.mubr.msk.f32.gmra.mrb[16].mxu1 %vm323_vm1, %v8317_v29 }
  0xca   : > { %6291 = vmatmul.mubr.msk.f32.gmra.mrb[20].mxu0 %vm323_vm1, %v8324_v32  ;;  %497 = vmatprep.mubr.f32.mxu1 %v7887_v0 }
  0xcb   : > { %1268 = vmatprep.mubr.f32.mxu0 %v7887_v0 }
  0xcd   : > { %6204 = vmatmul.mubr.msk.f32.gmra.mrb[18].mxu1 %vm323_vm1, %v8335_v35 }
  0xce   : > { %6292 = vmatmul.mubr.msk.f32.gmra.mrb[22].mxu0 %vm323_vm1, %v8346_v38  ;;  %503 = vmatprep.mubr.f32.mxu1 %v7887_v0 }
  0xcf   : > { %1274 = vmatprep.mubr.f32.mxu0 %v7887_v0 }
  0xd1   : > { %6205 = vmatmul.mubr.msk.f32.gmra.mrb[20].mxu1 %vm323_vm1, %v8356_v40 }
  0xd2   : > { %6293 = vmatmul.mubr.msk.f32.gmra.mrb[24].mxu0 %vm323_vm1, %v8365_v46  ;;  %509 = vmatprep.mubr.f32.mxu1 %v7887_v0 }
  0xd3   : > { %1280 = vmatprep.mubr.f32.mxu0 %v7887_v0 }
  0xd5   : > { %6206 = vmatmul.mubr.msk.f32.gmra.mrb[22].mxu1 %vm323_vm1, %v8375_v49 }
  0xd6   : > { %6294 = vmatmul.mubr.msk.f32.gmra.mrb[26].mxu0 %vm323_vm1, %v8381_v52  ;;  %515 = vmatprep.mubr.f32.mxu1 %v7887_v0 }
  0xd7   : > { %1286 = vmatprep.mubr.f32.mxu0 %v7887_v0 }
  0xd9   : > { %6207 = vmatmul.mubr.msk.f32.gmra.mrb[24].mxu1 %vm323_vm1, %v6189_v53 }
  0xda   : > { %6295 = vmatmul.mubr.msk.f32.gmra.mrb[28].mxu0 %vm323_vm1, %v8395_v60  ;;  %521 = vmatprep.mubr.f32.mxu1 %v7887_v0 }
  0xdb   : > { %1292 = vmatprep.mubr.f32.mxu0 %v7887_v0 }
  0xdd   : > { %6208 = vmatmul.mubr.msk.f32.gmra.mrb[26].mxu1 %vm323_vm1, %v6190_v62 }
  0xde   : > { %6296 = vmatmul.mubr.msk.f32.gmra.mrb[30].mxu0 %vm323_vm1, %v8408_v6  ;;  %527 = vmatprep.mubr.f32.mxu1 %v7887_v0 }
  0xdf   : > { %1646 = vmatprep.mubr.f32.mxu0 %v7887_v0 }
  0xe1   : > { %6209 = vmatmul.mubr.msk.f32.gmra.mrb[28].mxu1 %vm323_vm1, %v6191_v33 }
  0xe2   : > { %6332 = vmatmul.mubr.msk.f32.vlgmr.msra.gmra.mrb[0].mxu0 %vm323_vm1, %v8422_v39  ;;  %533 = vmatprep.mubr.f32.mxu1 %v7887_v0 }
  0xe3   : > { %1652 = vmatprep.mubr.f32.mxu0 %v7887_v0  ;;  %6382 = vmatpush1.msk.msra.mxu0 %vm372_vm0, %v1969_v30  ;;  %v8582_v30 = vld [vmem:[%s10231_s2 + $0x1e0] sm:$0xff] }
  0xe4   : > { %6432 = vmatprep.subr.msk.mxu0 %vm372_vm0, %v2414_v58  ;;  %v8530_v58 = vld [vmem:[%s10231_s2 + $0x1c0] sm:$0xff] }
  0xe5   : > { %6210 = vmatmul.mubr.msk.f32.gmra.mrb[30].mxu1 %vm323_vm1, %v6192_v36 }
  0xe6   : > { %6333 = vmatmul.mubr.msk.f32.gmra.mrb[2].mxu0 %vm323_vm1, %v8442_v43  ;;  %6947 = vmatprep.mubr.msk.f32.mxu1 %vm323_vm1, %v8145_v42  ;;  %v8468_v42 = vld [vmem:[%s10231_s2 + $0x198] sm:$0xff] }
  0xe7   : > { %1658 = vmatprep.mubr.f32.mxu0 %v7887_v0 }
  0xe9   : > { %6948 = vmatmul.mubr.msk.f32.vlgmr.msra.gmra.mrb[32].mxu1 %vm323_vm1, %v8169_v48  ;;  %v8507_v48 = vld [vmem:[%s10231_s2 + $0x1b0] sm:$0xff] }
  0xea   : > { %6334 = vmatmul.mubr.msk.f32.gmra.mrb[4].mxu0 %vm323_vm1, %v8455_v45  ;;  %6950 = vmatprep.mubr.msk.f32.mxu1 %vm323_vm1, %v8193_v54  ;;  %v8519_v54 = vld [vmem:[%s10231_s2 + $0x1b8] sm:$0xff] }
  0xeb   : > { %1664 = vmatprep.mubr.f32.mxu0 %v7887_v0  ;;  %7340 = vmatpush1.msk.msra.mxu1 %vm372_vm0, %v7967_v5  ;;  %v8495_v5 = vld [vmem:[%s10231_s2 + $0x1a8] sm:$0xff] }
  0xec   : > { %6971 = vmatprep.subr.msk.mxu1 %vm372_vm0, %v270_v47 }
  0xed   : > { %6951 = vmatmul.mubr.msk.f32.gmra.mrb[34].mxu1 %vm323_vm1, %v8217_v59  ;;  %v8540_v59 = vld [vmem:[%s10231_s2 + $0x1c8] sm:$0xff] }
  0xee   : > { %6335 = vmatmul.mubr.msk.f32.gmra.mrb[6].mxu0 %vm323_vm1, %v8468_v42  ;;  %6953 = vmatprep.mubr.msk.f32.mxu1 %vm323_vm1, %v8243_v3  ;;  %v283_v3 = vld [vmem:[%s10231_s2 + $0x60] sm:$0xff] }
  0xef   : > { %1670 = vmatprep.mubr.f32.mxu0 %v7887_v0 }
  0xf1   : > { %6954 = vmatmul.mubr.msk.f32.gmra.mrb[36].mxu1 %vm323_vm1, %v8266_v13  ;;  %v8553_v13 = vld [vmem:[%s10231_s2 + $0x1d0] sm:$0xff] }
  0xf2   : > { %6336 = vmatmul.mubr.msk.f32.gmra.mrb[8].mxu0 %vm323_vm1, %v8483_v2  ;;  %6956 = vmatprep.mubr.msk.f32.mxu1 %vm323_vm1, %v8285_v25  ;;  %v284_v25 = vld [vmem:[%s10231_s2 + $0x68] sm:$0xff] }
  0xf3   : > { %1676 = vmatprep.mubr.f32.mxu0 %v7887_v0 }
  0xf5   : > { %6957 = vmatmul.mubr.msk.f32.gmra.mrb[38].mxu1 %vm323_vm1, %v8301_v27  ;;  %v8568_v27 = vld [vmem:[%s10231_s2 + $0x1d8] sm:$0xff] }
  0xf6   : > { %6337 = vmatmul.mubr.msk.f32.gmra.mrb[10].mxu0 %vm323_vm1, %v8495_v5  ;;  %6959 = vmatprep.mubr.msk.f32.mxu1 %vm323_vm1, %v8317_v29  ;;  %v285_v29 = vld [vmem:[%s10231_s2 + $0x70] sm:$0xff] }
  0xf7   : > { %1682 = vmatprep.mubr.f32.mxu0 %v7887_v0 }
  0xf9   : > { %6960 = vmatmul.mubr.msk.f32.gmra.mrb[40].mxu1 %vm323_vm1, %v8335_v35  ;;  %v8595_v35 = vld [vmem:[%s10231_s2 + $0x1e8] sm:$0xff] }
  0xfa   : > { %6338 = vmatmul.mubr.msk.f32.gmra.mrb[12].mxu0 %vm323_vm1, %v8507_v48  ;;  %6962 = vmatprep.mubr.msk.f32.mxu1 %vm323_vm1, %v8356_v40  ;;  %v8868_v40 = vld [vmem:[%s10231_s2 + $0x288] sm:$0xff] }
  0xfb   : > { %1688 = vmatprep.mubr.f32.mxu0 %v7887_v0 }
  0xfd   : > { %6963 = vmatmul.mubr.msk.f32.gmra.mrb[42].mxu1 %vm323_vm1, %v8375_v49  ;;  %v8907_v49 = vld [vmem:[%s10231_s2 + $0x2a0] sm:$0xff] }
  0xfe   : > { %6339 = vmatmul.mubr.msk.f32.gmra.mrb[14].mxu0 %vm323_vm1, %v8519_v54  ;;  %6965 = vmatprep.mubr.msk.f32.mxu1 %vm323_vm1, %v6189_v53 }
  0xff   : > { %1694 = vmatprep.mubr.f32.mxu0 %v7887_v0 }
 0x101   : > { %6966 = vmatmul.mubr.msk.f32.gmra.mrb[44].mxu1 %vm323_vm1, %v6190_v62 }
 0x102   : > { %6340 = vmatmul.mubr.msk.f32.gmra.mrb[16].mxu0 %vm323_vm1, %v8530_v58  ;;  %6968 = vmatprep.mubr.msk.f32.mxu1 %vm323_vm1, %v6191_v33 }
 0x103   : > { %1700 = vmatprep.mubr.f32.mxu0 %v7887_v0 }
 0x105   : > { %6969 = vmatmul.mubr.msk.f32.gmra.mrb[46].mxu1 %vm323_vm1, %v6192_v36  ;;  %v8606_v36 = vld [vmem:[%s10231_s2 + $0x1f0] sm:$0xff] }
 0x106   : > { %6341 = vmatmul.mubr.msk.f32.gmra.mrb[18].mxu0 %vm323_vm1, %v8540_v59  ;;  %878 = vmatprep.mubr.f32.mxu1 %v7887_v0 }
 0x107   : > { %1706 = vmatprep.mubr.f32.mxu0 %v7887_v0 }
 0x109   : > { %6242 = vmatmul.mubr.msk.f32.vlgmr.msra.gmra.mrb[24].mxu1 %vm323_vm1, %v283_v3 }
 0x10a   : > { %6972 = vmatpush3.msk.msra.mxu1 %vm372_vm0, %v270_v47  ;;  %6342 = vmatmul.mubr.msk.f32.gmra.mrb[20].mxu0 %vm323_vm1, %v8553_v13 }
 0x10b   : > { %6997 = vmatprep.subr.msk.mxu1 %vm372_vm0, %v8228_v63  ;;  %884 = vmatprep.mubr.f32.mxu1 %v7887_v0 }
 0x10c   : > { %1712 = vmatprep.mubr.f32.mxu0 %v7887_v0 }
 0x10d   : > { %6243 = vmatmul.mubr.msk.f32.gmra.mrb[26].mxu1 %vm323_vm1, %v284_v25 }
 0x10e   : > { %6343 = vmatmul.mubr.msk.f32.gmra.mrb[22].mxu0 %vm323_vm1, %v8568_v27  ;;  %890 = vmatprep.mubr.f32.mxu1 %v7887_v0 }
 0x10f   : > { %1718 = vmatprep.mubr.f32.mxu0 %v7887_v0 }
 0x111   : > { %6244 = vmatmul.mubr.msk.f32.gmra.mrb[28].mxu1 %vm323_vm1, %v285_v29 }
 0x112   : > { %6344 = vmatmul.mubr.msk.f32.gmra.mrb[24].mxu0 %vm323_vm1, %v8582_v30  ;;  %896 = vmatprep.mubr.f32.mxu1 %v7887_v0 }
 0x113   : > { %1724 = vmatprep.mubr.f32.mxu0 %v7887_v0 }
 0x115   : > { %6245 = vmatmul.mubr.msk.f32.gmra.mrb[30].mxu1 %vm323_vm1, %v286_v34 }
 0x116   : > { %6345 = vmatmul.mubr.msk.f32.gmra.mrb[26].mxu0 %vm323_vm1, %v8595_v35  ;;  %6973 = vmatprep.mubr.msk.f32.mxu1 %vm323_vm1, %v7982_v9  ;;  %v8621_v9 = vld [vmem:[%s10231_s2 + $0x1f8] sm:$0xff] }
 0x117   : > { %1730 = vmatprep.mubr.f32.mxu0 %v7887_v0 }
 0x119   : > { %6974 = vmatmul.mubr.msk.f32.vlgmr.msra.gmra.mrb[32].mxu1 %vm323_vm1, %v7996_v10  ;;  %v7847_v10 = vunpack.i.h.bf16 %v8195_v55 }
 0x11a   : > { %6998 = vmatpush3.msk.msra.mxu1 %vm372_vm0, %v8228_v63  ;;  %6346 = vmatmul.mubr.msk.f32.gmra.mrb[28].mxu0 %vm323_vm1, %v8606_v36  ;;  %v2413_v63 = vsel %vm2412_vm8, %v8203_v57, %v7841_v23  ;;  %v8965_v23 = vld [vmem:[%s10231_s2 + $0x2c0] sm:$0xff] }
 0x11b   : > { %7023 = vmatprep.subr.msk.mxu1 %vm372_vm0, %v8256_v8  ;;  %6976 = vmatprep.mubr.msk.f32.mxu1 %vm323_vm1, %v8008_v11  ;;  %v8635_v11 = vld [vmem:[%s10231_s2 + $0x200] sm:$0xff] }
 0x11c   : > { %1736 = vmatprep.mubr.f32.mxu0 %v7887_v0 }
 0x11d   : > { %6977 = vmatmul.mubr.msk.f32.gmra.mrb[34].mxu1 %vm323_vm1, %v8018_v12  ;;  %v10258_v12 = vunpack.i.l.bf16 %v8195_v55 }
 0x11e   : > { %6347 = vmatmul.mubr.msk.f32.gmra.mrb[30].mxu0 %vm323_vm1, %v8621_v9  ;;  %6979 = vmatprep.mubr.msk.f32.mxu1 %vm323_vm1, %v8030_v14 }
 0x11f   : > { %2090 = vmatprep.mubr.f32.mxu0 %v7887_v0  ;;  %v2858_v14 = vsel %vm2856_vm6, %v10258_v12, %v7847_v10  ;;  %v6467_v12 = vld [vmem:[%s10231_s2 + $0x300] sm:$0xff] }
 0x121   : > { %6980 = vmatmul.mubr.msk.f32.gmra.mrb[36].mxu1 %vm323_vm1, %v8039_v15  ;;  %v8670_v15 = vld [vmem:[%s10231_s2 + $0x210] sm:$0xff] }
 0x122   : > { %6383 = vmatmul.mubr.msk.f32.vlgmr.msra.gmra.mrb[0].mxu0 %vm323_vm1, %v8635_v11  ;;  %6982 = vmatprep.mubr.msk.f32.mxu1 %vm323_vm1, %v8050_v16  ;;  %v8682_v16 = vld [vmem:[%s10231_s2 + $0x218] sm:$0xff] }
 0x123   : > { %2096 = vmatprep.mubr.f32.mxu0 %v7887_v0  ;;  %6433 = vmatpush1.msk.msra.mxu0 %vm372_vm0, %v2413_v63 }
 0x124   : > { %6483 = vmatprep.subr.msk.mxu0 %vm372_vm0, %v2858_v14 }
 0x125   : > { %6983 = vmatmul.mubr.msk.f32.gmra.mrb[38].mxu1 %vm323_vm1, %v8061_v17  ;;  %v8693_v17 = vld [vmem:[%s10231_s2 + $0x220] sm:$0xff] }
 0x126   : > { %6384 = vmatmul.mubr.msk.f32.gmra.mrb[2].mxu0 %vm323_vm1, %v8656_v50  ;;  %6985 = vmatprep.mubr.msk.f32.mxu1 %vm323_vm1, %v8071_v18  ;;  %v8703_v18 = vld [vmem:[%s10231_s2 + $0x228] sm:$0xff] }
 0x127   : > { %2102 = vmatprep.mubr.f32.mxu0 %v7887_v0 }
 0x129   : > { %6986 = vmatmul.mubr.msk.f32.gmra.mrb[40].mxu1 %vm323_vm1, %v8081_v19  ;;  %v8714_v19 = vld [vmem:[%s10231_s2 + $0x230] sm:$0xff] }
 0x12a   : > { %6385 = vmatmul.mubr.msk.f32.gmra.mrb[4].mxu0 %vm323_vm1, %v8670_v15  ;;  %6988 = vmatprep.mubr.msk.f32.mxu1 %vm323_vm1, %v8089_v20  ;;  %v8729_v20 = vld [vmem:[%s10231_s2 + $0x238] sm:$0xff] }
 0x12b   : > { %2108 = vmatprep.mubr.f32.mxu0 %v7887_v0 }
 0x12d   : > { %6989 = vmatmul.mubr.msk.f32.gmra.mrb[42].mxu1 %vm323_vm1, %v8097_v21  ;;  %v8742_v21 = vld [vmem:[%s10231_s2 + $0x240] sm:$0xff] }
 0x12e   : > { %6386 = vmatmul.mubr.msk.f32.gmra.mrb[6].mxu0 %vm323_vm1, %v8682_v16  ;;  %6991 = vmatprep.mubr.msk.f32.mxu1 %vm323_vm1, %v283_v3 }
 0x12f   : > { %2114 = vmatprep.mubr.f32.mxu0 %v7887_v0 }
 0x131   : > { %6992 = vmatmul.mubr.msk.f32.gmra.mrb[44].mxu1 %vm323_vm1, %v284_v25  ;;  %v6429_v25 = vld [vmem:[%s10231_s2 + $0x2e8] sm:$0xff] }
 0x132   : > { %6387 = vmatmul.mubr.msk.f32.gmra.mrb[8].mxu0 %vm323_vm1, %v8693_v17  ;;  %6994 = vmatprep.mubr.msk.f32.mxu1 %vm323_vm1, %v285_v29 }
 0x133   : > { %2120 = vmatprep.mubr.f32.mxu0 %v7887_v0 }
 0x135   : > { %6995 = vmatmul.mubr.msk.f32.gmra.mrb[46].mxu1 %vm323_vm1, %v286_v34  ;;  %v6430_v34 = vld [vmem:[%s10231_s2 + $0x2f0] sm:$0xff] }
 0x136   : > { %6388 = vmatmul.mubr.msk.f32.gmra.mrb[10].mxu0 %vm323_vm1, %v8703_v18  ;;  %6999 = vmatprep.mubr.msk.f32.mxu1 %vm323_vm1, %v8120_v31  ;;  %v8750_v31 = vpop.permute.xlu1 %7854 }
 0x137   : > { %2126 = vmatprep.mubr.f32.mxu0 %v7887_v0  ;;  %v7857_v63 = vunpack.i.h.bf16 %v8750_v31 }
 0x139   : > { %7000 = vmatmul.mubr.msk.f32.vlgmr.msra.gmra.mrb[32].mxu1 %vm323_vm1, %v8135_v37  ;;  %v8756_v37 = vld [vmem:[%s10231_s2 + $0x248] sm:$0xff] }
 0x13a   : > { %7024 = vmatpush3.msk.msra.mxu1 %vm372_vm0, %v8256_v8  ;;  %6389 = vmatmul.mubr.msk.f32.gmra.mrb[12].mxu0 %vm323_vm1, %v8714_v19  ;;  %v8810_v8 = vld [vmem:[%s10231_s2 + $0x268] sm:$0xff]  ;;  %v2855_v53 = vpop.permute.xlu1 %2854 }
 0x13b   : > { %7049 = vmatprep.subr.msk.mxu1 %vm372_vm0, %v8275_v24  ;;  %7002 = vmatprep.mubr.msk.f32.mxu1 %vm323_vm1, %v8154_v44  ;;  %v7856_v44 = vunpack.i.l.bf16 %v8750_v31  ;;  %v2859_v62 = vsel %vm2856_vm6, %v7847_v10, %v2855_v53  ;;  %v6431_v10 = vld [vmem:[%s10231_s2 + $0x2f8] sm:$0xff]  ;;  %v4158_v53 = vld [vmem:[%s10232_s3 + $0x10] sm:$0xff] }
 0x13c   : > { %2132 = vmatprep.mubr.f32.mxu0 %v7887_v0 }
 0x13d   : > { %7003 = vmatmul.mubr.msk.f32.gmra.mrb[34].mxu1 %vm323_vm1, %v8180_v51  ;;  %v3737_v51 = vpop.permute.xlu0 %3736 }
 0x13e   : > { %6390 = vmatmul.mubr.msk.f32.gmra.mrb[14].mxu0 %vm323_vm1, %v8729_v20  ;;  %7005 = vmatprep.mubr.msk.f32.mxu1 %vm323_vm1, %v8201_v56  ;;  %v8769_v56 = vld [vmem:[%s10231_s2 + $0x250] sm:$0xff]  ;;  %v8774_v57 = vsel %vm3744_vm9, %v3737_v51, %v7856_v44  ;;  %v6472_v51 = vld [vmem:[%s10231_s2 + $0x328] sm:$0xff] }
 0x13f   : > { %2138 = vmatprep.mubr.f32.mxu0 %v7887_v0 }
 0x141   : > { %7006 = vmatmul.mubr.msk.f32.gmra.mrb[36].mxu1 %vm323_vm1, %v8223_v61  ;;  %v8786_v61 = vld [vmem:[%s10231_s2 + $0x258] sm:$0xff] }
 0x142   : > { %6391 = vmatmul.mubr.msk.f32.gmra.mrb[16].mxu0 %vm323_vm1, %v8742_v21  ;;  %7008 = vmatprep.mubr.msk.f32.mxu1 %vm323_vm1, %v8249_v4  ;;  %v8798_v4 = vld [vmem:[%s10231_s2 + $0x260] sm:$0xff] }
 0x143   : > { %2144 = vmatprep.mubr.f32.mxu0 %v7887_v0 }
 0x145   : > { %7009 = vmatmul.mubr.msk.f32.gmra.mrb[38].mxu1 %vm323_vm1, %v8272_v22  ;;  %v8822_v22 = vld [vmem:[%s10231_s2 + $0x270] sm:$0xff] }
 0x146   : > { %6392 = vmatmul.mubr.msk.f32.gmra.mrb[18].mxu0 %vm323_vm1, %v8756_v37  ;;  %7011 = vmatprep.mubr.msk.f32.mxu1 %vm323_vm1, %v8291_v26  ;;  %v8837_v26 = vld [vmem:[%s10231_s2 + $0x278] sm:$0xff] }
 0x147   : > { %2150 = vmatprep.mubr.f32.mxu0 %v7887_v0 }
 0x149   : > { %7012 = vmatmul.mubr.msk.f32.gmra.mrb[40].mxu1 %vm323_vm1, %v8307_v28  ;;  %v8851_v28 = vld [vmem:[%s10231_s2 + $0x280] sm:$0xff] }
 0x14a   : > { %6393 = vmatmul.mubr.msk.f32.gmra.mrb[20].mxu0 %vm323_vm1, %v8769_v56  ;;  %7014 = vmatprep.mubr.msk.f32.mxu1 %vm323_vm1, %v8324_v32  ;;  %v10259_v32 = vunpack.i.l.bf16 %v8251_v7 }
 0x14b   : > { %2156 = vmatprep.mubr.f32.mxu0 %v7887_v0 }
 0x14d   : > { %7015 = vmatmul.mubr.msk.f32.gmra.mrb[42].mxu1 %vm323_vm1, %v8346_v38 }
 0x14e   : > { %6394 = vmatmul.mubr.msk.f32.gmra.mrb[22].mxu0 %vm323_vm1, %v8786_v61  ;;  %7017 = vmatprep.mubr.msk.f32.mxu1 %vm323_vm1, %v8365_v46  ;;  %v8883_v46 = vld [vmem:[%s10231_s2 + $0x290] sm:$0xff] }
 0x14f   : > { %2162 = vmatprep.mubr.f32.mxu0 %v7887_v0 }
 0x151   : > { %7018 = vmatmul.mubr.msk.f32.gmra.mrb[44].mxu1 %vm323_vm1, %v8381_v52  ;;  %v8919_v52 = vld [vmem:[%s10231_s2 + $0x2a8] sm:$0xff] }
 0x152   : > { %6395 = vmatmul.mubr.msk.f32.gmra.mrb[24].mxu0 %vm323_vm1, %v8798_v4  ;;  %7020 = vmatprep.mubr.msk.f32.mxu1 %vm323_vm1, %v8395_v60  ;;  %v8931_v60 = vld [vmem:[%s10231_s2 + $0x2b0] sm:$0xff] }
 0x153   : > { %2168 = vmatprep.mubr.f32.mxu0 %v7887_v0 }
 0x155   : > { %7021 = vmatmul.mubr.msk.f32.gmra.mrb[46].mxu1 %vm323_vm1, %v8408_v6  ;;  %v8948_v6 = vld [vmem:[%s10231_s2 + $0x2b8] sm:$0xff] }
 0x156   : > { %6396 = vmatmul.mubr.msk.f32.gmra.mrb[26].mxu0 %vm323_vm1, %v8810_v8  ;;  %7025 = vmatprep.mubr.msk.f32.mxu1 %vm323_vm1, %v8422_v39 }
 0x157   : > { %2174 = vmatprep.mubr.f32.mxu0 %v7887_v0 }
 0x159   : > { %7026 = vmatmul.mubr.msk.f32.vlgmr.msra.gmra.mrb[32].mxu1 %vm323_vm1, %v8442_v43  ;;  %v8981_v43 = vld [vmem:[%s10231_s2 + $0x2c8] sm:$0xff] }
 0x15a   : > { %7050 = vmatpush3.msk.msra.mxu1 %vm372_vm0, %v8275_v24  ;;  %6397 = vmatmul.mubr.msk.f32.gmra.mrb[28].mxu0 %vm323_vm1, %v8822_v22  ;;  %v7852_v24 = vunpack.i.h.bf16 %v8251_v7 }
 0x15b   : > { %7075 = vmatprep.subr.msk.mxu1 %vm372_vm0, %v8359_v41  ;;  %7028 = vmatprep.mubr.msk.f32.mxu1 %vm323_vm1, %v8455_v45 }
 0x15c   : > { %2180 = vmatprep.mubr.f32.mxu0 %v7887_v0  ;;  %v3302_v38 = vsel %vm3300_vm7, %v10259_v32, %v7852_v24  ;;  %v4157_v32 = vld [vmem:[%s10232_s3 + $0x8] sm:$0xff] }
 0x15d   : > { %7029 = vmatmul.mubr.msk.f32.gmra.mrb[34].mxu1 %vm323_vm1, %v8468_v42  ;;  %v8997_v42 = vld [vmem:[%s10231_s2 + $0x2d0] sm:$0xff] }
 0x15e   : > { %6398 = vmatmul.mubr.msk.f32.gmra.mrb[30].mxu0 %vm323_vm1, %v8837_v26  ;;  %7031 = vmatprep.mubr.msk.f32.mxu1 %vm323_vm1, %v8483_v2 }
 0x15f   : > { %2534 = vmatprep.mubr.f32.mxu0 %v7887_v0 }
 0x161   : > { %7032 = vmatmul.mubr.msk.f32.gmra.mrb[36].mxu1 %vm323_vm1, %v8495_v5 }
 0x162   : > { %6434 = vmatmul.mubr.msk.f32.vlgmr.msra.gmra.mrb[0].mxu0 %vm323_vm1, %v8851_v28  ;;  %7034 = vmatprep.mubr.msk.f32.mxu1 %vm323_vm1, %v8507_v48  ;;  %v9013_v48 = vld [vmem:[%s10231_s2 + $0x2d8] sm:$0xff] }
 0x163   : > { %2540 = vmatprep.mubr.f32.mxu0 %v7887_v0  ;;  %6484 = vmatpush1.msk.msra.mxu0 %vm372_vm0, %v8233_v1  ;;  %v8895_v1 = vld [vmem:[%s10231_s2 + $0x298] sm:$0xff] }
 0x164   : > { %6534 = vmatprep.subr.msk.mxu0 %vm372_vm0, %v3302_v38  ;;  %v4156_v38 = vld [vmem:[%s10232_s3] sm:$0xff] }
 0x165   : > { %7035 = vmatmul.mubr.msk.f32.gmra.mrb[38].mxu1 %vm323_vm1, %v8519_v54 }
 0x166   : > { %6435 = vmatmul.mubr.msk.f32.gmra.mrb[2].mxu0 %vm323_vm1, %v8868_v40  ;;  %7037 = vmatprep.mubr.msk.f32.mxu1 %vm323_vm1, %v8530_v58 }
 0x167   : > { %2546 = vmatprep.mubr.f32.mxu0 %v7887_v0 }
 0x169   : > { %7038 = vmatmul.mubr.msk.f32.gmra.mrb[40].mxu1 %vm323_vm1, %v8540_v59  ;;  %v6428_v59 = vld [vmem:[%s10231_s2 + $0x2e0] sm:$0xff] }
 0x16a   : > { %6436 = vmatmul.mubr.msk.f32.gmra.mrb[4].mxu0 %vm323_vm1, %v8883_v46  ;;  %7040 = vmatprep.mubr.msk.f32.mxu1 %vm323_vm1, %v8553_v13 }
 0x16b   : > { %2552 = vmatprep.mubr.f32.mxu0 %v7887_v0 }
 0x16d   : > { %7041 = vmatmul.mubr.msk.f32.gmra.mrb[42].mxu1 %vm323_vm1, %v8568_v27 }
 0x16e   : > { %6437 = vmatmul.mubr.msk.f32.gmra.mrb[6].mxu0 %vm323_vm1, %v8895_v1  ;;  %7043 = vmatprep.mubr.msk.f32.mxu1 %vm323_vm1, %v8582_v30  ;;  %v3299_v30 = vpop.permute.xlu0 %3298 }
 0x16f   : > { %2558 = vmatprep.mubr.f32.mxu0 %v7887_v0 }
 0x171   : > { %7044 = vmatmul.mubr.msk.f32.gmra.mrb[44].mxu1 %vm323_vm1, %v8595_v35 }
 0x172   : > { %6438 = vmatmul.mubr.msk.f32.gmra.mrb[8].mxu0 %vm323_vm1, %v8907_v49  ;;  %7046 = vmatprep.mubr.msk.f32.mxu1 %vm323_vm1, %v8606_v36  ;;  %v3303_v36 = vsel %vm3300_vm7, %v7852_v24, %v3299_v30  ;;  %v6477_v24 = vld [vmem:[%s10231_s2 + $0x350] sm:$0xff]  ;;  %v4165_v30 = vld [vmem:[%s10232_s3 + $0x48] sm:$0xff] }
 0x173   : > { %2564 = vmatprep.mubr.f32.mxu0 %v7887_v0 }
 0x175   : > { %7047 = vmatmul.mubr.msk.f32.gmra.mrb[46].mxu1 %vm323_vm1, %v8621_v9 }
 0x176   : > { %6439 = vmatmul.mubr.msk.f32.gmra.mrb[10].mxu0 %vm323_vm1, %v8919_v52  ;;  %7051 = vmatprep.mubr.msk.f32.mxu1 %vm323_vm1, %v8635_v11 }
 0x177   : > { %2570 = vmatprep.mubr.f32.mxu0 %v7887_v0 }
 0x179   : > { %7052 = vmatmul.mubr.msk.f32.vlgmr.msra.gmra.mrb[32].mxu1 %vm323_vm1, %v8656_v50  ;;  %v3746_v50 = vsel %vm3744_vm9, %v7856_v44, %v7857_v63  ;;  %v6471_v44 = vld [vmem:[%s10231_s2 + $0x320] sm:$0xff] }
 0x17a   : > { %7076 = vmatpush3.msk.msra.mxu1 %vm372_vm0, %v8359_v41  ;;  %6440 = vmatmul.mubr.msk.f32.gmra.mrb[12].mxu0 %vm323_vm1, %v8931_v60 }
 0x17b   : > { %7054 = vmatprep.mubr.msk.f32.mxu1 %vm323_vm1, %v8670_v15  ;;  %2576 = vmatprep.mubr.f32.mxu0 %v7887_v0 }
 0x17c   : > { %7101 = vmatprep.subr.msk.mxu1 %vm372_vm0, %v2859_v62  ;;  %v8951_v55 = vpop.f32.mrb[0].mxu1 }
 0x17d   : > { %7055 = vmatmul.mubr.msk.f32.gmra.mrb[34].mxu1 %vm323_vm1, %v8682_v16  ;;  %v8955_v41 = vpop.f32.mrb[1].mxu1  ;;  %v6468_v16 = vld [vmem:[%s10231_s2 + $0x308] sm:$0xff] }
 0x17e   : > { %6441 = vmatmul.mubr.msk.f32.gmra.mrb[14].mxu0 %vm323_vm1, %v8948_v6  ;;  %7057 = vmatprep.mubr.msk.f32.mxu1 %vm323_vm1, %v8693_v17  ;;  %v10260_v17 = vld [vmem:[#allocation5_spill] sm:$0xff] }
 0x17f   : > { %2582 = vmatprep.mubr.f32.mxu0 %v7887_v0 }
 0x180   : > { %v8967_v33 = vpop.f32.mrb[2].mxu1 }
 0x181   : > { %7058 = vmatmul.mubr.msk.f32.gmra.mrb[36].mxu1 %vm323_vm1, %v8703_v18  ;;  %v8971_v39 = vpop.f32.mrb[3].mxu1 }
 0x182   : > { %6442 = vmatmul.mubr.msk.f32.gmra.mrb[16].mxu0 %vm323_vm1, %v8965_v23  ;;  %7060 = vmatprep.mubr.msk.f32.mxu1 %vm323_vm1, %v8714_v19 }
 0x183   : > { %2588 = vmatprep.mubr.f32.mxu0 %v7887_v0 }
 0x184   : > { %v8983_v45 = vpop.f32.mrb[4].mxu1 }
 0x185   : > { %7061 = vmatmul.mubr.msk.f32.gmra.mrb[38].mxu1 %vm323_vm1, %v8729_v20  ;;  %v8987_v47 = vpop.f32.mrb[5].mxu1  ;;  %v6469_v20 = vld [vmem:[%s10231_s2 + $0x310] sm:$0xff] }
 0x186   : > { %6443 = vmatmul.mubr.msk.f32.gmra.mrb[18].mxu0 %vm323_vm1, %v8981_v43  ;;  %7063 = vmatprep.mubr.msk.f32.mxu1 %vm323_vm1, %v8742_v21 }
 0x187   : > { %2594 = vmatprep.mubr.f32.mxu0 %v7887_v0 }
 0x188   : > { %v8999_v2 = vpop.f32.mrb[6].mxu1 }
 0x189   : > { %7064 = vmatmul.mubr.msk.f32.gmra.mrb[40].mxu1 %vm323_vm1, %v8756_v37  ;;  %v9003_v5 = vpop.f32.mrb[7].mxu1  ;;  %v6470_v37 = vld [vmem:[%s10231_s2 + $0x318] sm:$0xff] }
 0x18a   : > { %6444 = vmatmul.mubr.msk.f32.gmra.mrb[20].mxu0 %vm323_vm1, %v8997_v42  ;;  %7066 = vmatprep.mubr.msk.f32.mxu1 %vm323_vm1, %v8769_v56  ;;  %v3743_v56 = vpop.permute.xlu1 %3742 }
 0x18b   : > { %2600 = vmatprep.mubr.f32.mxu0 %v7887_v0 }
 0x18c   : > { %v9015_v54 = vpop.f32.mrb[8].mxu1 }
 0x18d   : > { %7067 = vmatmul.mubr.msk.f32.gmra.mrb[42].mxu1 %vm323_vm1, %v8786_v61  ;;  %v9019_v58 = vpop.f32.mrb[9].mxu1  ;;  %v6473_v61 = vld [vmem:[%s10231_s2 + $0x330] sm:$0xff] }
 0x18e   : > { %6445 = vmatmul.mubr.msk.f32.gmra.mrb[22].mxu0 %vm323_vm1, %v9013_v48  ;;  %7069 = vmatprep.mubr.msk.f32.mxu1 %vm323_vm1, %v8798_v4  ;;  %v9156_v4 = vsel %vm3744_vm9, %v7857_v63, %v3743_v56  ;;  %v4169_v56 = vld [vmem:[%s10232_s3 + $0x68] sm:$0xff] }
 0x18f   : > { %2606 = vmatprep.mubr.f32.mxu0 %v7887_v0 }
 0x190   : > { %v9029_v3 = vpop.f32.mrb[10].mxu1 }
 0x191   : > { %7070 = vmatmul.mubr.msk.f32.gmra.mrb[44].mxu1 %vm323_vm1, %v8810_v8  ;;  %v9033_v13 = vpop.f32.mrb[11].mxu1  ;;  %v6474_v8 = vld [vmem:[%s10231_s2 + $0x338] sm:$0xff] }
 0x192   : > { %6446 = vmatmul.mubr.msk.f32.gmra.mrb[24].mxu0 %vm323_vm1, %v6428_v59  ;;  %7072 = vmatprep.mubr.msk.f32.mxu1 %vm323_vm1, %v8822_v22  ;;  %v6475_v22 = vld [vmem:[%s10231_s2 + $0x340] sm:$0xff] }
 0x193   : > { %2612 = vmatprep.mubr.f32.mxu0 %v7887_v0 }
 0x194   : > { %v9042_v27 = vpop.f32.mrb[12].mxu1 }
 0x195   : > { %7073 = vmatmul.mubr.msk.f32.gmra.mrb[46].mxu1 %vm323_vm1, %v8837_v26  ;;  %v9046_v29 = vpop.f32.mrb[13].mxu1  ;;  %v6476_v26 = vld [vmem:[%s10231_s2 + $0x348] sm:$0xff] }
 0x196   : > { %6447 = vmatmul.mubr.msk.f32.gmra.mrb[26].mxu0 %vm323_vm1, %v6429_v25  ;;  %7077 = vmatprep.mubr.msk.f32.mxu1 %vm323_vm1, %v8851_v28  ;;  %v6478_v28 = vld [vmem:[%s10231_s2 + $0x358] sm:$0xff] }
 0x197   : > { %2618 = vmatprep.mubr.f32.mxu0 %v7887_v0 }
 0x198   : > { %v9055_v35 = vpop.f32.mrb[14].mxu1 }
 0x199   : > { %7078 = vmatmul.mubr.msk.f32.vlgmr.msra.gmra.mrb[32].mxu1 %vm323_vm1, %v8868_v40  ;;  %v9062_v9 = vpop.f32.mrb[15].mxu1  ;;  %v6479_v40 = vld [vmem:[%s10231_s2 + $0x360] sm:$0xff] }
 0x19a   : > { %7102 = vmatpush3.msk.msra.mxu1 %vm372_vm0, %v2859_v62  ;;  %6448 = vmatmul.mubr.msk.f32.gmra.mrb[28].mxu0 %vm323_vm1, %v6430_v34  ;;  %v4161_v62 = vld [vmem:[%s10232_s3 + $0x28] sm:$0xff] }
 0x19b   : > { %7080 = vmatprep.mubr.msk.f32.mxu1 %vm323_vm1, %v8883_v46  ;;  %2624 = vmatprep.mubr.f32.mxu0 %v7887_v0  ;;  %v7896_v46 = vmov 0  }
 0x19c   : > { %7127 = vmatprep.subr.msk.mxu1 %vm372_vm0, %v3303_v36  ;;  %v9073_v7 = vpop.f32.mrb[16].mxu1  ;;  %7859 = vset.pattern.permute.xlu1 %v7896_v46 }
 0x19d   : > { %7081 = vmatmul.mubr.msk.f32.gmra.mrb[34].mxu1 %vm323_vm1, %v8895_v1  ;;  %v9077_v11 = vpop.f32.mrb[17].mxu1  ;;  %7858 = vset.pattern.permute.xlu0 %v7896_v46  ;;  %v6480_v1 = vld [vmem:[%s10231_s2 + $0x368] sm:$0xff] }
 0x19e   : > { %6449 = vmatmul.mubr.msk.f32.gmra.mrb[30].mxu0 %vm323_vm1, %v6431_v10  ;;  %7083 = vmatprep.mubr.msk.f32.mxu1 %vm323_vm1, %v8907_v49  ;;  %v4159_v49 = vld [vmem:[%s10232_s3 + $0x18] sm:$0xff]  ;;  %v6531_v46 = vld [vmem:[%s10231_s2 + $0x3e8] sm:$0xff] }
 0x19f   : > { %2978 = vmatprep.mubr.f32.mxu0 %v7887_v0  ;;  %4179 = vperm.xlu1 %7859, %v4157_v32  }
 0x1a0   : > { %v9087_v14 = vpop.f32.mrb[18].mxu1  ;;  %4174 = vperm.xlu0 %7858, %v4156_v38   ;;  %v6529_v38 = vld [vmem:[%s10231_s2 + $0x3d8] sm:$0xff] }
 0x1a1   : > { %7084 = vmatmul.mubr.msk.f32.gmra.mrb[36].mxu1 %vm323_vm1, %v8919_v52  ;;  %v9094_v15 = vpop.f32.mrb[19].mxu1  ;;  %v6481_v52 = vld [vmem:[%s10231_s2 + $0x370] sm:$0xff] }
 0x1a2   : > { %6485 = vmatmul.mubr.msk.f32.vlgmr.msra.gmra.mrb[0].mxu0 %vm323_vm1, %v6467_v12  ;;  %7086 = vmatprep.mubr.msk.f32.mxu1 %vm323_vm1, %v8931_v60  ;;  %v6482_v60 = vld [vmem:[%s10231_s2 + $0x378] sm:$0xff] }
 0x1a3   : > { %2984 = vmatprep.mubr.f32.mxu0 %v7887_v0  ;;  %6535 = vmatpush1.msk.msra.mxu0 %vm372_vm0, %v10260_v17  ;;  %v6524_v17 = vld [vmem:[%s10231_s2 + $0x3b0] sm:$0xff] }
 0x1a4   : > { %6585 = vmatprep.subr.msk.mxu0 %vm372_vm0, %v3746_v50  ;;  %v9106_v18 = vpop.f32.mrb[20].mxu1  ;;  %4184 = vperm.xlu1 %7859, %v4158_v53   ;;  %v4167_v50 = vld [vmem:[%s10232_s3 + $0x58] sm:$0xff]  ;;  %v6570_v53 = vld [vmem:[%s10231_s2 + $0x408] sm:$0xff] }
 0x1a5   : > { %7087 = vmatmul.mubr.msk.f32.gmra.mrb[38].mxu1 %vm323_vm1, %v8948_v6  ;;  %v9110_v19 = vpop.f32.mrb[21].mxu1  ;;  %4189 = vperm.xlu0 %7858, %v4159_v49   ;;  %v6518_v6 = vld [vmem:[%s10231_s2 + $0x380] sm:$0xff]  ;;  %v6533_v49 = vld [vmem:[%s10231_s2 + $0x3f8] sm:$0xff] }
 0x1a6   : > { %6486 = vmatmul.mubr.msk.f32.gmra.mrb[2].mxu0 %vm323_vm1, %v6468_v16  ;;  %7089 = vmatprep.mubr.msk.f32.mxu1 %vm323_vm1, %v8965_v23  ;;  %v4160_v23 = vld [vmem:[%s10232_s3 + $0x20] sm:$0xff] }
 0x1a7   : > { %2990 = vmatprep.mubr.f32.mxu0 %v7887_v0 }
 0x1a8   : > { %v9119_v21 = vpop.f32.mrb[22].mxu1  ;;  %4194 = vperm.xlu1 %7859, %v4160_v23   ;;  %v6574_v23 = vld [vmem:[%s10231_s2 + $0x428] sm:$0xff] }
 0x1a9   : > { %7090 = vmatmul.mubr.msk.f32.gmra.mrb[40].mxu1 %vm323_vm1, %v8981_v43  ;;  %v9123_v31 = vpop.f32.mrb[23].mxu1  ;;  %4199 = vperm.xlu0 %7858, %v4161_v62   ;;  %v6519_v43 = vld [vmem:[%s10231_s2 + $0x388] sm:$0xff]  ;;  %v6572_v62 = vld [vmem:[%s10231_s2 + $0x418] sm:$0xff] }
 0x1aa   : > { %6487 = vmatmul.mubr.msk.f32.gmra.mrb[4].mxu0 %vm323_vm1, %v6469_v20  ;;  %7092 = vmatprep.mubr.msk.f32.mxu1 %vm323_vm1, %v8997_v42  ;;  %v4163_v42 = vld [vmem:[%s10232_s3 + $0x38] sm:$0xff] }
 0x1ab   : > { %2996 = vmatprep.mubr.f32.mxu0 %v7887_v0 }
 0x1ad   : > { %7093 = vmatmul.mubr.msk.f32.gmra.mrb[42].mxu1 %vm323_vm1, %v9013_v48  ;;  %v6520_v48 = vld [vmem:[%s10231_s2 + $0x390] sm:$0xff]  ;;  %4209 = vperm.xlu0 %7858, %v4163_v42   ;;  %v6576_v42 = vld [vmem:[%s10231_s2 + $0x438] sm:$0xff] }
 0x1ae   : > { %6488 = vmatmul.mubr.msk.f32.gmra.mrb[6].mxu0 %vm323_vm1, %v6470_v37  ;;  %7095 = vmatprep.mubr.msk.f32.mxu1 %vm323_vm1, %v6428_v59  ;;  %v4162_v59 = vld [vmem:[%s10232_s3 + $0x30] sm:$0xff] }
 0x1af   : > { %3002 = vmatprep.mubr.f32.mxu0 %v7887_v0  ;;  %4204 = vperm.xlu1 %7859, %v4162_v59   ;;  %v6578_v59 = vld [vmem:[%s10231_s2 + $0x448] sm:$0xff] }
 0x1b1   : > { %7096 = vmatmul.mubr.msk.f32.gmra.mrb[44].mxu1 %vm323_vm1, %v6429_v25  ;;  %v6521_v25 = vld [vmem:[%s10231_s2 + $0x398] sm:$0xff]  ;;  %4219 = vperm.xlu0 %7858, %v4165_v30  }
 0x1b2   : > { %6489 = vmatmul.mubr.msk.f32.gmra.mrb[8].mxu0 %vm323_vm1, %v6471_v44  ;;  %7098 = vmatprep.mubr.msk.f32.mxu1 %vm323_vm1, %v6430_v34  ;;  %v6522_v34 = vld [vmem:[%s10231_s2 + $0x3a0] sm:$0xff]  ;;  %v6580_v30 = vld [vmem:[%s10231_s2 + $0x458] sm:$0xff] }
 0x1b3   : > { %3008 = vmatprep.mubr.f32.mxu0 %v7887_v0 }
 0x1b5   : > { %7099 = vmatmul.mubr.msk.f32.gmra.mrb[46].mxu1 %vm323_vm1, %v6431_v10  ;;  %4229 = vperm.xlu0 %7858, %v4167_v50   ;;  %v9445_v50 = vld [vmem:[%s10231_s2 + $0x478] sm:$0xff] }
 0x1b6   : > { %6490 = vmatmul.mubr.msk.f32.gmra.mrb[10].mxu0 %vm323_vm1, %v6472_v51  ;;  %7103 = vmatprep.mubr.msk.f32.mxu1 %vm323_vm1, %v6467_v12  ;;  %v6523_v12 = vld [vmem:[%s10231_s2 + $0x3a8] sm:$0xff] }
 0x1b7   : > { %3014 = vmatprep.mubr.f32.mxu0 %v7887_v0 }
 0x1b9   : > { %7104 = vmatmul.mubr.msk.f32.vlgmr.msra.gmra.mrb[32].mxu1 %vm323_vm1, %v6468_v16  ;;  %v4166_v16 = vld [vmem:[%s10232_s3 + $0x50] sm:$0xff]  ;;  %4239 = vperm.xlu0 %7858, %v4169_v56  }
 0x1ba   : > { %6491 = vmatmul.mubr.msk.f32.gmra.mrb[12].mxu0 %vm323_vm1, %v6473_v61  ;;  %7106 = vmatprep.mubr.msk.f32.mxu1 %vm323_vm1, %v6469_v20 }
 0x1bb   : > { %3020 = vmatprep.mubr.f32.mxu0 %v7887_v0  ;;  %7128 = vmatpush3.msk.msra.mxu1 %vm372_vm0, %v3303_v36  ;;  %v4164_v36 = vld [vmem:[%s10232_s3 + $0x40] sm:$0xff] }
 0x1bc   : > { %7153 = vmatprep.subr.msk.mxu1 %vm372_vm0, %v9156_v4  ;;  %4214 = vperm.xlu1 %7859, %v4164_v36   ;;  %v6582_v36 = vld [vmem:[%s10231_s2 + $0x468] sm:$0xff] }
 0x1bd   : > { %7107 = vmatmul.mubr.msk.f32.gmra.mrb[34].mxu1 %vm323_vm1, %v6470_v37 }
 0x1be   : > { %6492 = vmatmul.mubr.msk.f32.gmra.mrb[14].mxu0 %vm323_vm1, %v6474_v8  ;;  %7109 = vmatprep.mubr.msk.f32.mxu1 %vm323_vm1, %v6471_v44  ;;  %v4168_v44 = vld [vmem:[%s10232_s3 + $0x60] sm:$0xff] }
 0x1bf   : > { %3026 = vmatprep.mubr.f32.mxu0 %v7887_v0 }
 0x1c0   : > { %4224 = vperm.xlu1 %7859, %v4166_v16   ;;  %v4348_v16 = vlaneseq }
 0x1c1   : > { %7110 = vmatmul.mubr.msk.f32.gmra.mrb[36].mxu1 %vm323_vm1, %v6472_v51  ;;  %v6525_v51 = vld [vmem:[%s10231_s2 + $0x3b8] sm:$0xff] }
 0x1c2   : > { %6493 = vmatmul.mubr.msk.f32.gmra.mrb[16].mxu0 %vm323_vm1, %v6475_v22  ;;  %7112 = vmatprep.mubr.msk.f32.mxu1 %vm323_vm1, %v6473_v61  ;;  %v6526_v61 = vld [vmem:[%s10231_s2 + $0x3c0] sm:$0xff] }
 0x1c3   : > { %3032 = vmatprep.mubr.f32.mxu0 %v7887_v0 }
 0x1c4   : > { %4234 = vperm.xlu1 %7859, %v4168_v44  }
 0x1c5   : > { %7113 = vmatmul.mubr.msk.f32.gmra.mrb[38].mxu1 %vm323_vm1, %v6474_v8 }
 0x1c6   : > { %6494 = vmatmul.mubr.msk.f32.gmra.mrb[18].mxu0 %vm323_vm1, %v6476_v26  ;;  %7115 = vmatprep.mubr.msk.f32.mxu1 %vm323_vm1, %v6475_v22  ;;  %v4170_v22 = vld [vmem:[%s10232_s3 + $0x70] sm:$0xff] }
 0x1c7   : > { %3038 = vmatprep.mubr.f32.mxu0 %v7887_v0 }
 0x1c8   : > { %4244 = vperm.xlu1 %7859, %v4170_v22  }
 0x1c9   : > { %7116 = vmatmul.mubr.msk.f32.gmra.mrb[40].mxu1 %vm323_vm1, %v6476_v26  ;;  %v4171_v26 = vld [vmem:[%s10232_s3 + $0x78] sm:$0xff] }
 0x1ca   : > { %6495 = vmatmul.mubr.msk.f32.gmra.mrb[20].mxu0 %vm323_vm1, %v6477_v24  ;;  %7118 = vmatprep.mubr.msk.f32.mxu1 %vm323_vm1, %v6477_v24  ;;  %v6528_v24 = vld [vmem:[%s10231_s2 + $0x3d0] sm:$0xff] }
 0x1cb   : > { %3044 = vmatprep.mubr.f32.mxu0 %v7887_v0  ;;  %4249 = vperm.xlu0 %7858, %v4171_v26  }
 0x1cd   : > { %7119 = vmatmul.mubr.msk.f32.gmra.mrb[42].mxu1 %vm323_vm1, %v6478_v28 }
 0x1ce   : > { %6496 = vmatmul.mubr.msk.f32.gmra.mrb[22].mxu0 %vm323_vm1, %v6478_v28  ;;  %7121 = vmatprep.mubr.msk.f32.mxu1 %vm323_vm1, %v6479_v40 }
 0x1cf   : > { %3050 = vmatprep.mubr.f32.mxu0 %v7887_v0 }
 0x1d1   : > { %7122 = vmatmul.mubr.msk.f32.gmra.mrb[44].mxu1 %vm323_vm1, %v6480_v1 }
 0x1d2   : > { %6497 = vmatmul.mubr.msk.f32.gmra.mrb[24].mxu0 %vm323_vm1, %v6479_v40  ;;  %7124 = vmatprep.mubr.msk.f32.mxu1 %vm323_vm1, %v6481_v52  ;;  %v6530_v40 = vld [vmem:[%s10231_s2 + $0x3e0] sm:$0xff] }
 0x1d3   : > { %3056 = vmatprep.mubr.f32.mxu0 %v7887_v0 }
 0x1d5   : > { %7125 = vmatmul.mubr.msk.f32.gmra.mrb[46].mxu1 %vm323_vm1, %v6482_v60 }
 0x1d6   : > { %6498 = vmatmul.mubr.msk.f32.gmra.mrb[26].mxu0 %vm323_vm1, %v6480_v1  ;;  %7129 = vmatprep.mubr.msk.f32.mxu1 %vm323_vm1, %v6518_v6  ;;  %v6532_v1 = vld [vmem:[%s10231_s2 + $0x3f0] sm:$0xff] }
 0x1d7   : > { %3062 = vmatprep.mubr.f32.mxu0 %v7887_v0 }
 0x1d9   : > { %7130 = vmatmul.mubr.msk.f32.vlgmr.msra.gmra.mrb[32].mxu1 %vm323_vm1, %v6519_v43 }
 0x1da   : > { %6499 = vmatmul.mubr.msk.f32.gmra.mrb[28].mxu0 %vm323_vm1, %v6481_v52  ;;  %7132 = vmatprep.mubr.msk.f32.mxu1 %vm323_vm1, %v6520_v48  ;;  %v6569_v52 = vld [vmem:[%s10231_s2 + $0x400] sm:$0xff] }
 0x1db   : > { %3068 = vmatprep.mubr.f32.mxu0 %v7887_v0  ;;  %7154 = vmatpush3.msk.msra.mxu1 %vm372_vm0, %v9156_v4 }
 0x1dc   : > { %v9270_v10 = vpop.f32.mrb[24].mxu1 }
 0x1dd   : > { %7133 = vmatmul.mubr.msk.f32.gmra.mrb[34].mxu1 %vm323_vm1, %v6521_v25  ;;  %v9273_v63 = vpop.f32.mrb[25].mxu1 }
 0x1de   : > { %6500 = vmatmul.mubr.msk.f32.gmra.mrb[30].mxu0 %vm323_vm1, %v6482_v60  ;;  %7135 = vmatprep.mubr.msk.f32.mxu1 %vm323_vm1, %v6522_v34  ;;  %v6571_v60 = vld [vmem:[%s10231_s2 + $0x410] sm:$0xff] }
 0x1df   : > { %3422 = vmatprep.mubr.f32.mxu0 %v7887_v0 }
 0x1e0   : > { %v9290_v20 = vpop.f32.mrb[26].mxu1 }
 0x1e1   : > { %7136 = vmatmul.mubr.msk.f32.gmra.mrb[36].mxu1 %vm323_vm1, %v6523_v12  ;;  %v9293_v37 = vpop.f32.mrb[27].mxu1 }
 0x1e2   : > { %6536 = vmatmul.mubr.msk.f32.vlgmr.msra.gmra.mrb[0].mxu0 %vm323_vm1, %v6518_v6  ;;  %7138 = vmatprep.mubr.msk.f32.mxu1 %vm323_vm1, %v6524_v17  ;;  %v6573_v6 = vld [vmem:[%s10231_s2 + $0x420] sm:$0xff] }
 0x1e3   : > { %3428 = vmatprep.mubr.f32.mxu0 %v7887_v0  ;;  %6586 = vmatpush1.msk.msra.mxu0 %vm372_vm0, %v8774_v57  ;;  %v6527_v57 = vld [vmem:[%s10231_s2 + $0x3c8] sm:$0xff] }
 0x1e4   : > { %v9312_v4 = vpop.f32.mrb[28].mxu1 }
 0x1e5   : > { %7139 = vmatmul.mubr.msk.f32.gmra.mrb[38].mxu1 %vm323_vm1, %v6525_v51  ;;  %v9315_v8 = vpop.f32.mrb[29].mxu1 }
 0x1e6   : > { %6537 = vmatmul.mubr.msk.f32.gmra.mrb[2].mxu0 %vm323_vm1, %v6519_v43  ;;  %7141 = vmatprep.mubr.msk.f32.mxu1 %vm323_vm1, %v6526_v61  ;;  %v6575_v43 = vld [vmem:[%s10231_s2 + $0x430] sm:$0xff] }
 0x1e7   : > { %3434 = vmatprep.mubr.f32.mxu0 %v7887_v0 }
 0x1e8   : > { %v9332_v28 = vpop.f32.mrb[30].mxu1 }
 0x1e9   : > { %7142 = vmatmul.mubr.msk.f32.gmra.mrb[40].mxu1 %vm323_vm1, %v6527_v57  ;;  %v9335_v32 = vpop.f32.mrb[31].mxu1 }
 0x1ea   : > { %6538 = vmatmul.mubr.msk.f32.gmra.mrb[4].mxu0 %vm323_vm1, %v6520_v48  ;;  %7144 = vmatprep.mubr.msk.f32.mxu1 %vm323_vm1, %v6528_v24  ;;  %v6577_v48 = vld [vmem:[%s10231_s2 + $0x440] sm:$0xff] }
 0x1eb   : > { %3440 = vmatprep.mubr.f32.mxu0 %v7887_v0 }
 0x1ed   : > { %7145 = vmatmul.mubr.msk.f32.gmra.mrb[42].mxu1 %vm323_vm1, %v6529_v38 }
 0x1ee   : > { %6539 = vmatmul.mubr.msk.f32.gmra.mrb[6].mxu0 %vm323_vm1, %v6521_v25  ;;  %7147 = vmatprep.mubr.msk.f32.mxu1 %vm323_vm1, %v6530_v40  ;;  %v6579_v25 = vld [vmem:[%s10231_s2 + $0x450] sm:$0xff] }
 0x1ef   : > { %3446 = vmatprep.mubr.f32.mxu0 %v7887_v0 }
 0x1f1   : > { %7148 = vmatmul.mubr.msk.f32.gmra.mrb[44].mxu1 %vm323_vm1, %v6531_v46 }
 0x1f2   : > { %6540 = vmatmul.mubr.msk.f32.gmra.mrb[8].mxu0 %vm323_vm1, %v6522_v34  ;;  %7150 = vmatprep.mubr.msk.f32.mxu1 %vm323_vm1, %v6532_v1  ;;  %v6581_v34 = vld [vmem:[%s10231_s2 + $0x460] sm:$0xff] }
 0x1f3   : > { %3452 = vmatprep.mubr.f32.mxu0 %v7887_v0 }
 0x1f5   : > { %7151 = vmatmul.mubr.msk.f32.gmra.mrb[46].mxu1 %vm323_vm1, %v6533_v49 }
 0x1f6   : > { %6541 = vmatmul.mubr.msk.f32.gmra.mrb[10].mxu0 %vm323_vm1, %v6523_v12  ;;  %7155 = vmatprep.mubr.msk.f32.mxu1 %vm323_vm1, %v6569_v52  ;;  %v9436_v12 = vld [vmem:[%s10231_s2 + $0x470] sm:$0xff] }
 0x1f7   : > { %3458 = vmatprep.mubr.f32.mxu0 %v7887_v0 }
 0x1f9   : > { %7156 = vmatmul.mubr.msk.f32.vlgmr.msra.gmra.mrb[32].mxu1 %vm323_vm1, %v6570_v53 }
 0x1fa   : > { %6542 = vmatmul.mubr.msk.f32.gmra.mrb[12].mxu0 %vm323_vm1, %v6524_v17  ;;  %7158 = vmatprep.mubr.msk.f32.mxu1 %vm323_vm1, %v6571_v60  ;;  %v9478_v17 = vshrl.u32 %v4348_v16, 7 }
 0x1fb   : > { %3464 = vmatprep.mubr.f32.mxu0 %v7887_v0 }
 0x1fc   : > { %10261 = vst [vmem:[#allocation5_spill] sm:$0xff] %v9478_v17  ;;  %v4365_v44 = vadd.s32 128, %v9478_v17  ;;  %v9485_v56 = vadd.s32 8, %v9478_v17 }
 0x1fd   : > { %7159 = vmatmul.mubr.msk.f32.gmra.mrb[34].mxu1 %vm323_vm1, %v6572_v62 }
 0x1fe   : > { %6543 = vmatmul.mubr.msk.f32.gmra.mrb[14].mxu0 %vm323_vm1, %v6525_v51  ;;  %7161 = vmatprep.mubr.msk.f32.mxu1 %vm323_vm1, %v6573_v6  ;;  %v4366_v51 = vadd.s32 136, %v9478_v17  ;;  %10262 = vst [vmem:[#allocation6_spill] sm:$0xff] %v9485_v56 }
 0x1ff   : > { %3470 = vmatprep.mubr.f32.mxu0 %v7887_v0 }
 0x201   : > { %7162 = vmatmul.mubr.msk.f32.gmra.mrb[36].mxu1 %vm323_vm1, %v6574_v23 }
 0x202   : > { %6544 = vmatmul.mubr.msk.f32.gmra.mrb[16].mxu0 %vm323_vm1, %v6526_v61  ;;  %7164 = vmatprep.mubr.msk.f32.mxu1 %vm323_vm1, %v6575_v43  ;;  %v9487_v61 = vmul.u32.u64.low 3817748708, %v4365_v44  ;;  %v9488_v22 = vmul.u32.u64.high 3817748708, %v4365_v44, %v9487_v61 }
 0x203   : > { %3476 = vmatprep.mubr.f32.mxu0 %v7887_v0  ;;  %v9524_v61 = vadd.s32 160, %v9478_v17 }
 0x205   : > { %7165 = vmatmul.mubr.msk.f32.gmra.mrb[38].mxu1 %vm323_vm1, %v6576_v42 }
 0x206   : > { %6545 = vmatmul.mubr.msk.f32.gmra.mrb[18].mxu0 %vm323_vm1, %v6527_v57  ;;  %7167 = vmatprep.mubr.msk.f32.mxu1 %vm323_vm1, %v6577_v48  ;;  %v9490_v57 = vmul.u32.u64.low 3817748708, %v4366_v51  ;;  %v9491_v26 = vmul.u32.u64.high 3817748708, %v4366_v51, %v9490_v57 }
 0x207   : > { %3482 = vmatprep.mubr.f32.mxu0 %v7887_v0 }
 0x209   : > { %7168 = vmatmul.mubr.msk.f32.gmra.mrb[40].mxu1 %vm323_vm1, %v6578_v59 }
 0x20a   : > { %6546 = vmatmul.mubr.msk.f32.gmra.mrb[20].mxu0 %vm323_vm1, %v6528_v24  ;;  %7170 = vmatprep.mubr.msk.f32.mxu1 %vm323_vm1, %v6579_v25 }
 0x20b   : > { %3488 = vmatprep.mubr.f32.mxu0 %v7887_v0 }
 0x20d   : > { %7171 = vmatmul.mubr.msk.f32.gmra.mrb[42].mxu1 %vm323_vm1, %v6580_v30 }
 0x20e   : > { %6547 = vmatmul.mubr.msk.f32.gmra.mrb[22].mxu0 %vm323_vm1, %v6529_v38  ;;  %7173 = vmatprep.mubr.msk.f32.mxu1 %vm323_vm1, %v6581_v34  ;;  %v9494_v24 = vmul.u32.u64.low 3817748708, %v9478_v17  ;;  %v9495_v38 = vmul.u32.u64.high 3817748708, %v9478_v17, %v9494_v24 }
 0x20f   : > { %3494 = vmatprep.mubr.f32.mxu0 %v7887_v0  ;;  %v9533_v24 = vadd.s32 40, %v9478_v17 }
 0x211   : > { %7174 = vmatmul.mubr.msk.f32.gmra.mrb[44].mxu1 %vm323_vm1, %v6582_v36  ;;  %10266 = vst [vmem:[#allocation10_spill] sm:$0xff] %v9533_v24 }
 0x212   : > { %6548 = vmatmul.mubr.msk.f32.gmra.mrb[24].mxu0 %vm323_vm1, %v6530_v40  ;;  %7176 = vmatprep.mubr.msk.f32.mxu1 %vm323_vm1, %v9436_v12 }
 0x213   : > { %3500 = vmatprep.mubr.f32.mxu0 %v7887_v0 }
 0x215   : > { %7177 = vmatmul.mubr.msk.f32.gmra.mrb[46].mxu1 %vm323_vm1, %v9445_v50 }
 0x216   : > { %6549 = vmatmul.mubr.msk.f32.gmra.mrb[26].mxu0 %vm323_vm1, %v6531_v46  ;;  %v9498_v40 = vmul.u32.u64.low 3817748708, %v9485_v56  ;;  %v9499_v46 = vmul.u32.u64.high 3817748708, %v9485_v56, %v9498_v40 }
 0x217   : > { %3506 = vmatprep.mubr.f32.mxu0 %v7887_v0 }
 0x21a   : > { %6550 = vmatmul.mubr.msk.f32.gmra.mrb[28].mxu0 %vm323_vm1, %v6532_v1  ;;  %v4367_v1 = vadd.s32 144, %v9478_v17 }
 0x21b   : > { %3512 = vmatprep.mubr.f32.mxu0 %v7887_v0 }
 0x21e   : > { %6551 = vmatmul.mubr.msk.f32.gmra.mrb[30].mxu0 %vm323_vm1, %v6533_v49  ;;  %v4368_v49 = vadd.s32 152, %v9478_v17 }
 0x21f   : > { %3866 = vmatprep.mubr.f32.mxu0 %v7887_v0 }
 0x222   : > { %6587 = vmatmul.mubr.msk.f32.vlgmr.msra.gmra.mrb[0].mxu0 %vm323_vm1, %v6569_v52  ;;  %v4579_v52 = vshrl.u32 %v9488_v22, 4  ;;  %v9527_v22 = vadd.s32 168, %v9478_v17 }
 0x223   : > { %3872 = vmatprep.mubr.f32.mxu0 %v7887_v0 }
 0x226   : > { %6588 = vmatmul.mubr.msk.f32.gmra.mrb[2].mxu0 %vm323_vm1, %v6570_v53  ;;  %v4590_v53 = vshrl.u32 %v9491_v26, 4  ;;  %v9530_v26 = vadd.s32 32, %v9478_v17 }
 0x227   : > { %3878 = vmatprep.mubr.f32.mxu0 %v7887_v0 }
 0x228   : > { %10265 = vst [vmem:[#allocation9_spill] sm:$0xff] %v9530_v26 }
 0x22a   : > { %6589 = vmatmul.mubr.msk.f32.gmra.mrb[4].mxu0 %vm323_vm1, %v6571_v60 }
 0x22b   : > { %3884 = vmatprep.mubr.f32.mxu0 %v7887_v0 }
 0x22e   : > { %6590 = vmatmul.mubr.msk.f32.gmra.mrb[6].mxu0 %vm323_vm1, %v6572_v62  ;;  %v9507_v60 = vmul.u32.u64.low 3817748708, %v4367_v1  ;;  %v9508_v62 = vmul.u32.u64.high 3817748708, %v4367_v1, %v9507_v60 }
 0x22f   : > { %3890 = vmatprep.mubr.f32.mxu0 %v7887_v0 }
 0x232   : > { %6591 = vmatmul.mubr.msk.f32.gmra.mrb[8].mxu0 %vm323_vm1, %v6573_v6  ;;  %v4403_v6 = vshrl.u32 %v9495_v38, 4 }
 0x233   : > { %3896 = vmatprep.mubr.f32.mxu0 %v7887_v0 }
 0x236   : > { %6592 = vmatmul.mubr.msk.f32.gmra.mrb[10].mxu0 %vm323_vm1, %v6574_v23  ;;  %v4414_v23 = vshrl.u32 %v9499_v46, 4  ;;  %v4601_v46 = vshrl.u32 %v9508_v62, 4 }
 0x237   : > { %3902 = vmatprep.mubr.f32.mxu0 %v7887_v0 }
 0x238   : > { %v4415_v16 = vmul.u32 18, %v4414_v23  ;;  %v4602_v23 = vmul.u32 18, %v4601_v46 }
 0x23a   : > { %6593 = vmatmul.mubr.msk.f32.gmra.mrb[12].mxu0 %vm323_vm1, %v6575_v43  ;;  %v4416_v40 = vsub.s32 %v9485_v56, %v4415_v16 }
 0x23b   : > { %3908 = vmatprep.mubr.f32.mxu0 %v7887_v0 }
 0x23c   : > { %vm4926_vm0 = vcmp.ne.s32.totalorder %v4416_v40, 0  ;;  %vm4974_vm4 = vcmp.lt.s32.totalorder %v4416_v40, 0  ;;  %v5070_v62 = vadd.s32 18, %v4416_v40 }
 0x23d   : > { %vm5022_vm8 = vmand %vm4974_vm4, %vm4926_vm0 }
 0x23e   : > { %6594 = vmatmul.mubr.msk.f32.gmra.mrb[14].mxu0 %vm323_vm1, %v6576_v42  ;;  %v9512_v43 = vmul.u32.u64.low 3817748708, %v4368_v49  ;;  %v9513_v42 = vmul.u32.u64.high 3817748708, %v4368_v49, %v9512_v43 }
 0x23f   : > { %3914 = vmatprep.mubr.f32.mxu0 %v7887_v0 }
 0x242   : > { %6595 = vmatmul.mubr.msk.f32.gmra.mrb[16].mxu0 %vm323_vm1, %v6577_v48  ;;  %v4580_v48 = vmul.u32 18, %v4579_v52  ;;  %v4612_v52 = vshrl.u32 %v9513_v42, 4  ;;  %v5118_v42 = vsel %vm5022_vm8, %v5070_v62, %v4416_v40  ;;  %v9573_v62 = vadd.s32 184, %v9478_v17 }
 0x243   : > { %3920 = vmatprep.mubr.f32.mxu0 %v7887_v0  ;;  %v9564_v40 = vmul.u32.u64.low 3817748708, %v9524_v61  ;;  %v9565_v46 = vmul.u32.u64.high 3817748708, %v9524_v61, %v9564_v40 }
 0x244   : > { %v4581_v57 = vsub.s32 %v4365_v44, %v4580_v48  ;;  %v4603_v48 = vsub.s32 %v4367_v1, %v4602_v23 }
 0x246   : > { %6596 = vmatmul.mubr.msk.f32.gmra.mrb[18].mxu0 %vm323_vm1, %v6578_v59  ;;  %v4591_v59 = vmul.u32 18, %v4590_v53  ;;  %vm4941_vm10 = vcmp.ne.s32.totalorder %v4581_v57, 0  ;;  %vm4989_vm12 = vcmp.lt.s32.totalorder %v4581_v57, 0 }
 0x247   : > { %3926 = vmatprep.mubr.f32.mxu0 %v7887_v0  ;;  %vm9542_vm14 = vmand %vm4989_vm12, %vm4941_vm10  ;;  %vm4943_vm12 = vcmp.ne.s32.totalorder %v4603_v48, 0 }
 0x24a   : > { %6597 = vmatmul.mubr.msk.f32.gmra.mrb[20].mxu0 %vm323_vm1, %v6579_v25  ;;  %v9517_v25 = vadd.s32 16, %v9478_v17 }
 0x24b   : > { %3932 = vmatprep.mubr.f32.mxu0 %v7887_v0 }
 0x24c   : > { %10263 = vst [vmem:[#allocation7_spill] sm:$0xff] %v9517_v25 }
 0x24e   : > { %6598 = vmatmul.mubr.msk.f32.gmra.mrb[22].mxu0 %vm323_vm1, %v6580_v30  ;;  %v9520_v30 = vadd.s32 24, %v9478_v17 }
 0x24f   : > { %3938 = vmatprep.mubr.f32.mxu0 %v7887_v0 }
 0x250   : > { %10264 = vst [vmem:[#allocation8_spill] sm:$0xff] %v9520_v30 }
 0x252   : > { %6599 = vmatmul.mubr.msk.f32.gmra.mrb[24].mxu0 %vm323_vm1, %v6581_v34  ;;  %v4404_v34 = vmul.u32 18, %v4403_v6 }
 0x253   : > { %3944 = vmatprep.mubr.f32.mxu0 %v7887_v0 }
 0x254   : > { %v4405_v38 = vsub.s32 %v9478_v17, %v4404_v34  ;;  %v10239_v34 = vmov 0.00390625|0.00390625  }
 0x256   : > { %6600 = vmatmul.mubr.msk.f32.gmra.mrb[26].mxu0 %vm323_vm1, %v6582_v36  ;;  %v4592_v36 = vsub.s32 %v4366_v51, %v4591_v59  ;;  %v5085_v51 = vadd.s32 18, %v4581_v57  ;;  %vm4925_vm15 = vcmp.ne.s32.totalorder %v4405_v38, 0  ;;  %vm4973_vm3 = vcmp.lt.s32.totalorder %v4405_v38, 0 }
 0x257   : > { %3950 = vmatprep.mubr.f32.mxu0 %v7887_v0  ;;  %v5069_v60 = vadd.s32 18, %v4405_v38  ;;  %vm5021_vm5 = vmand %vm4973_vm3, %vm4925_vm15 }
 0x258   : > { %vm4942_vm11 = vcmp.ne.s32.totalorder %v4592_v36, 0  ;;  %vm4990_vm13 = vcmp.lt.s32.totalorder %v4592_v36, 0  ;;  %v5086_v53 = vadd.s32 18, %v4592_v36 }
 0x259   : > { %vm5038_vm2 = vmand %vm4990_vm13, %vm4942_vm11  ;;  %v5117_v43 = vsel %vm5021_vm5, %v5069_v60, %v4405_v38  ;;  %vm5166_vm11 = vcmp.lt.s32.totalorder %v5118_v42, 16 }
 0x25a   : > { %6601 = vmatmul.mubr.msk.f32.gmra.mrb[28].mxu0 %vm323_vm1, %v9436_v12  ;;  %v5133_v12 = vsel %vm9542_vm14, %v5085_v51, %v4581_v57  ;;  %v5134_v6 = vsel %vm5038_vm2, %v5086_v53, %v4592_v36  ;;  %vm5165_vm10 = vcmp.lt.s32.totalorder %v5117_v43, 16  ;;  %v9556_v36 = vadd.s32 176, %v9478_v17 }
 0x25b   : > { %3956 = vmatprep.mubr.f32.mxu0 %v7887_v0  ;;  %v4613_v0 = vmul.u32 18, %v4612_v52  ;;  %vm5181_vm6 = vcmp.lt.s32.totalorder %v5133_v12, 16  ;;  %vm5182_vm7 = vcmp.lt.s32.totalorder %v5134_v6, 16  ;;  %vm4991_vm14 = vcmp.lt.s32.totalorder %v4603_v48, 0 }
 0x25c   : > { %vm7267_vm9 = vmpackc.low %vm5182_vm7, %vm5181_vm6  ;;  %v9552_v16 = vmul.u32.u64.low 3817748708, %v9517_v25  ;;  %v9553_v57 = vmul.u32.u64.high 3817748708, %v9517_v25, %v9552_v16  ;;  %v9568_v52 = vmul.u32.u64.low 3817748708, %v9527_v22  ;;  %v9569_v44 = vmul.u32.u64.high 3817748708, %v9527_v22, %v9568_v52 }
 0x25d   : > { %v4614_v59 = vsub.s32 %v4368_v49, %v4613_v0  ;;  %7268 = vmatprep.subr.msk.bf16.mxu1 %vm7267_vm9, %v10239_v34  ;;  %vm5039_vm0 = vmand %vm4991_vm14, %vm4943_vm12  ;;  %v9560_v49 = vmul.u32.u64.low 3817748708, %v9520_v30  ;;  %v9561_v38 = vmul.u32.u64.high 3817748708, %v9520_v30, %v9560_v49 }
 0x25e   : > { %6602 = vmatmul.mubr.msk.f32.gmra.mrb[30].mxu0 %vm323_vm1, %v9445_v50  ;;  %vm7269_vm1 = vmpackc.low %vm5166_vm11, %vm5165_vm10  ;;  %v5087_v50 = vadd.s32 18, %v4603_v48  ;;  %v4425_v60 = vshrl.u32 %v9553_v57, 4  ;;  %v9576_v12 = vmul.u32.u64.low 3817748708, %v9530_v26  ;;  %v9577_v6 = vmul.u32.u64.high 3817748708, %v9530_v26, %v9576_v12 }
 0x25f   : > { %vm4944_vm13 = vcmp.ne.s32.totalorder %v4614_v59, 0  ;;  %vm4992_vm15 = vcmp.lt.s32.totalorder %v4614_v59, 0  ;;  %7270 = vmatpush3.bf16.msk.msra.mxu1 %vm7269_vm1, %v10239_v34  ;;  %v5088_v1 = vadd.s32 18, %v4614_v59  ;;  %v4436_v0 = vshrl.u32 %v9561_v38, 4 }
 0x260   : > { %vm5040_vm2 = vmand %vm4992_vm15, %vm4944_vm13  ;;  %v5135_v51 = vsel %vm5039_vm0, %v5087_v50, %v4603_v48  ;;  %v4426_v23 = vmul.u32 18, %v4425_v60  ;;  %v9581_v43 = vmul.u32.u64.low 3817748708, %v9533_v24  ;;  %v9582_v42 = vmul.u32.u64.high 3817748708, %v9533_v24, %v9581_v43 }
 0x261   : > { %v5136_v53 = vsel %vm5040_vm2, %v5088_v1, %v4614_v59  ;;  %vm5183_vm3 = vcmp.lt.s32.totalorder %v5135_v51, 16  ;;  %v4623_v48 = vshrl.u32 %v9565_v46, 4  ;;  %v4634_v59 = vshrl.u32 %v9569_v44, 4 }
 0x262   : > { %vm5184_vm4 = vcmp.lt.s32.totalorder %v5136_v53, 16  ;;  %v9588_v16 = vmul.u32.u64.low 3817748708, %v9556_v36  ;;  %v9589_v57 = vmul.u32.u64.high 3817748708, %v9556_v36, %v9588_v16  ;;  %v4427_v50 = vsub.s32 %v9517_v25, %v4426_v23 }
 0x263   : > { %vm7271_vm5 = vmpackc.low %vm5184_vm4, %vm5183_vm3  ;;  %v4437_v1 = vmul.u32 18, %v4436_v0  ;;  %v9593_v49 = vmul.u32.u64.low 3817748708, %v9573_v62  ;;  %v9594_v38 = vmul.u32.u64.high 3817748708, %v9573_v62, %v9593_v49  ;;  %v4447_v51 = vshrl.u32 %v9577_v6, 4 }
 0x264   : > { %7272 = vmatprep.subr.msk.bf16.mxu1 %vm7271_vm5, %v10239_v34  ;;  %v4624_v40 = vmul.u32 18, %v4623_v48  ;;  %v4635_v52 = vmul.u32 18, %v4634_v59  ;;  %v9598_v53 = vadd.s32 48, %v9478_v17  ;;  %vm4927_vm6 = vcmp.ne.s32.totalorder %v4427_v50, 0 }
 0x265   : > { %v4438_v46 = vsub.s32 %v9520_v30, %v4437_v1  ;;  %vm4975_vm7 = vcmp.lt.s32.totalorder %v4427_v50, 0  ;;  %v5071_v44 = vadd.s32 18, %v4427_v50  ;;  %v4448_v23 = vmul.u32 18, %v4447_v51 }
 0x266   : > { %10269 = vst [vmem:[#allocation11_spill] sm:$0xff] %v9598_v53  ;;  %vm5023_vm8 = vmand %vm4975_vm7, %vm4927_vm6  ;;  %v4625_v60 = vsub.s32 %v9524_v61, %v4624_v40  ;;  %v4636_v12 = vsub.s32 %v9527_v22, %v4635_v52  ;;  %v4458_v0 = vshrl.u32 %v9582_v42, 4  ;;  %v4656_v40 = vshrl.u32 %v9594_v38, 4 }
 0x267   : > { %vm4928_vm9 = vcmp.ne.s32.totalorder %v4438_v46, 0  ;;  %vm4976_vm10 = vcmp.lt.s32.totalorder %v4438_v46, 0  ;;  %v5072_v43 = vadd.s32 18, %v4438_v46  ;;  %v5119_v6 = vsel %vm5023_vm8, %v5071_v44, %v4427_v50 }
 0x268   : > { %vm5024_vm11 = vmand %vm4976_vm10, %vm4928_vm9  ;;  %vm9604_vm1 = vcmp.lt.s32.totalorder %v5119_v6, 16  ;;  %vm4945_vm12 = vcmp.ne.s32.totalorder %v4625_v60, 0  ;;  %vm4946_vm13 = vcmp.ne.s32.totalorder %v4636_v12, 0  ;;  %vm4993_vm14 = vcmp.lt.s32.totalorder %v4625_v60, 0 }
 0x269   : > { %v5120_v59 = vsel %vm5024_vm11, %v5072_v43, %v4438_v46  ;;  %vm4994_vm15 = vcmp.lt.s32.totalorder %v4636_v12, 0  ;;  %vm5041_vm0 = vmand %vm4993_vm14, %vm4945_vm12  ;;  %v5089_v61 = vadd.s32 18, %v4625_v60  ;;  %v5090_v22 = vadd.s32 18, %v4636_v12 }
 0x26a   : > { %vm5168_vm2 = vcmp.lt.s32.totalorder %v5120_v59, 16  ;;  %vm5042_vm3 = vmand %vm4994_vm15, %vm4946_vm13  ;;  %v4449_v42 = vsub.s32 %v9530_v26, %v4448_v23  ;;  %v4459_v16 = vmul.u32 18, %v4458_v0  ;;  %v4645_v50 = vshrl.u32 %v9589_v57, 4 }
 0x26b   : > { %vm7273_vm4 = vmpackc.low %vm5168_vm2, %vm9604_vm1  ;;  %v5137_v1 = vsel %vm5041_vm0, %v5089_v61, %v4625_v60  ;;  %v5138_v49 = vsel %vm5042_vm3, %v5090_v22, %v4636_v12  ;;  %v9614_v52 = vadd.s32 56, %v9478_v17  ;;  %v4657_v44 = vmul.u32 18, %v4656_v40 }
 0x26c   : > { %7274 = vmatpush3.bf16.msk.msra.mxu1 %vm7273_vm4, %v10239_v34  ;;  %vm5185_vm5 = vcmp.lt.s32.totalorder %v5137_v1, 16  ;;  %vm5186_vm6 = vcmp.lt.s32.totalorder %v5138_v49, 16  ;;  %v4460_v51 = vsub.s32 %v9533_v24, %v4459_v16  ;;  %vm4929_vm7 = vcmp.ne.s32.totalorder %v4449_v42, 0 }
 0x26d   : > { %10272 = vst [vmem:[#allocation12_spill] sm:$0xff] %v9614_v52  ;;  %vm7275_vm8 = vmpackc.low %vm5186_vm6, %vm5185_vm5  ;;  %vm4977_vm9 = vcmp.lt.s32.totalorder %v4449_v42, 0  ;;  %v5073_v57 = vadd.s32 18, %v4449_v42  ;;  %v4646_v46 = vmul.u32 18, %v4645_v50  ;;  %v4373_v60 = vadd.s32 192, %v9478_v17 }
 0x26e   : > { %7276 = vmatprep.subr.msk.bf16.mxu1 %vm7275_vm8, %v10239_v34  ;;  %vm4930_vm10 = vcmp.ne.s32.totalorder %v4460_v51, 0  ;;  %vm4978_vm11 = vcmp.lt.s32.totalorder %v4460_v51, 0  ;;  %vm5025_vm1 = vmand %vm4977_vm9, %vm4929_vm7  ;;  %v5074_v38 = vadd.s32 18, %v4460_v51  ;;  %v4658_v0 = vsub.s32 %v9573_v62, %v4657_v44 }
 0x26f   : > { %vm5026_vm12 = vmand %vm4978_vm11, %vm4930_vm10  ;;  %v5121_v12 = vsel %vm5025_vm1, %v5073_v57, %v4449_v42  ;;  %v4647_v23 = vsub.s32 %v9556_v36, %v4646_v46  ;;  %v4374_v43 = vadd.s32 200, %v9478_v17  ;;  %v9628_v36 = vadd.s32 64, %v9478_v17 }
 0x270   : > { %v5122_v6 = vsel %vm5026_vm12, %v5074_v38, %v4460_v51  ;;  %vm5169_vm13 = vcmp.lt.s32.totalorder %v5121_v12, 16  ;;  %v9624_v48 = vmul.u32.u64.low 3817748708, %v9598_v53  ;;  %v9625_v59 = vmul.u32.u64.high 3817748708, %v9598_v53, %v9624_v48 }
 0x271   : > { %vm5170_vm14 = vcmp.lt.s32.totalorder %v5122_v6, 16  ;;  %vm4947_vm15 = vcmp.ne.s32.totalorder %v4647_v23, 0  ;;  %vm4948_vm0 = vcmp.ne.s32.totalorder %v4658_v0, 0  ;;  %vm4995_vm2 = vcmp.lt.s32.totalorder %v4647_v23, 0  ;;  %10273 = vst [vmem:[#allocation13_spill] sm:$0xff] %v9628_v36 }
 0x272   : > { %vm7277_vm3 = vmpackc.low %vm5170_vm14, %vm5169_vm13  ;;  %vm4996_vm4 = vcmp.lt.s32.totalorder %v4658_v0, 0  ;;  %v5091_v61 = vadd.s32 18, %v4647_v23  ;;  %v5092_v22 = vadd.s32 18, %v4658_v0  ;;  %v4469_v49 = vshrl.u32 %v9625_v59, 4 }
 0x273   : > { %7278 = vmatpush3.bf16.msk.msra.mxu1 %vm7277_vm3, %v10239_v34  ;;  %vm5043_vm5 = vmand %vm4995_vm2, %vm4947_vm15  ;;  %v9632_v62 = vmul.u32.u64.low 3817748708, %v9614_v52  ;;  %v9633_v42 = vmul.u32.u64.high 3817748708, %v9614_v52, %v9632_v62  ;;  %v9635_v16 = vmul.u32.u64.low 3817748708, %v4373_v60  ;;  %v9636_v50 = vmul.u32.u64.high 3817748708, %v4373_v60, %v9635_v16 }
 0x274   : > { %vm5044_vm6 = vmand %vm4996_vm4, %vm4948_vm0  ;;  %v5139_v1 = vsel %vm5043_vm5, %v5091_v61, %v4647_v23  ;;  %v9639_v40 = vmul.u32.u64.low 3817748708, %v4374_v43  ;;  %v9640_v51 = vmul.u32.u64.high 3817748708, %v4374_v43, %v9639_v40  ;;  %v9643_v46 = vadd.s32 72, %v9478_v17 }
 0x275   : > { %v5140_v57 = vsel %vm5044_vm6, %v5092_v22, %v4658_v0  ;;  %vm5187_vm7 = vcmp.lt.s32.totalorder %v5139_v1, 16  ;;  %v9646_v44 = vadd.s32 208, %v9478_v17  ;;  %v4470_v38 = vmul.u32 18, %v4469_v49 }
 0x276   : > { %10274 = vst [vmem:[#allocation14_spill] sm:$0xff] %v9643_v46  ;;  %vm5188_vm8 = vcmp.lt.s32.totalorder %v5140_v57, 16  ;;  %v9649_v12 = vmul.u32.u64.low 3817748708, %v9628_v36  ;;  %v9650_v6 = vmul.u32.u64.high 3817748708, %v9628_v36, %v9649_v12  ;;  %v4480_v23 = vshrl.u32 %v9633_v42, 4 }
 0x277   : > { %vm7279_vm9 = vmpackc.low %vm5188_vm8, %vm5187_vm7  ;;  %v4667_v48 = vshrl.u32 %v9636_v50, 4  ;;  %v9655_v0 = vmul.u32.u64.low 3817748708, %v9643_v46  ;;  %v9656_v59 = vmul.u32.u64.high 3817748708, %v9643_v46, %v9655_v0  ;;  %v4471_v61 = vsub.s32 %v9598_v53, %v4470_v38 }
 0x278   : > { %7280 = vmatprep.subr.msk.bf16.mxu1 %vm7279_vm9, %v10239_v34  ;;  %v4678_v22 = vshrl.u32 %v9640_v51, 4  ;;  %v9662_v62 = vadd.s32 216, %v9478_v17  ;;  %v9665_v16 = vadd.s32 80, %v9478_v17  ;;  %v4481_v1 = vmul.u32 18, %v4480_v23 }
 0x279   : > { %v4668_v42 = vmul.u32 18, %v4667_v48  ;;  %v9668_v50 = vadd.s32 88, %v9478_v17  ;;  %v9671_v49 = vadd.s32 224, %v9478_v17  ;;  %vm4931_vm10 = vcmp.ne.s32.totalorder %v4471_v61, 0 }
 0x27a   : > { %10275 = vst [vmem:[#allocation15_spill] sm:$0xff] %v9665_v16  ;;  %vm4979_vm11 = vcmp.lt.s32.totalorder %v4471_v61, 0  ;;  %v5075_v40 = vadd.s32 18, %v4471_v61  ;;  %v4679_v57 = vmul.u32 18, %v4678_v22  ;;  %v4482_v51 = vsub.s32 %v9614_v52, %v4481_v1 }
 0x27b   : > { %10276 = vst [vmem:[#allocation16_spill] sm:$0xff] %v9668_v50  ;;  %vm5027_vm1 = vmand %vm4979_vm11, %vm4931_vm10  ;;  %v4669_v38 = vsub.s32 %v4373_v60, %v4668_v42  ;;  %v4491_v12 = vshrl.u32 %v9650_v6, 4  ;;  %v4502_v0 = vshrl.u32 %v9656_v59, 4  ;;  %v9686_v22 = vadd.s32 232, %v9478_v17 }
 0x27c   : > { %v5123_v23 = vsel %vm5027_vm1, %v5075_v40, %v4471_v61  ;;  %v4680_v48 = vsub.s32 %v4374_v43, %v4679_v57  ;;  %v9677_v34 = vmul.u32.u64.low 3817748708, %v9646_v44  ;;  %v9678_v53 = vmul.u32.u64.high 3817748708, %v9646_v44, %v9677_v34 }
 0x27d   : > { %vm4932_vm12 = vcmp.ne.s32.totalorder %v4482_v51, 0  ;;  %vm4980_vm13 = vcmp.lt.s32.totalorder %v4482_v51, 0  ;;  %v5076_v26 = vadd.s32 18, %v4482_v51  ;;  %vm9680_vm14 = vcmp.lt.s32.totalorder %v5123_v23, 16 }
 0x27e   : > { %vm5028_vm15 = vmand %vm4980_vm13, %vm4932_vm12  ;;  %vm4949_vm0 = vcmp.ne.s32.totalorder %v4669_v38, 0  ;;  %vm4950_vm2 = vcmp.ne.s32.totalorder %v4680_v48, 0  ;;  %vm4997_vm3 = vcmp.lt.s32.totalorder %v4669_v38, 0  ;;  %vm4998_vm4 = vcmp.lt.s32.totalorder %v4680_v48, 0 }
 0x27f   : > { %v5124_v60 = vsel %vm5028_vm15, %v5076_v26, %v4482_v51  ;;  %vm5045_vm5 = vmand %vm4997_vm3, %vm4949_vm0  ;;  %v5093_v6 = vadd.s32 18, %v4669_v38  ;;  %v5094_v43 = vadd.s32 18, %v4680_v48  ;;  %v4492_v59 = vmul.u32 18, %v4491_v12 }
 0x280   : > { %vm5172_vm6 = vcmp.lt.s32.totalorder %v5124_v60, 16  ;;  %vm5046_vm7 = vmand %vm4998_vm4, %vm4950_vm2  ;;  %v4503_v34 = vmul.u32 18, %v4502_v0  ;;  %v4689_v61 = vshrl.u32 %v9678_v53, 4  ;;  %v9692_v26 = vadd.s32 96, %v9478_v17 }
 0x281   : > { %vm7281_vm8 = vmpackc.low %vm5172_vm6, %vm9680_vm14  ;;  %v5141_v1 = vsel %vm5045_vm5, %v5093_v6, %v4669_v38  ;;  %v5142_v42 = vsel %vm5046_vm7, %v5094_v43, %v4680_v48  ;;  %v4493_v40 = vsub.s32 %v9628_v36, %v4492_v59  ;;  %v10280_v57 = vmov 0.00390625|0.00390625  }
 0x282   : > { %10279 = vst [vmem:[#allocation17_spill] sm:$0xff] %v9692_v26  ;;  %7282 = vmatpush3.bf16.msk.msra.mxu1 %vm7281_vm8, %v10280_v57  ;;  %vm5189_vm9 = vcmp.lt.s32.totalorder %v5141_v1, 16  ;;  %vm5190_vm10 = vcmp.lt.s32.totalorder %v5142_v42, 16  ;;  %v4504_v51 = vsub.s32 %v9643_v46, %v4503_v34  ;;  %v4690_v53 = vmul.u32 18, %v4689_v61 }
 0x283   : > { %vm7283_vm11 = vmpackc.low %vm5190_vm10, %vm5189_vm9  ;;  %vm4933_vm1 = vcmp.ne.s32.totalorder %v4493_v40, 0  ;;  %vm4981_vm12 = vcmp.lt.s32.totalorder %v4493_v40, 0  ;;  %v5077_v12 = vadd.s32 18, %v4493_v40  ;;  %v9697_v24 = vadd.s32 104, %v9478_v17 }
 0x284   : > { %7284 = vmatprep.subr.msk.bf16.mxu1 %vm7283_vm11, %v10280_v57  ;;  %vm4934_vm13 = vcmp.ne.s32.totalorder %v4504_v51, 0  ;;  %vm4982_vm14 = vcmp.lt.s32.totalorder %v4504_v51, 0  ;;  %vm5029_vm15 = vmand %vm4981_vm12, %vm4933_vm1  ;;  %v5078_v38 = vadd.s32 18, %v4504_v51  ;;  %v4691_v0 = vsub.s32 %v9646_v44, %v4690_v53 }
 0x285   : > { %10281 = vst [vmem:[#allocation18_spill] sm:$0xff] %v9697_v24  ;;  %vm5030_vm0 = vmand %vm4982_vm14, %vm4934_vm13  ;;  %v5125_v23 = vsel %vm5029_vm15, %v5077_v12, %v4493_v40  ;;  %v9702_v48 = vmul.u32.u64.low 3817748708, %v9662_v62  ;;  %v9703_v60 = vmul.u32.u64.high 3817748708, %v9662_v62, %v9702_v48  ;;  %v9706_v6 = vadd.s32 240, %v9478_v17 }
 0x286   : > { %v5126_v43 = vsel %vm5030_vm0, %v5078_v38, %v4504_v51  ;;  %vm5173_vm2 = vcmp.lt.s32.totalorder %v5125_v23, 16  ;;  %vm4951_vm3 = vcmp.ne.s32.totalorder %v4691_v0, 0  ;;  %vm4999_vm4 = vcmp.lt.s32.totalorder %v4691_v0, 0 }
 0x287   : > { %vm5174_vm5 = vcmp.lt.s32.totalorder %v5126_v43, 16  ;;  %vm5047_vm6 = vmand %vm4999_vm4, %vm4951_vm3  ;;  %v5095_v59 = vadd.s32 18, %v4691_v0  ;;  %v9709_v34 = vmul.u32.u64.low 3817748708, %v9665_v16  ;;  %v9710_v61 = vmul.u32.u64.high 3817748708, %v9665_v16, %v9709_v34 }
 0x288   : > { %vm7285_vm7 = vmpackc.low %vm5174_vm5, %vm5173_vm2  ;;  %v9713_v44 = vmul.u32.u64.low 3817748708, %v9668_v50  ;;  %v9714_v1 = vmul.u32.u64.high 3817748708, %v9668_v50, %v9713_v44  ;;  %v9717_v42 = vmul.u32.u64.low 3817748708, %v9671_v49  ;;  %v9718_v40 = vmul.u32.u64.high 3817748708, %v9671_v49, %v9717_v42 }
 0x289   : > { %7286 = vmatpush3.bf16.msk.msra.mxu1 %vm7285_vm7, %v10280_v57  ;;  %v4700_v51 = vshrl.u32 %v9703_v60, 4  ;;  %v5143_v53 = vsel %vm5047_vm6, %v5095_v59, %v4691_v0  ;;  %v9723_v12 = vmul.u32.u64.low 3817748708, %v9686_v22  ;;  %v9724_v38 = vmul.u32.u64.high 3817748708, %v9686_v22, %v9723_v12 }
 0x28a   : > { %vm9726_vm8 = vcmp.lt.s32.totalorder %v5143_v53, 16  ;;  %v9731_v48 = vmul.u32.u64.low 3817748708, %v9692_v26  ;;  %v9732_v43 = vmul.u32.u64.high 3817748708, %v9692_v26, %v9731_v48  ;;  %v4513_v44 = vshrl.u32 %v9710_v61, 4 }
 0x28b   : > { %v4701_v34 = vmul.u32 18, %v4700_v51  ;;  %v9736_v42 = vmul.u32.u64.low 3817748708, %v9697_v24  ;;  %v9737_v36 = vmul.u32.u64.high 3817748708, %v9697_v24, %v9736_v42  ;;  %v4524_v0 = vshrl.u32 %v9714_v1, 4 }
 0x28c   : > { %v4711_v60 = vshrl.u32 %v9718_v40, 4  ;;  %v9742_v59 = vmul.u32.u64.low 3817748708, %v9706_v6  ;;  %v9743_v53 = vmul.u32.u64.high 3817748708, %v9706_v6, %v9742_v59  ;;  %v4514_v46 = vmul.u32 18, %v4513_v44 }
 0x28d   : > { %v4702_v12 = vsub.s32 %v9662_v62, %v4701_v34  ;;  %v4722_v48 = vshrl.u32 %v9724_v38, 4  ;;  %v9748_v51 = vadd.s32 248, %v9478_v17  ;;  %v4525_v61 = vmul.u32 18, %v4524_v0 }
 0x28e   : > { %v4712_v52 = vmul.u32 18, %v4711_v60  ;;  %v4535_v42 = vshrl.u32 %v9732_v43, 4  ;;  %v9752_v1 = vadd.s32 112, %v9478_v17  ;;  %v4515_v59 = vsub.s32 %v9665_v16, %v4514_v46 }
 0x28f   : > { %vm4952_vm9 = vcmp.ne.s32.totalorder %v4702_v12, 0  ;;  %vm5000_vm10 = vcmp.lt.s32.totalorder %v4702_v12, 0  ;;  %v5096_v40 = vadd.s32 18, %v4702_v12  ;;  %v4526_v62 = vsub.s32 %v9668_v50, %v4525_v61 }
 0x290   : > { %10284 = vst [vmem:[#allocation19_spill] sm:$0xff] %v9752_v1  ;;  %vm5048_vm11 = vmand %vm5000_vm10, %vm4952_vm9  ;;  %v4713_v38 = vsub.s32 %v9671_v49, %v4712_v52  ;;  %v4723_v34 = vmul.u32 18, %v4722_v48  ;;  %v4536_v44 = vmul.u32 18, %v4535_v42  ;;  %vm4935_vm1 = vcmp.ne.s32.totalorder %v4515_v59, 0 }
 0x291   : > { %v5144_v25 = vsel %vm5048_vm11, %v5096_v40, %v4702_v12  ;;  %vm4983_vm12 = vcmp.lt.s32.totalorder %v4515_v59, 0  ;;  %v5079_v0 = vadd.s32 18, %v4515_v59  ;;  %vm4936_vm14 = vcmp.ne.s32.totalorder %v4526_v62, 0 }
 0x292   : > { %vm5192_vm13 = vcmp.lt.s32.totalorder %v5144_v25, 16  ;;  %vm4984_vm15 = vcmp.lt.s32.totalorder %v4526_v62, 0  ;;  %vm5031_vm0 = vmand %vm4983_vm12, %vm4935_vm1  ;;  %v5080_v43 = vadd.s32 18, %v4526_v62  ;;  %v4724_v60 = vsub.s32 %v9686_v22, %v4723_v34 }
 0x293   : > { %vm7287_vm2 = vmpackc.low %vm5192_vm13, %vm9726_vm8  ;;  %v5127_v46 = vsel %vm5031_vm0, %v5079_v0, %v4515_v59  ;;  %vm4953_vm3 = vcmp.ne.s32.totalorder %v4713_v38, 0  ;;  %vm5001_vm4 = vcmp.lt.s32.totalorder %v4713_v38, 0  ;;  %v5097_v25 = vadd.s32 18, %v4713_v38 }
 0x294   : > { %7288 = vmatprep.subr.msk.bf16.mxu1 %vm7287_vm2, %v10280_v57  ;;  %vm5032_vm5 = vmand %vm4984_vm15, %vm4936_vm14  ;;  %vm9761_vm6 = vcmp.lt.s32.totalorder %v5127_v46, 16  ;;  %v4537_v49 = vsub.s32 %v9692_v26, %v4536_v44  ;;  %v4546_v12 = vshrl.u32 %v9737_v36, 4  ;;  %vm4954_vm7 = vcmp.ne.s32.totalorder %v4724_v60, 0 }
 0x295   : > { %v5128_v48 = vsel %vm5032_vm5, %v5080_v43, %v4526_v62  ;;  %vm5002_vm8 = vcmp.lt.s32.totalorder %v4724_v60, 0  ;;  %vm5049_vm9 = vmand %vm5001_vm4, %vm4953_vm3  ;;  %v5098_v23 = vadd.s32 18, %v4724_v60  ;;  %v4733_v59 = vshrl.u32 %v9743_v53, 4 }
 0x296   : > { %vm5176_vm10 = vcmp.lt.s32.totalorder %v5128_v48, 16  ;;  %vm5050_vm11 = vmand %vm5002_vm8, %vm4954_vm7  ;;  %v5145_v22 = vsel %vm5049_vm9, %v5097_v25, %v4713_v38  ;;  %v4547_v61 = vmul.u32 18, %v4546_v12  ;;  %vm4937_vm1 = vcmp.ne.s32.totalorder %v4537_v49, 0 }
 0x297   : > { %vm7289_vm12 = vmpackc.low %vm5176_vm10, %vm9761_vm6  ;;  %v5146_v42 = vsel %vm5050_vm11, %v5098_v23, %v4724_v60  ;;  %vm5193_vm13 = vcmp.lt.s32.totalorder %v5145_v22, 16  ;;  %vm4985_vm14 = vcmp.lt.s32.totalorder %v4537_v49, 0  ;;  %v5081_v40 = vadd.s32 18, %v4537_v49 }
 0x298   : > { %7290 = vmatpush3.bf16.msk.msra.mxu1 %vm7289_vm12, %v10280_v57  ;;  %vm5194_vm15 = vcmp.lt.s32.totalorder %v5146_v42, 16  ;;  %v4548_v36 = vsub.s32 %v9697_v24, %v4547_v61  ;;  %vm5033_vm0 = vmand %vm4985_vm14, %vm4937_vm1  ;;  %v9773_v62 = vadd.s32 120, %v9478_v17  ;;  %v4734_v43 = vmul.u32 18, %v4733_v59 }
 0x299   : > { %vm7291_vm2 = vmpackc.low %vm5194_vm15, %vm5193_vm13  ;;  %v5129_v38 = vsel %vm5033_vm0, %v5081_v40, %v4537_v49  ;;  %v9776_v34 = vmul.u32.u64.low 3817748708, %v9748_v51  ;;  %v9777_v44 = vmul.u32.u64.high 3817748708, %v9748_v51, %v9776_v34 }
 0x29a   : > { %10287 = vst [vmem:[#allocation20_spill] sm:$0xff] %v9773_v62  ;;  %7292 = vmatprep.subr.msk.bf16.mxu1 %vm7291_vm2, %v10280_v57  ;;  %vm4938_vm3 = vcmp.ne.s32.totalorder %v4548_v36, 0  ;;  %vm4986_vm4 = vcmp.lt.s32.totalorder %v4548_v36, 0  ;;  %v5082_v0 = vadd.s32 18, %v4548_v36  ;;  %vm5177_vm6 = vcmp.lt.s32.totalorder %v5129_v38, 16 }
 0x29b   : > { %vm5034_vm5 = vmand %vm4986_vm4, %vm4938_vm3  ;;  %v9781_v46 = vmul.u32.u64.low 3817748708, %v9752_v1  ;;  %v9782_v53 = vmul.u32.u64.high 3817748708, %v9752_v1, %v9781_v46  ;;  %v9785_v52 = vmul.u32.u64.low 3817748708, %v9773_v62  ;;  %v9786_v25 = vmul.u32.u64.high 3817748708, %v9773_v62, %v9785_v52 }
 0x29c   : > { %v5130_v60 = vsel %vm5034_vm5, %v5082_v0, %v4548_v36  ;;  %v4735_v49 = vsub.s32 %v9706_v6, %v4734_v43  ;;  %v4744_v12 = vshrl.u32 %v9777_v44, 4  ;;  %v4381_v36 = vadd.s32 256, %v9478_v17 }
 0x29d   : > { %vm5178_vm7 = vcmp.lt.s32.totalorder %v5130_v60, 16  ;;  %v4557_v22 = vshrl.u32 %v9782_v53, 4  ;;  %v4568_v61 = vshrl.u32 %v9786_v25, 4  ;;  %v4382_v6 = vadd.s32 264, %v9478_v17 }
 0x29e   : > { %vm7293_vm8 = vmpackc.low %vm5178_vm7, %vm5177_vm6  ;;  %v4745_v48 = vmul.u32 18, %v4744_v12  ;;  %vm4955_vm9 = vcmp.ne.s32.totalorder %v4735_v49, 0  ;;  %vm5003_vm10 = vcmp.lt.s32.totalorder %v4735_v49, 0  ;;  %v5099_v23 = vadd.s32 18, %v4735_v49 }
 0x29f   : > { %7294 = vmatpush3.bf16.msk.msra.mxu1 %vm7293_vm8, %v10280_v57  ;;  %vm5051_vm11 = vmand %vm5003_vm10, %vm4955_vm9  ;;  %v4558_v59 = vmul.u32 18, %v4557_v22  ;;  %v4569_v38 = vmul.u32 18, %v4568_v61 }
 0x2a0   : > { %v4746_v42 = vsub.s32 %v9748_v51, %v4745_v48  ;;  %v5147_v40 = vsel %vm5051_vm11, %v5099_v23, %v4735_v49  ;;  %v9802_v51 = vmul.u32.u64.low 3817748708, %v4381_v36  ;;  %v9803_v46 = vmul.u32.u64.high 3817748708, %v4381_v36, %v9802_v51 }
 0x2a1   : > { %vm9796_vm13 = vcmp.lt.s32.totalorder %v5147_v40, 16  ;;  %v4559_v0 = vsub.s32 %v9752_v1, %v4558_v59  ;;  %v4570_v43 = vsub.s32 %v9773_v62, %v4569_v38 }
 0x2a2   : > { %vm4956_vm1 = vcmp.ne.s32.totalorder %v4746_v42, 0  ;;  %vm5004_vm12 = vcmp.lt.s32.totalorder %v4746_v42, 0  ;;  %v5100_v34 = vadd.s32 18, %v4746_v42  ;;  %v4755_v12 = vshrl.u32 %v9803_v46, 4 }
 0x2a3   : > { %vm5052_vm14 = vmand %vm5004_vm12, %vm4956_vm1  ;;  %v9805_v60 = vmul.u32.u64.low 3817748708, %v4382_v6  ;;  %v9806_v52 = vmul.u32.u64.high 3817748708, %v4382_v6, %v9805_v60  ;;  %vm4939_vm0 = vcmp.ne.s32.totalorder %v4559_v0, 0  ;;  %vm4940_vm2 = vcmp.ne.s32.totalorder %v4570_v43, 0 }
 0x2a4   : > { %v5148_v53 = vsel %vm5052_vm14, %v5100_v34, %v4746_v42  ;;  %vm4987_vm3 = vcmp.lt.s32.totalorder %v4559_v0, 0  ;;  %vm4988_vm5 = vcmp.lt.s32.totalorder %v4570_v43, 0  ;;  %v5083_v25 = vadd.s32 18, %v4559_v0 }
 0x2a5   : > { %vm5196_vm15 = vcmp.lt.s32.totalorder %v5148_v53, 16  ;;  %v5084_v49 = vadd.s32 18, %v4570_v43  ;;  %vm5035_vm6 = vmand %vm4987_vm3, %vm4939_vm0  ;;  %v4766_v23 = vshrl.u32 %v9806_v52, 4  ;;  %v4756_v61 = vmul.u32 18, %v4755_v12 }
 0x2a6   : > { %vm7295_vm4 = vmpackc.low %vm5196_vm15, %vm9796_vm13  ;;  %v5131_v48 = vsel %vm5035_vm6, %v5083_v25, %v4559_v0 }
 0x2a7   : > { %7296 = vmatprep.subr.msk.bf16.mxu1 %vm7295_vm4, %v10280_v57  ;;  %vm5036_vm7 = vmand %vm4988_vm5, %vm4940_vm2  ;;  %vm5179_vm8 = vcmp.lt.s32.totalorder %v5131_v48, 16  ;;  %v4767_v42 = vmul.u32 18, %v4766_v23  ;;  %v4757_v40 = vsub.s32 %v4381_v36, %v4756_v61  ;;  %v4384_v48 = vadd.s32 280, %v9478_v17 }
 0x2a8   : > { %v5132_v22 = vsel %vm5036_vm7, %v5084_v49, %v4570_v43  ;;  %v4383_v49 = vadd.s32 272, %v9478_v17 }
 0x2a9   : > { %vm5180_vm9 = vcmp.lt.s32.totalorder %v5132_v22, 16  ;;  %v4768_v59 = vsub.s32 %v4382_v6, %v4767_v42  ;;  %vm4957_vm11 = vcmp.ne.s32.totalorder %v4757_v40, 0  ;;  %vm5005_vm1 = vcmp.lt.s32.totalorder %v4757_v40, 0 }
 0x2aa   : > { %vm7297_vm10 = vmpackc.low %vm5180_vm9, %vm5179_vm8  ;;  %v5101_v38 = vadd.s32 18, %v4757_v40  ;;  %v9852_v22 = vmul.u32.u64.low 3817748708, %v4383_v49  ;;  %v9853_v61 = vmul.u32.u64.high 3817748708, %v4383_v49, %v9852_v22 }
 0x2ab   : > { %7298 = vmatpush3.bf16.msk.msra.mxu1 %vm7297_vm10, %v10280_v57  ;;  %vm4958_vm12 = vcmp.ne.s32.totalorder %v4768_v59, 0  ;;  %vm5006_vm13 = vcmp.lt.s32.totalorder %v4768_v59, 0  ;;  %vm5053_vm14 = vmand %vm5005_vm1, %vm4957_vm11  ;;  %v5102_v34 = vadd.s32 18, %v4768_v59 }
 0x2ac   : > { %vm5054_vm15 = vmand %vm5006_vm13, %vm4958_vm12  ;;  %v5149_v44 = vsel %vm5053_vm14, %v5101_v38, %v4757_v40  ;;  %vm5824_vm12 = vcmask 7168  }
 0x2ad   : > { %v5150_v0 = vsel %vm5054_vm15, %v5102_v34, %v4768_v59  ;;  %vm9814_vm0 = vcmp.lt.s32.totalorder %v5149_v44, 16  ;;  %v9857_v40 = vmul.u32.u64.low 3817748708, %v4384_v48  ;;  %v9858_v59 = vmul.u32.u64.high 3817748708, %v4384_v48, %v9857_v40 }
 0x2ae   : > { %vm9818_vm2 = vcmp.lt.s32.totalorder %v5150_v0, 16  ;;  %v4777_v0 = vshrl.u32 %v9853_v61, 4 }
 0x2af   : > { %vm7299_vm3 = vmpackc.low %vm9818_vm2, %vm9814_vm0  ;;  %v4788_v62 = vshrl.u32 %v9858_v59, 4 }
 0x2b0   : > { %7300 = vmatprep.subr.msk.bf16.mxu1 %vm7299_vm3, %v10280_v57  ;;  %v4778_v22 = vmul.u32 18, %v4777_v0 }
 0x2b1   : > { %v4789_v16 = vmul.u32 18, %v4788_v62 }
 0x2b2   : > { %v4779_v50 = vsub.s32 %v4383_v49, %v4778_v22  ;;  %v9885_v22 = vpop.permute.xlu1 %4179 }
 0x2b3   : > { %v4790_v40 = vsub.s32 %v4384_v48, %v4789_v16 }
 0x2b4   : > { %vm4959_vm4 = vcmp.ne.s32.totalorder %v4779_v50, 0  ;;  %vm5007_vm5 = vcmp.lt.s32.totalorder %v4779_v50, 0  ;;  %v5103_v61 = vadd.s32 18, %v4779_v50 }
 0x2b5   : > { %vm4960_vm6 = vcmp.ne.s32.totalorder %v4790_v40, 0  ;;  %vm5008_vm7 = vcmp.lt.s32.totalorder %v4790_v40, 0  ;;  %vm9874_vm8 = vmand %vm5007_vm5, %vm4959_vm4  ;;  %v5104_v17 = vadd.s32 18, %v4790_v40 }
 0x2b6   : > { %vm5056_vm9 = vmand %vm5008_vm7, %vm4960_vm6  ;;  %v5151_v16 = vsel %vm9874_vm8, %v5103_v61, %v4779_v50 }
 0x2b7   : > { %v5152_v49 = vsel %vm5056_vm9, %v5104_v17, %v4790_v40  ;;  %vm9889_vm10 = vcmp.lt.s32.totalorder %v5151_v16, 16 }
 0x2b8   : > { %vm9893_vm11 = vcmp.lt.s32.totalorder %v5152_v49, 16 }
 0x2b9   : > { %vm7303_vm1 = vmpackc.low %vm9893_vm11, %vm9889_vm10 }
 0x2cc   : > { %v9832_v36 = vpop.f32.mrb[32].mxu1 }
 0x2cd   : > { %v9834_v6 = vpop.f32.mrb[33].mxu1 }
 0x2d0   : > { %v9836_v46 = vpop.f32.mrb[34].mxu1 }
 0x2d1   : > { %v9838_v53 = vpop.f32.mrb[35].mxu1 }
 0x2d4   : > { %v9840_v60 = vpop.f32.mrb[36].mxu1 }
 0x2d5   : > { %v9842_v52 = vpop.f32.mrb[37].mxu1 }
 0x2d8   : > { %v9844_v25 = vpop.f32.mrb[38].mxu1 }
 0x2d9   : > { %v9847_v12 = vpop.f32.mrb[39].mxu1 }
 0x2dc   : > { %v9850_v23 = vpop.f32.mrb[40].mxu1 }
 0x2dd   : > { %v9855_v42 = vpop.f32.mrb[41].mxu1 }
 0x2e0   : > { %v9860_v38 = vpop.f32.mrb[42].mxu1 }
 0x2e1   : > { %10294 = vst [vmem:[#allocation21_spill] sm:$0xff] %v9860_v38  ;;  %v9862_v34 = vpop.f32.mrb[43].mxu1 }
 0x2e4   : > { %v9864_v44 = vpop.f32.mrb[44].mxu1 }
 0x2e5   : > { %10295 = vst [vmem:[#allocation22_spill] sm:$0xff] %v9864_v44  ;;  %v9867_v1 = vpop.f32.mrb[45].mxu1 }
 0x2e6   : > { %10296 = vst [vmem:[#allocation23_spill] sm:$0xff] %v9867_v1 }
 0x2e8   : > { %v9870_v26 = vpop.f32.mrb[46].mxu1 }
 0x2e9   : > { %10297 = vst [vmem:[#allocation24_spill] sm:$0xff] %v9870_v26  ;;  %v9872_v24 = vpop.f32.mrb[47].mxu1  ;;  %v9879_v26 = vpop.permute.xlu0 %4174 }
 0x2ea   : > { %10298 = vst [vmem:[#allocation25_spill] sm:$0xff] %v9872_v24 }
 0x2ed   : > { %v9923_v43 = vpop.permute.xlu0 %4189 }
 0x2f5   : > { %v3868_v59 = vpop.f32.mrb[0].mxu0 }
 0x2f6   : > { %v7341_v56 = vadd.f32 %v3868_v59, %v8951_v55  ;;  %v3870_v0 = vpop.f32.mrb[1].mxu0  ;;  %v9905_v59 = vpop.permute.xlu1 %4184 }
 0x2f7   : > { %v7342_v62 = vadd.f32 %v3870_v0, %v8955_v41 }
 0x2f8   : > { %v4252_v48 = vadd.f32 %v7341_v56, %v9879_v26 }
 0x2f9   : > { %v4253_v24 = vadd.f32 %v7342_v62, %v9879_v26  ;;  %v3874_v44 = vpop.f32.mrb[2].mxu0 }
 0x2fa   : > { %v7343_v1 = vadd.f32 %v3874_v44, %v8967_v33  ;;  %v3876_v38 = vpop.f32.mrb[3].mxu0  ;;  %v4300_v56 = vmax.f32 %v4252_v48, 0.0 }
 0x2fb   : > { %v4301_v30 = vmax.f32 %v4253_v24, 0.0  ;;  %v7344_v17 = vadd.f32 %v3876_v38, %v8971_v39 }
 0x2fc   : > { %v4255_v50 = vadd.f32 %v7343_v1, %v9885_v22 }
 0x2fd   : > { %v4256_v40 = vadd.f32 %v7344_v17, %v9885_v22  ;;  %v3880_v61 = vpop.f32.mrb[4].mxu0  ;;  %5421 = vmatprep.mubr.f32.mxu1 %v4301_v30 }
 0x2fe   : > { %v7345_v33 = vadd.f32 %v3880_v61, %v8983_v45  ;;  %v3882_v44 = vpop.f32.mrb[5].mxu0  ;;  %5422 = vmatmul.mubr.f32.vlgmr.msra.gmra.mrb[48].mxu1 %v4300_v56  ;;  %v4303_v1 = vmax.f32 %v4255_v50, 0.0  ;;  %v9935_v50 = vpop.permute.xlu1 %4194 }
 0x2ff   : > { %v4304_v24 = vmax.f32 %v4256_v40, 0.0  ;;  %v7346_v39 = vadd.f32 %v3882_v44, %v8987_v47  ;;  %7302 = vmatpush3.bf16.msk.msra.mxu1 %vm7299_vm3, %v10280_v57 }
 0x300   : > { %v4258_v38 = vadd.f32 %v7345_v33, %v9905_v59  ;;  %7304 = vmatprep.subr.msk.bf16.mxu1 %vm7303_vm1, %v10280_v57 }
 0x301   : > { %v4259_v45 = vadd.f32 %v7346_v39, %v9905_v59  ;;  %v3886_v47 = vpop.f32.mrb[6].mxu0  ;;  %5426 = vmatprep.mubr.f32.mxu1 %v4304_v24  ;;  %v9941_v24 = vpop.permute.xlu0 %4199 }
 0x302   : > { %v7347_v51 = vadd.f32 %v3886_v47, %v8999_v2  ;;  %v3888_v0 = vpop.f32.mrb[7].mxu0  ;;  %5427 = vmatmul.mubr.f32.gmra.mrb[50].mxu1 %v4303_v1  ;;  %v4306_v49 = vmax.f32 %v4258_v38, 0.0 }
 0x303   : > { %v4307_v62 = vmax.f32 %v4259_v45, 0.0  ;;  %v7348_v16 = vadd.f32 %v3888_v0, %v9003_v5  ;;  %7306 = vmatpush3.bf16.msk.msra.mxu1 %vm7303_vm1, %v10280_v57  ;;  %v9947_v0 = vpop.permute.xlu1 %4204 }
 0x304   : > { %v4261_v48 = vadd.f32 %v7347_v51, %v9923_v43 }
 0x305   : > { %v4262_v30 = vadd.f32 %v7348_v16, %v9923_v43  ;;  %v3892_v2 = vpop.f32.mrb[8].mxu0  ;;  %5431 = vmatprep.mubr.f32.mxu1 %v4307_v62 }
 0x306   : > { %v7349_v17 = vadd.f32 %v3892_v2, %v9015_v54  ;;  %v3894_v56 = vpop.f32.mrb[9].mxu0  ;;  %5432 = vmatmul.mubr.f32.gmra.mrb[52].mxu1 %v4306_v49  ;;  %v4309_v40 = vmax.f32 %v4261_v48, 0.0 }
 0x307   : > { %v4310_v5 = vmax.f32 %v4262_v30, 0.0  ;;  %v7350_v41 = vadd.f32 %v3894_v56, %v9019_v58 }
 0x308   : > { %v4264_v55 = vadd.f32 %v7349_v17, %v9935_v50  ;;  %v9953_v17 = vpop.permute.xlu0 %4209 }
 0x309   : > { %v4265_v57 = vadd.f32 %v7350_v41, %v9935_v50  ;;  %v3898_v61 = vpop.f32.mrb[10].mxu0  ;;  %5436 = vmatprep.mubr.f32.mxu1 %v4310_v5 }
 0x30a   : > { %v7351_v33 = vadd.f32 %v3898_v61, %v9029_v3  ;;  %v3900_v44 = vpop.f32.mrb[11].mxu0  ;;  %5437 = vmatmul.mubr.f32.gmra.mrb[54].mxu1 %v4309_v40  ;;  %v4312_v1 = vmax.f32 %v4264_v55, 0.0  ;;  %v9959_v61 = vpop.permute.xlu1 %4214 }
 0x30b   : > { %v4313_v54 = vmax.f32 %v4265_v57, 0.0  ;;  %v7352_v39 = vadd.f32 %v3900_v44, %v9033_v13 }
 0x30c   : > { %v4267_v38 = vadd.f32 %v7351_v33, %v9941_v24 }
 0x30d   : > { %v4268_v58 = vadd.f32 %v7352_v39, %v9941_v24  ;;  %v3904_v45 = vpop.f32.mrb[12].mxu0  ;;  %5441 = vmatprep.mubr.f32.mxu1 %v4313_v54 }
 0x30e   : > { %v7353_v47 = vadd.f32 %v3904_v45, %v9042_v27  ;;  %v3906_v51 = vpop.f32.mrb[13].mxu0  ;;  %5442 = vmatmul.mubr.f32.gmra.mrb[56].mxu1 %v4312_v1  ;;  %v4315_v16 = vmax.f32 %v4267_v38, 0.0 }
 0x30f   : > { %v4316_v3 = vmax.f32 %v4268_v58, 0.0  ;;  %v7354_v62 = vadd.f32 %v3906_v51, %v9046_v29  ;;  %v9965_v58 = vpop.permute.xlu0 %4219 }
 0x310   : > { %v4270_v49 = vadd.f32 %v7353_v47, %v9947_v0 }
 0x311   : > { %v4271_v13 = vadd.f32 %v7354_v62, %v9947_v0  ;;  %v3910_v48 = vpop.f32.mrb[14].mxu0  ;;  %5446 = vmatprep.mubr.f32.mxu1 %v4316_v3 }
 0x312   : > { %v7355_v30 = vadd.f32 %v3910_v48, %v9055_v35  ;;  %v3912_v2 = vpop.f32.mrb[15].mxu0  ;;  %5447 = vmatmul.mubr.f32.gmra.mrb[58].mxu1 %v4315_v16  ;;  %v4318_v5 = vmax.f32 %v4270_v49, 0.0  ;;  %v9971_v49 = vpop.permute.xlu1 %4224 }
 0x313   : > { %v4319_v27 = vmax.f32 %v4271_v13, 0.0  ;;  %v7356_v56 = vadd.f32 %v3912_v2, %v9062_v9 }
 0x314   : > { %v4273_v41 = vadd.f32 %v7355_v30, %v9953_v17 }
 0x315   : > { %v4274_v29 = vadd.f32 %v7356_v56, %v9953_v17  ;;  %v3916_v40 = vpop.f32.mrb[16].mxu0  ;;  %5451 = vmatprep.mubr.f32.mxu1 %v4319_v27 }
 0x316   : > { %v7357_v55 = vadd.f32 %v3916_v40, %v9073_v7  ;;  %v3918_v57 = vpop.f32.mrb[17].mxu0  ;;  %5452 = vmatmul.mubr.f32.gmra.mrb[60].mxu1 %v4318_v5  ;;  %v4321_v44 = vmax.f32 %v4273_v41, 0.0  ;;  %v9977_v5 = vpop.permute.xlu0 %4229 }
 0x317   : > { %v4322_v35 = vmax.f32 %v4274_v29, 0.0  ;;  %v7358_v33 = vadd.f32 %v3918_v57, %v9077_v11 }
 0x318   : > { %v4276_v54 = vadd.f32 %v7357_v55, %v9959_v61 }
 0x319   : > { %v4277_v9 = vadd.f32 %v7358_v33, %v9959_v61  ;;  %v3922_v39 = vpop.f32.mrb[18].mxu0  ;;  %5456 = vmatprep.mubr.f32.mxu1 %v4322_v35  ;;  %v9983_v33 = vpop.permute.xlu1 %4234 }
 0x31a   : > { %v7359_v1 = vadd.f32 %v3922_v39, %v9087_v14  ;;  %v3924_v38 = vpop.f32.mrb[19].mxu0  ;;  %5457 = vmatmul.mubr.f32.gmra.mrb[62].mxu1 %v4321_v44  ;;  %v4324_v47 = vmax.f32 %v4276_v54, 0.0 }
 0x31b   : > { %v4325_v7 = vmax.f32 %v4277_v9, 0.0  ;;  %v7360_v45 = vadd.f32 %v3924_v38, %v9094_v15 }
 0x31c   : > { %v4279_v51 = vadd.f32 %v7359_v1, %v9965_v58 }
 0x31d   : > { %v4280_v11 = vadd.f32 %v7360_v45, %v9965_v58  ;;  %v3928_v3 = vpop.f32.mrb[20].mxu0  ;;  %5461 = vmatprep.mubr.f32.mxu1 %v4325_v7  ;;  %v9989_v7 = vpop.permute.xlu0 %4239 }
 0x31e   : > { %v7361_v62 = vadd.f32 %v3928_v3, %v9106_v18  ;;  %v3930_v16 = vpop.f32.mrb[21].mxu0  ;;  %5462 = vmatmul.mubr.f32.gmra.mrb[64].mxu1 %v4324_v47  ;;  %v4327_v48 = vmax.f32 %v4279_v51, 0.0 }
 0x31f   : > { %v4328_v14 = vmax.f32 %v4280_v11, 0.0  ;;  %v7362_v13 = vadd.f32 %v3930_v16, %v9110_v19  ;;  %v4245_v16 = vpop.permute.xlu1 %4244 }
 0x320   : > { %v4282_v30 = vadd.f32 %v7361_v62, %v9971_v49 }
 0x321   : > { %v4283_v15 = vadd.f32 %v7362_v13, %v9971_v49  ;;  %v3934_v2 = vpop.f32.mrb[22].mxu0  ;;  %5466 = vmatprep.mubr.f32.mxu1 %v4328_v14 }
 0x322   : > { %v7363_v27 = vadd.f32 %v3934_v2, %v9119_v21  ;;  %v3936_v56 = vpop.f32.mrb[23].mxu0  ;;  %5467 = vmatmul.mubr.f32.gmra.mrb[66].mxu1 %v4327_v48  ;;  %v4330_v29 = vmax.f32 %v4282_v30, 0.0 }
 0x323   : > { %v4331_v18 = vmax.f32 %v4283_v15, 0.0  ;;  %v7364_v41 = vadd.f32 %v3936_v56, %v9123_v31 }
 0x324   : > { %v4285_v40 = vadd.f32 %v7363_v27, %v9977_v5  ;;  %v4250_v27 = vpop.permute.xlu0 %4249 }
 0x325   : > { %v4286_v19 = vadd.f32 %v7364_v41, %v9977_v5  ;;  %v3940_v55 = vpop.f32.mrb[24].mxu0  ;;  %5471 = vmatprep.mubr.f32.mxu1 %v4331_v18 }
 0x326   : > { %v7365_v57 = vadd.f32 %v3940_v55, %v9270_v10  ;;  %v3942_v35 = vpop.f32.mrb[25].mxu0  ;;  %5472 = vmatmul.mubr.f32.gmra.mrb[68].mxu1 %v4330_v29  ;;  %v4333_v54 = vmax.f32 %v4285_v40, 0.0  ;;  %v4254_v29 = vadd.f32 %v9879_v26, %v9834_v6  ;;  %v4266_v6 = vadd.f32 %v9935_v50, %v9842_v52 }
 0x327   : > { %v4334_v21 = vmax.f32 %v4286_v19, 0.0  ;;  %v7366_v44 = vadd.f32 %v3942_v35, %v9273_v63  ;;  %v4257_v19 = vadd.f32 %v9832_v36, %v9885_v22  ;;  %v4263_v35 = vadd.f32 %v9836_v46, %v9923_v43 }
 0x328   : > { %v4288_v9 = vadd.f32 %v7365_v57, %v9983_v33  ;;  %v4260_v57 = vadd.f32 %v9905_v59, %v9838_v53  ;;  %v4269_v36 = vadd.f32 %v9840_v60, %v9941_v24  ;;  %v4314_v22 = vmax.f32 %v4266_v6, 0.0 }
 0x329   : > { %v4289_v31 = vadd.f32 %v7366_v44, %v9983_v33  ;;  %v3946_v39 = vpop.f32.mrb[26].mxu0  ;;  %5476 = vmatprep.mubr.f32.mxu1 %v4334_v21  ;;  %v4311_v21 = vmax.f32 %v4263_v35, 0.0  ;;  %v4272_v53 = vadd.f32 %v9947_v0, %v9847_v12  ;;  %v4275_v46 = vadd.f32 %v9844_v25, %v9953_v17  ;;  %v10305_v44 = vld [vmem:[#allocation21_spill] sm:$0xff] }
 0x32a   : > { %v7367_v1 = vadd.f32 %v3946_v39, %v9290_v20  ;;  %v3948_v38 = vpop.f32.mrb[27].mxu0  ;;  %5477 = vmatmul.mubr.f32.gmra.mrb[70].mxu1 %v4333_v54  ;;  %v4336_v47 = vmax.f32 %v4288_v9, 0.0  ;;  %v4308_v26 = vmax.f32 %v4260_v57, 0.0  ;;  %v4317_v59 = vmax.f32 %v4269_v36, 0.0  ;;  %v10306_v54 = vld [vmem:[#allocation23_spill] sm:$0xff]  ;;  %v10307_v9 = vld [vmem:[#allocation22_spill] sm:$0xff] }
 0x32b   : > { %v4337_v10 = vmax.f32 %v4289_v31, 0.0  ;;  %v7368_v45 = vadd.f32 %v3948_v38, %v9293_v37  ;;  %v4320_v43 = vmax.f32 %v4272_v53, 0.0  ;;  %v4278_v52 = vadd.f32 %v9959_v61, %v9855_v42  ;;  %v10308_v31 = vld [vmem:[#allocation25_spill] sm:$0xff] }
 0x32c   : > { %v4291_v51 = vadd.f32 %v7367_v1, %v9989_v7  ;;  %v4323_v50 = vmax.f32 %v4275_v46, 0.0  ;;  %v4281_v60 = vadd.f32 %v9850_v23, %v9965_v58  ;;  %v4284_v12 = vadd.f32 %v9971_v49, %v9862_v34  ;;  %v10309_v49 = vld [vmem:[#allocation24_spill] sm:$0xff] }
 0x32d   : > { %v4292_v63 = vadd.f32 %v7368_v45, %v9989_v7  ;;  %v3952_v11 = vpop.f32.mrb[28].mxu0  ;;  %5481 = vmatprep.mubr.f32.mxu1 %v4337_v10  ;;  %v4326_v24 = vmax.f32 %v4278_v52, 0.0  ;;  %v4287_v25 = vadd.f32 %v10305_v44, %v9977_v5  ;;  %v4290_v42 = vadd.f32 %v9983_v33, %v10306_v54  ;;  %v5647_v33 = vld [vmem:[%s10233_s4] sm:$0xff] }
 0x32e   : > { %v7369_v3 = vadd.f32 %v3952_v11, %v9312_v4  ;;  %v3954_v62 = vpop.f32.mrb[29].mxu0  ;;  %5482 = vmatmul.mubr.f32.gmra.mrb[72].mxu1 %v4336_v47  ;;  %v4339_v13 = vmax.f32 %v4291_v51, 0.0  ;;  %v4329_v0 = vmax.f32 %v4281_v60, 0.0  ;;  %v4332_v17 = vmax.f32 %v4284_v12, 0.0 }
 0x32f   : > { %v4340_v20 = vmax.f32 %v4292_v63, 0.0  ;;  %v7370_v14 = vadd.f32 %v3954_v62, %v9315_v8  ;;  %v4335_v61 = vmax.f32 %v4287_v25, 0.0  ;;  %v4293_v23 = vadd.f32 %v10307_v9, %v9989_v7 }
 0x330   : > { %v4294_v48 = vadd.f32 %v7369_v3, %v4245_v16  ;;  %v4338_v58 = vmax.f32 %v4290_v42, 0.0  ;;  %v4296_v39 = vadd.f32 %v4245_v16, %v10308_v31  ;;  %v4299_v1 = vadd.f32 %v10309_v49, %v4250_v27 }
 0x331   : > { %v4295_v30 = vadd.f32 %v7370_v14, %v4245_v16  ;;  %v3958_v15 = vpop.f32.mrb[30].mxu0  ;;  %5486 = vmatprep.mubr.f32.mxu1 %v4340_v20  ;;  %v4341_v34 = vmax.f32 %v4293_v23, 0.0 }
 0x332   : > { %v7371_v37 = vadd.f32 %v3958_v15, %v9332_v28  ;;  %v3960_v2 = vpop.f32.mrb[31].mxu0  ;;  %5487 = vmatmul.mubr.f32.gmra.mrb[74].mxu1 %v4339_v13  ;;  %v4342_v4 = vmax.f32 %v4294_v48, 0.0  ;;  %v4302_v28 = vmax.f32 %v4254_v29, 0.0  ;;  %v4344_v38 = vmax.f32 %v4296_v39, 0.0 }
 0x333   : > { %v4343_v56 = vmax.f32 %v4295_v30, 0.0  ;;  %v7372_v18 = vadd.f32 %v3960_v2, %v9335_v32  ;;  %v4305_v32 = vmax.f32 %v4257_v19, 0.0  ;;  %v4347_v5 = vmax.f32 %v4299_v1, 0.0 }
 0x334   : > { %v4297_v41 = vadd.f32 %v7371_v37, %v4250_v27 }
 0x335   : > { %v4298_v40 = vadd.f32 %v7372_v18, %v4250_v27  ;;  %5491 = vmatprep.mubr.f32.mxu1 %v4343_v56 }
 0x336   : > { %5492 = vmatmul.mubr.f32.gmra.mrb[76].mxu1 %v4342_v4  ;;  %v4345_v55 = vmax.f32 %v4297_v41, 0.0 }
 0x337   : > { %v4346_v8 = vmax.f32 %v4298_v40, 0.0 }
 0x339   : > { %5496 = vmatprep.mubr.f32.mxu1 %v4346_v8 }
 0x33a   : > { %5497 = vmatmul.mubr.f32.gmra.mrb[78].mxu1 %v4345_v55 }
 0x33b   : > { %7187 = vmatprep.mubr.f32.mxu1 %v4302_v28 }
 0x33e   : > { %7188 = vmatmul.mubr.f32.vlgmr.msra.gmra.mrb[80].mxu1 %v4305_v32 }
 0x33f   : > { %7190 = vmatprep.mubr.f32.mxu1 %v4308_v26 }
 0x342   : > { %7191 = vmatmul.mubr.f32.gmra.mrb[82].mxu1 %v4311_v21 }
 0x343   : > { %7193 = vmatprep.mubr.f32.mxu1 %v4314_v22 }
 0x346   : > { %7194 = vmatmul.mubr.f32.gmra.mrb[84].mxu1 %v4317_v59 }
 0x347   : > { %7196 = vmatprep.mubr.f32.mxu1 %v4320_v43 }
 0x34a   : > { %7197 = vmatmul.mubr.f32.gmra.mrb[86].mxu1 %v4323_v50 }
 0x34b   : > { %7199 = vmatprep.mubr.f32.mxu1 %v4326_v24 }
 0x34e   : > { %7200 = vmatmul.mubr.f32.gmra.mrb[88].mxu1 %v4329_v0 }
 0x34f   : > { %7202 = vmatprep.mubr.f32.mxu1 %v4332_v17 }
 0x352   : > { %7203 = vmatmul.mubr.f32.gmra.mrb[90].mxu1 %v4335_v61 }
 0x353   : > { %7205 = vmatprep.mubr.f32.mxu1 %v4338_v58 }
 0x356   : > { %7206 = vmatmul.mubr.f32.gmra.mrb[92].mxu1 %v4341_v34 }
 0x357   : > { %7208 = vmatprep.mubr.f32.mxu1 %v4344_v38 }
 0x35a   : > { %7209 = vmatmul.mubr.f32.gmra.mrb[94].mxu1 %v4347_v5 }
 0x35b   : > { %7243 = vmatprep.mubr.f32.mxu1 %v5647_v33 }
 0x3d1   : > { %v6845_v10 = vpop.f32.mrb[48].mxu1 }
 0x3d2   : > { %v6846_v7 = vpop.f32.mrb[49].mxu1 }
 0x3d3   : > { %v6847_v45 = vadd.f32 %v6846_v7, %v6845_v10 }
 0x3d5   : > { %v6848_v47 = vpop.f32.mrb[50].mxu1 }
 0x3d6   : > { %v6849_v51 = vpop.f32.mrb[51].mxu1 }
 0x3d7   : > { %v6850_v63 = vadd.f32 %v6849_v51, %v6848_v47 }
 0x3d9   : > { %v6851_v11 = vpop.f32.mrb[52].mxu1 }
 0x3da   : > { %v6852_v3 = vpop.f32.mrb[53].mxu1 }
 0x3db   : > { %v6853_v62 = vadd.f32 %v6852_v3, %v6851_v11 }
 0x3dd   : > { %v6854_v16 = vpop.f32.mrb[54].mxu1 }
 0x3de   : > { %v6855_v20 = vpop.f32.mrb[55].mxu1 }
 0x3df   : > { %v6856_v14 = vadd.f32 %v6855_v20, %v6854_v16 }
 0x3e1   : > { %v6857_v13 = vpop.f32.mrb[56].mxu1 }
 0x3e2   : > { %v6858_v48 = vpop.f32.mrb[57].mxu1 }
 0x3e3   : > { %v6859_v30 = vadd.f32 %v6858_v48, %v6857_v13 }
 0x3e5   : > { %v6860_v15 = vpop.f32.mrb[58].mxu1 }
 0x3e6   : > { %v6861_v37 = vpop.f32.mrb[59].mxu1 }
 0x3e7   : > { %v6862_v2 = vadd.f32 %v6861_v37, %v6860_v15 }
 0x3e9   : > { %v6863_v27 = vpop.f32.mrb[60].mxu1 }
 0x3ea   : > { %v6864_v56 = vpop.f32.mrb[61].mxu1 }
 0x3eb   : > { %v6865_v18 = vadd.f32 %v6864_v56, %v6863_v27 }
 0x3ed   : > { %v6866_v4 = vpop.f32.mrb[62].mxu1 }
 0x3ee   : > { %v6867_v41 = vpop.f32.mrb[63].mxu1 }
 0x3ef   : > { %v6868_v29 = vadd.f32 %v6867_v41, %v6866_v4 }
 0x3f1   : > { %v6869_v40 = vpop.f32.mrb[64].mxu1 }
 0x3f2   : > { %v6870_v8 = vpop.f32.mrb[65].mxu1 }
 0x3f3   : > { %v6871_v19 = vadd.f32 %v6870_v8, %v6869_v40  ;;  %v5648_v40 = vld [vmem:[%s10233_s4 + $0x8] sm:$0xff]  ;;  %v5649_v8 = vld [vmem:[%s10233_s4 + $0x10] sm:$0xff] }
 0x3f5   : > { %v6872_v55 = vpop.f32.mrb[66].mxu1 }
 0x3f6   : > { %v6873_v28 = vpop.f32.mrb[67].mxu1 }
 0x3f7   : > { %v6874_v57 = vadd.f32 %v6873_v28, %v6872_v55  ;;  %v5651_v55 = vld [vmem:[%s10233_s4 + $0x20] sm:$0xff]  ;;  %v5652_v28 = vld [vmem:[%s10233_s4 + $0x28] sm:$0xff] }
 0x3f9   : > { %v6875_v32 = vpop.f32.mrb[68].mxu1 }
 0x3fa   : > { %v6876_v35 = vpop.f32.mrb[69].mxu1 }
 0x3fb   : > { %v6877_v26 = vadd.f32 %v6876_v35, %v6875_v32  ;;  %v5654_v32 = vld [vmem:[%s10233_s4 + $0x38] sm:$0xff]  ;;  %v5655_v35 = vld [vmem:[%s10233_s4 + $0x40] sm:$0xff] }
 0x3fd   : > { %v6878_v6 = vpop.f32.mrb[70].mxu1 }
 0x3fe   : > { %v6879_v21 = vpop.f32.mrb[71].mxu1 }
 0x3ff   : > { %v6880_v36 = vadd.f32 %v6879_v21, %v6878_v6  ;;  %v5657_v6 = vld [vmem:[%s10233_s4 + $0x50] sm:$0xff]  ;;  %v5658_v21 = vld [vmem:[%s10233_s4 + $0x58] sm:$0xff] }
 0x401   : > { %v6881_v22 = vpop.f32.mrb[72].mxu1 }
 0x402   : > { %v6882_v53 = vpop.f32.mrb[73].mxu1 }
 0x403   : > { %v6883_v59 = vadd.f32 %v6882_v53, %v6881_v22  ;;  %v5660_v22 = vld [vmem:[%s10233_s4 + $0x68] sm:$0xff]  ;;  %v5661_v53 = vld [vmem:[%s10233_s4 + $0x70] sm:$0xff] }
 0x405   : > { %v6884_v46 = vpop.f32.mrb[74].mxu1 }
 0x406   : > { %v6885_v43 = vpop.f32.mrb[75].mxu1 }
 0x407   : > { %v6886_v52 = vadd.f32 %v6885_v43, %v6884_v46  ;;  %v10078_v46 = vstv %s6014_s16  ;;  %v5664_v43 = vld [vmem:[%s10234_s5 + $0x8] sm:$0xff] }
 0x409   : > { %v6887_v50 = vpop.f32.mrb[76].mxu1 }
 0x40a   : > { %v6888_v60 = vpop.f32.mrb[77].mxu1 }
 0x40b   : > { %v6889_v24 = vadd.f32 %v6888_v60, %v6887_v50  ;;  %v10310_v60 = vld [vmem:[#allocation6_spill] sm:$0xff] }
 0x40c   : > { %vm6017_vm13 = vcmp.eq.s32.totalorder %v10310_v60, %v10078_v46 }
 0x40d   : > { %v6890_v12 = vpop.f32.mrb[78].mxu1 }
 0x40e   : > { %v6891_v0 = vpop.f32.mrb[79].mxu1 }
 0x40f   : > { %v6892_v44 = vadd.f32 %v6891_v0, %v6890_v12  ;;  %v10311_v0 = vld [vmem:[#allocation5_spill] sm:$0xff] }
 0x410   : > { %vm6016_vm14 = vcmp.eq.s32.totalorder %v10311_v0, %v10078_v46 }
 0x411   : > { %v7189_v25 = vpop.f32.mrb[80].mxu1 }
 0x412   : > { %v5574_v17 = vadd.f32 %v7189_v25, %v6850_v63  ;;  %v5568_v54 = vpop.f32.mrb[81].mxu1  ;;  %v7898_v25 = vmov -inf  }
 0x413   : > { %v5569_v42 = vadd.f32 %v6847_v45, %v5568_v54  ;;  %v5666_v54 = vld [vmem:[%s10234_s5 + $0x18] sm:$0xff] }
 0x415   : > { %v7307_v61 = vpack.c.bf16 %v5574_v17, %v5569_v42  ;;  %v7192_v9 = vpop.f32.mrb[82].mxu1  ;;  %v5874_v17 = vsel %vm5824_vm12, -1e+30, %v7898_v25 }
 0x416   : > { %v5584_v23 = vadd.f32 %v7192_v9, %v6856_v14  ;;  %v5578_v58 = vpop.f32.mrb[83].mxu1 }
 0x417   : > { %v5579_v31 = vadd.f32 %v6853_v62, %v5578_v58  ;;  %7308 = vmatprep.subr.bf16.mxu1 %v7307_v61 }
 0x418   : > { %7310 = vmatpush3.bf16.msra.mxu1 %v7307_v61  ;;  %v5665_v61 = vld [vmem:[%s10234_s5 + $0x10] sm:$0xff] }
 0x419   : > { %v7311_v39 = vpack.c.bf16 %v5584_v23, %v5579_v31  ;;  %v7195_v34 = vpop.f32.mrb[84].mxu1  ;;  %v10312_v31 = vld [vmem:[#allocation8_spill] sm:$0xff] }
 0x41a   : > { %v5594_v49 = vadd.f32 %v7195_v34, %v6862_v2  ;;  %v5588_v1 = vpop.f32.mrb[85].mxu1  ;;  %vm6019_vm15 = vcmp.eq.s32.totalorder %v10312_v31, %v10078_v46 }
 0x41b   : > { %v5589_v38 = vadd.f32 %v6859_v30, %v5588_v1  ;;  %7312 = vmatprep.subr.bf16.mxu1 %v7311_v39 }
 0x41c   : > { %7314 = vmatpush3.bf16.msra.mxu1 %v7311_v39 }
 0x41d   : > { %v7315_v5 = vpack.c.bf16 %v5594_v49, %v5589_v38  ;;  %v7198_v33 = vpop.f32.mrb[86].mxu1  ;;  %v10313_v38 = vld [vmem:[#allocation7_spill] sm:$0xff] }
 0x41e   : > { %v5604_v10 = vadd.f32 %v7198_v33, %v6868_v29  ;;  %v5598_v7 = vpop.f32.mrb[87].mxu1  ;;  %vm6018_vm0 = vcmp.eq.s32.totalorder %v10313_v38, %v10078_v46 }
 0x41f   : > { %v5599_v47 = vadd.f32 %v6865_v18, %v5598_v7  ;;  %7316 = vmatprep.subr.bf16.mxu1 %v7315_v5  ;;  %v5668_v7 = vld [vmem:[%s10234_s5 + $0x28] sm:$0xff] }
 0x420   : > { %7318 = vmatpush3.bf16.msra.mxu1 %v7315_v5 }
 0x421   : > { %v7319_v45 = vpack.c.bf16 %v5604_v10, %v5599_v47  ;;  %v7201_v51 = vpop.f32.mrb[88].mxu1 }
 0x422   : > { %v5614_v63 = vadd.f32 %v7201_v51, %v6874_v57  ;;  %v5608_v11 = vpop.f32.mrb[89].mxu1  ;;  %v5653_v57 = vld [vmem:[%s10233_s4 + $0x30] sm:$0xff]  ;;  %v5667_v51 = vld [vmem:[%s10234_s5 + $0x20] sm:$0xff] }
 0x423   : > { %v5609_v3 = vadd.f32 %v6871_v19, %v5608_v11  ;;  %7320 = vmatprep.subr.bf16.mxu1 %v7319_v45  ;;  %v5650_v19 = vld [vmem:[%s10233_s4 + $0x18] sm:$0xff] }
 0x424   : > { %7322 = vmatpush3.bf16.msra.mxu1 %v7319_v45 }
 0x425   : > { %v7323_v62 = vpack.c.bf16 %v5614_v63, %v5609_v3  ;;  %v7204_v16 = vpop.f32.mrb[90].mxu1  ;;  %v10314_v3 = vld [vmem:[#allocation10_spill] sm:$0xff] }
 0x426   : > { %v5624_v20 = vadd.f32 %v7204_v16, %v6880_v36  ;;  %v5618_v14 = vpop.f32.mrb[91].mxu1  ;;  %v5659_v36 = vld [vmem:[%s10233_s4 + $0x60] sm:$0xff]  ;;  %vm6021_vm2 = vcmp.eq.s32.totalorder %v10314_v3, %v10078_v46 }
 0x427   : > { %v5619_v13 = vadd.f32 %v6877_v26, %v5618_v14  ;;  %7324 = vmatprep.subr.bf16.mxu1 %v7323_v62  ;;  %v5656_v26 = vld [vmem:[%s10233_s4 + $0x48] sm:$0xff] }
 0x428   : > { %7326 = vmatpush3.bf16.msra.mxu1 %v7323_v62  ;;  %v10315_v62 = vld [vmem:[#allocation9_spill] sm:$0xff] }
 0x429   : > { %v7327_v48 = vpack.c.bf16 %v5624_v20, %v5619_v13  ;;  %v7207_v30 = vpop.f32.mrb[92].mxu1  ;;  %vm6020_vm3 = vcmp.eq.s32.totalorder %v10315_v62, %v10078_v46 }
 0x42a   : > { %v5634_v15 = vadd.f32 %v7207_v30, %v6886_v52  ;;  %v5628_v37 = vpop.f32.mrb[93].mxu1  ;;  %v5663_v52 = vld [vmem:[%s10234_s5] sm:$0xff] }
 0x42b   : > { %v5629_v2 = vadd.f32 %v6883_v59, %v5628_v37  ;;  %7328 = vmatprep.subr.bf16.mxu1 %v7327_v48  ;;  %v5662_v59 = vld [vmem:[%s10233_s4 + $0x78] sm:$0xff] }
 0x42c   : > { %7330 = vmatpush3.bf16.msra.mxu1 %v7327_v48  ;;  %v5670_v37 = vld [vmem:[%s10234_s5 + $0x38] sm:$0xff] }
 0x42d   : > { %v7331_v27 = vpack.c.bf16 %v5634_v15, %v5629_v2  ;;  %v7210_v56 = vpop.f32.mrb[94].mxu1 }
 0x42e   : > { %v5644_v18 = vadd.f32 %v7210_v56, %v6892_v44  ;;  %v5638_v4 = vpop.f32.mrb[95].mxu1  ;;  %v5669_v56 = vld [vmem:[%s10234_s5 + $0x30] sm:$0xff] }
 0x42f   : > { %v5639_v41 = vadd.f32 %v6889_v24, %v5638_v4  ;;  %7332 = vmatprep.subr.bf16.mxu1 %v7331_v27 }
 0x430   : > { %7334 = vmatpush3.bf16.msra.mxu1 %v7331_v27 }
 0x431   : > { %v7335_v29 = vpack.c.bf16 %v5644_v18, %v5639_v41 }
 0x433   : > { %7336 = vmatprep.subr.bf16.mxu1 %v7335_v29 }
 0x434   : > { %7338 = vmatpush3.bf16.msra.mxu1 %v7335_v29  ;;  %v10316_v29 = vld [vmem:[#allocation12_spill] sm:$0xff] }
 0x435   : > { %vm6023_vm4 = vcmp.eq.s32.totalorder %v10316_v29, %v10078_v46 }
 0x437   : > { %7244 = vmatmul.mubr.f32.vlgmr.msra.gmra.mrb[96].mxu1 %v5648_v40  ;;  %v10317_v40 = vld [vmem:[#allocation11_spill] sm:$0xff] }
 0x438   : > { %7246 = vmatprep.mubr.f32.mxu1 %v5649_v8  ;;  %vm6022_vm5 = vcmp.eq.s32.totalorder %v10317_v40, %v10078_v46 }
 0x43b   : > { %7247 = vmatmul.mubr.f32.gmra.mrb[98].mxu1 %v5650_v19 }
 0x43c   : > { %7249 = vmatprep.mubr.f32.mxu1 %v5651_v55 }
 0x43f   : > { %7250 = vmatmul.mubr.f32.gmra.mrb[100].mxu1 %v5652_v28 }
 0x440   : > { %7252 = vmatprep.mubr.f32.mxu1 %v5653_v57 }
 0x443   : > { %7253 = vmatmul.mubr.f32.gmra.mrb[102].mxu1 %v5654_v32 }
 0x444   : > { %7255 = vmatprep.mubr.f32.mxu1 %v5655_v35 }
 0x447   : > { %7256 = vmatmul.mubr.f32.gmra.mrb[104].mxu1 %v5656_v26  ;;  %v5672_v26 = vld [vmem:[%s10234_s5 + $0x48] sm:$0xff] }
 0x448   : > { %7258 = vmatprep.mubr.f32.mxu1 %v5657_v6 }
 0x44b   : > { %7259 = vmatmul.mubr.f32.gmra.mrb[106].mxu1 %v5658_v21 }
 0x44c   : > { %7261 = vmatprep.mubr.f32.mxu1 %v5659_v36  ;;  %v5671_v36 = vld [vmem:[%s10234_s5 + $0x40] sm:$0xff] }
 0x44f   : > { %7262 = vmatmul.mubr.f32.gmra.mrb[108].mxu1 %v5660_v22 }
 0x450   : > { %7264 = vmatprep.mubr.f32.mxu1 %v5661_v53 }
 0x453   : > { %7265 = vmatmul.mubr.f32.gmra.mrb[110].mxu1 %v5662_v59 }
 0x50a   : > { %v7245_v50 = vpop.f32.mrb[96].mxu1 }
 0x50b   : > { %v5751_v24 = vadd.f32 %v7245_v50, %v5664_v43  ;;  %v5745_v12 = vpop.f32.mrb[97].mxu1  ;;  %v10318_v43 = vld [vmem:[#allocation14_spill] sm:$0xff] }
 0x50c   : > { %v10095_v44 = vadd.f32 %v5745_v12, %v5663_v52  ;;  %vm6025_vm6 = vcmp.eq.s32.totalorder %v10318_v43, %v10078_v46  ;;  %v10319_v52 = vld [vmem:[#allocation13_spill] sm:$0xff] }
 0x50d   : > { %5826 = vst.msk [vmem:[%s10089_s23 + $0x8] sm:$0xff] %vm5824_vm12, %v5751_v24  ;;  %v6033_v42 = vsel %vm6017_vm13, %v5751_v24, 0.0  ;;  %vm6024_vm7 = vcmp.eq.s32.totalorder %v10319_v52, %v10078_v46 }
 0x50e   : > { %v6049_v9 = vsel %vm5824_vm12, %v6033_v42, 0.0  ;;  %5825 = vst.msk [vmem:[%s10089_s23] sm:$0xff] %vm5824_vm12, %v10095_v44  ;;  %v5873_v23 = vsel %vm5824_vm12, %v10095_v44, -inf  ;;  %v7248_v58 = vpop.f32.mrb[98].mxu1  ;;  %v6032_v39 = vsel %vm6016_vm14, %v10095_v44, 0.0 }
 0x50f   : > { %v5878_v34 = vmax.f32 %v5873_v23, %v5874_v17  ;;  %v5761_v49 = vadd.f32 %v7248_v58, %v5666_v54  ;;  %v5755_v1 = vpop.f32.mrb[99].mxu1  ;;  %v6048_v5 = vsel %vm5824_vm12, %v6032_v39, 0.0  ;;  %v5674_v54 = vld [vmem:[%s10234_s5 + $0x58] sm:$0xff] }
 0x510   : > { %v5756_v33 = vadd.f32 %v5755_v1, %v5665_v61  ;;  %v6050_v10 = vadd.f32 %v6049_v9, %v6048_v5  ;;  %v5673_v9 = vld [vmem:[%s10234_s5 + $0x50] sm:$0xff]  ;;  %v10320_v39 = vld [vmem:[#allocation16_spill] sm:$0xff] }
 0x511   : > { %v5886_v47 = vmax.f32 %v5878_v34, %v5874_v17  ;;  %5828 = vst.msk [vmem:[%s10089_s23 + $0x18] sm:$0xff] %vm5824_vm12, %v5761_v49  ;;  %v6035_v45 = vsel %vm6019_vm15, %v5761_v49, 0.0  ;;  %vm6027_vm8 = vcmp.eq.s32.totalorder %v10320_v39, %v10078_v46  ;;  %v10321_v34 = vld [vmem:[#allocation15_spill] sm:$0xff] }
 0x512   : > { %5827 = vst.msk [vmem:[%s10089_s23 + $0x10] sm:$0xff] %vm5824_vm12, %v5756_v33  ;;  %v6034_v63 = vsel %vm6018_vm0, %v5756_v33, 0.0  ;;  %v7251_v11 = vpop.f32.mrb[100].mxu1  ;;  %v6053_v20 = vsel %vm5824_vm12, %v6035_v45, 0.0  ;;  %vm6026_vm9 = vcmp.eq.s32.totalorder %v10321_v34, %v10078_v46 }
 0x513   : > { %v5894_v16 = vmax.f32 %v5886_v47, %v5874_v17  ;;  %v6051_v14 = vsel %vm5824_vm12, %v6034_v63, 0.0  ;;  %v5771_v13 = vadd.f32 %v7251_v11, %v5668_v7  ;;  %v5765_v48 = vpop.f32.mrb[101].mxu1  ;;  %v5676_v47 = vld [vmem:[%s10234_s5 + $0x68] sm:$0xff]  ;;  %v5675_v63 = vld [vmem:[%s10234_s5 + $0x60] sm:$0xff] }
 0x514   : > { %v6052_v30 = vadd.f32 %v6051_v14, %v6050_v10  ;;  %v5766_v15 = vadd.f32 %v5765_v48, %v5667_v51 }
 0x515   : > { %v5901_v2 = vmax.f32 %v5894_v16, %v5874_v17  ;;  %5830 = vst.msk [vmem:[%s10089_s23 + $0x28] sm:$0xff] %vm5824_vm12, %v5771_v13  ;;  %v6037_v27 = vsel %vm6021_vm2, %v5771_v13, 0.0  ;;  %v10322_v16 = vld [vmem:[#allocation18_spill] sm:$0xff] }
 0x516   : > { %5829 = vst.msk [vmem:[%s10089_s23 + $0x20] sm:$0xff] %vm5824_vm12, %v5766_v15  ;;  %v6036_v18 = vsel %vm6020_vm3, %v5766_v15, 0.0  ;;  %v6054_v4 = vadd.f32 %v6053_v20, %v6052_v30  ;;  %v7254_v41 = vpop.f32.mrb[102].mxu1  ;;  %v6057_v19 = vsel %vm5824_vm12, %v6037_v27, 0.0  ;;  %vm6029_vm10 = vcmp.eq.s32.totalorder %v10322_v16, %v10078_v46  ;;  %v10323_v20 = vld [vmem:[#allocation17_spill] sm:$0xff]  ;;  %v5678_v27 = vld [vmem:[%s10234_s5 + $0x78] sm:$0xff] }
 0x517   : > { %v5903_v8 = vmax.f32 %v5901_v2, %v5874_v17  ;;  %v6055_v55 = vsel %vm5824_vm12, %v6036_v18, 0.0  ;;  %v5781_v28 = vadd.f32 %v7254_v41, %v5670_v37  ;;  %v5775_v57 = vpop.f32.mrb[103].mxu1  ;;  %vm6028_vm11 = vcmp.eq.s32.totalorder %v10323_v20, %v10078_v46 }
 0x518   : > { %v6056_v32 = vadd.f32 %v6055_v55, %v6054_v4  ;;  %v5776_v35 = vadd.f32 %v5775_v57, %v5669_v56  ;;  %v5677_v4 = vld [vmem:[%s10234_s5 + $0x70] sm:$0xff] }
 0x519   : > { %v5904_v6 = vrot.slane %v5903_v8, 4  ;;  %5832 = vst.msk [vmem:[%s10089_s23 + $0x38] sm:$0xff] %vm5824_vm12, %v5781_v28  ;;  %v6039_v21 = vsel %vm6023_vm4, %v5781_v28, 0.0 }
 0x51a   : > { %5831 = vst.msk [vmem:[%s10089_s23 + $0x30] sm:$0xff] %vm5824_vm12, %v5776_v35  ;;  %v6038_v22 = vsel %vm6022_vm5, %v5776_v35, 0.0  ;;  %v6058_v53 = vadd.f32 %v6057_v19, %v6056_v32  ;;  %v7257_v59 = vpop.f32.mrb[104].mxu1  ;;  %v6061_v60 = vsel %vm5824_vm12, %v6039_v21, 0.0  ;;  %v10325_v19 = vld [vmem:[#allocation19_spill] sm:$0xff] }
 0x51b   : > { %v5905_v50 = vmax.f32 %v5903_v8, %v5904_v6  ;;  %v6059_v24 = vsel %vm5824_vm12, %v6038_v22, 0.0  ;;  %v5791_v12 = vadd.f32 %v7257_v59, %v5672_v26  ;;  %v5785_v0 = vpop.f32.mrb[105].mxu1  ;;  %v10324_v8 = vld [vmem:[#allocation20_spill] sm:$0xff]  ;;  %vm6030_vm13 = vcmp.eq.s32.totalorder %v10325_v19, %v10078_v46 }
 0x51c   : > { %v6060_v25 = vadd.f32 %v6059_v24, %v6058_v53  ;;  %v5786_v17 = vadd.f32 %v5785_v0, %v5671_v36  ;;  %vm6031_vm1 = vcmp.eq.s32.totalorder %v10324_v8, %v10078_v46 }
 0x51d   : > { %v5906_v42 = vrot.slane %v5905_v50, 2  ;;  %5834 = vst.msk [vmem:[%s10089_s23 + $0x48] sm:$0xff] %vm5824_vm12, %v5791_v12  ;;  %v6041_v61 = vsel %vm6025_vm6, %v5791_v12, 0.0 }
 0x51e   : > { %5833 = vst.msk [vmem:[%s10089_s23 + $0x40] sm:$0xff] %vm5824_vm12, %v5786_v17  ;;  %v6040_v23 = vsel %vm6024_vm7, %v5786_v17, 0.0  ;;  %v6062_v58 = vadd.f32 %v6061_v60, %v6060_v25  ;;  %v7260_v31 = vpop.f32.mrb[106].mxu1  ;;  %v6065_v1 = vsel %vm5824_vm12, %v6041_v61, 0.0 }
 0x51f   : > { %v5907_v49 = vmax.f32 %v5905_v50, %v5906_v42  ;;  %v6063_v38 = vsel %vm5824_vm12, %v6040_v23, 0.0  ;;  %v5801_v5 = vadd.f32 %v7260_v31, %v5674_v54  ;;  %v5795_v33 = vpop.f32.mrb[107].mxu1 }
 0x520   : > { %v6064_v10 = vadd.f32 %v6063_v38, %v6062_v58  ;;  %v5796_v7 = vadd.f32 %v5795_v33, %v5673_v9 }
 0x521   : > { %v5908_v45 = vrot.slane %v5907_v49, 1  ;;  %5836 = vst.msk [vmem:[%s10089_s23 + $0x58] sm:$0xff] %vm5824_vm12, %v5801_v5  ;;  %v6043_v51 = vsel %vm6027_vm8, %v5801_v5, 0.0 }
 0x522   : > { %5835 = vst.msk [vmem:[%s10089_s23 + $0x50] sm:$0xff] %vm5824_vm12, %v5796_v7  ;;  %v6042_v11 = vsel %vm6026_vm9, %v5796_v7, 0.0  ;;  %v6066_v3 = vadd.f32 %v6065_v1, %v6064_v10  ;;  %v7263_v62 = vpop.f32.mrb[108].mxu1  ;;  %v6069_v13 = vsel %vm5824_vm12, %v6043_v51, 0.0 }
 0x523   : > { %v5909_v14 = vmax.f32 %v5907_v49, %v5908_v45  ;;  %v6067_v48 = vsel %vm5824_vm12, %v6042_v11, 0.0  ;;  %v5811_v30 = vadd.f32 %v7263_v62, %v5676_v47  ;;  %v5805_v15 = vpop.f32.mrb[109].mxu1 }
 0x524   : > { %v6068_v37 = vadd.f32 %v6067_v48, %v6066_v3  ;;  %v5806_v2 = vadd.f32 %v5805_v15, %v5675_v63 }
 0x525   : > { %v5910_v56 = vsub.f32 %v10095_v44, %v5909_v14  ;;  %5838 = vst.msk [vmem:[%s10089_s23 + $0x68] sm:$0xff] %vm5824_vm12, %v5811_v30  ;;  %v6045_v18 = vsel %vm6029_vm10, %v5811_v30, 0.0 }
 0x526   : > { %5837 = vst.msk [vmem:[%s10089_s23 + $0x60] sm:$0xff] %vm5824_vm12, %v5806_v2  ;;  %v6044_v41 = vsel %vm6028_vm11, %v5806_v2, 0.0  ;;  %v6070_v29 = vadd.f32 %v6069_v13, %v6068_v37  ;;  %v7266_v40 = vpop.f32.mrb[110].mxu1  ;;  %v6073_v55 = vsel %vm5824_vm12, %v6045_v18, 0.0 }
 0x527   : > { %v5926_v44 = vmul.f32 1.442695, %v5910_v56  ;;  %v6071_v28 = vsel %vm5824_vm12, %v6044_v41, 0.0  ;;  %v5821_v57 = vadd.f32 %v7266_v40, %v5678_v27  ;;  %v5815_v32 = vpop.f32.mrb[111].mxu1 }
 0x528   : > { %v6072_v35 = vadd.f32 %v6071_v28, %v6070_v29  ;;  %v5816_v26 = vadd.f32 %v5815_v32, %v5677_v4 }
 0x529   : > { %7860 = vpow2.f32 %v5926_v44  ;;  %5840 = vst.msk [vmem:[%s10089_s23 + $0x78] sm:$0xff] %vm5824_vm12, %v5821_v57  ;;  %v6047_v6 = vsel %vm6031_vm1, %v5821_v57, 0.0 }
 0x52a   : > { %5839 = vst.msk [vmem:[%s10089_s23 + $0x70] sm:$0xff] %vm5824_vm12, %v5816_v26  ;;  %v6046_v21 = vsel %vm6030_vm13, %v5816_v26, 0.0  ;;  %v6074_v36 = vadd.f32 %v6073_v55, %v6072_v35  ;;  %v6077_v22 = vsel %vm5824_vm12, %v6047_v6, 0.0 }
 0x52b   : > { %v6075_v46 = vsel %vm5824_vm12, %v6046_v21, 0.0 }
 0x52c   : > { %v6076_v53 = vadd.f32 %v6075_v46, %v6074_v36 }
 0x52e   : > { %v6078_v59 = vadd.f32 %v6077_v22, %v6076_v53 }
 0x530   : > { %v6079_v12 = vrot.slane %v6078_v59, 4 }
 0x532   : > { %v6080_v17 = vadd.f32 %v6079_v12, %v6078_v59 }
 0x533   : > { %v7861_v43 = vpop.eup %7860 }
 0x534   : > { %v5974_v52 = vsel %vm5824_vm12, %v7861_v43, 0.0  ;;  %v6081_v42 = vrot.slane %v6080_v17, 2  ;;  %vm6086_vm12 = vcmask 0  }
 0x535   : > { %v6005_v50 = vrot.slane %v5974_v52, 4 }
 0x536   : > { %v6082_v61 = vadd.f32 %v6081_v42, %v6080_v17 }
 0x537   : > { %v6006_v60 = vadd.f32 %v6005_v50, %v5974_v52 }
 0x538   : > { %v6083_v9 = vrot.slane %v6082_v61, 1 }
 0x539   : > { %v6007_v24 = vrot.slane %v6006_v60, 2 }
 0x53a   : > { %v6084_v39 = vadd.f32 %v6083_v9, %v6082_v61 }
 0x53b   : > { %v6008_v0 = vadd.f32 %v6007_v24, %v6006_v60 }
 0x53d   : > { %v6009_v25 = vrot.slane %v6008_v0, 1 }
 0x53f   : > { %v6010_v54 = vadd.f32 %v6009_v25, %v6008_v0 }
 0x541   : > { %7862 = vlog2.f32 %v6010_v54 }
 0x54b   : > { %v7863_v23 = vpop.eup %7862 }
 0x54c   : > { %v6012_v58 = vmul.f32 0.6931472, %v7863_v23 }
 0x54e   : > { %v6013_v31 = vadd.f32 %v6012_v58, %v5909_v14 }
 0x550   : > { %v6085_v34 = vsub.f32 %v6013_v31, %v6084_v39 }
 0x552   : > { %6087 = vst.msk [vmem:[%s267_s10] sm:$0x1] %vm6086_vm12, %v6085_v34 }
 0x553 PF: > { %s24_s29 = sadd.s32 1, %s7884_s29  }
 0x554   : > { %p21_p9 = scmp.ge.s32.totalorder %s24_s29, 4  }
 0x556   :  { %23 = sbr.rel (!%p21_p9) target bundleno = 16 (0x10), region = 90 }

</bundles_post_ra>
